<compile_context>
chip_gen: v7x
topology: tpu7x:2x2x1
jax: 0.10.0
libtpu: 0.0.40
codegen_flags: <defaults>
</compile_context>

<pallas_src>
import math
import functools

import jax
import jax.numpy as jnp
from jax import lax
from jax.experimental import pallas as pl
from jax.experimental.pallas import tpu as pltpu

LN_EPS = 1e-5                       # PyTorch nn.LayerNorm default
_INV_SQRT2 = 1.0 / math.sqrt(2.0)


# ---------------------------------------------------------------------------
# shared math helpers (pure jnp; used both in-kernel and in the reference)
# ---------------------------------------------------------------------------
def _layernorm(x, g, b):
    """LayerNorm over the last axis (biased variance, like PyTorch)."""
    mu = jnp.mean(x, axis=-1, keepdims=True)
    var = jnp.mean(jnp.square(x - mu), axis=-1, keepdims=True)
    return (x - mu) * lax.rsqrt(var + LN_EPS) * g + b


def _gelu(x):
    """Exact (erf-based) GELU, matching nn.GELU() default."""
    return 0.5 * x * (1.0 + lax.erf(x * _INV_SQRT2))


def _largest_divisor(n, candidates):
    for c in candidates:
        if 0 < c <= n and n % c == 0:
            return c
    return 1


def _vmem_limit(block_bytes):
    # double-buffered blocks + headroom, clamped to sane per-generation bounds
    need = 2 * int(block_bytes) + (4 << 20)
    return int(min(64 << 20, max(16 << 20, need)))


# ---------------------------------------------------------------------------
# patch embedding: (B*N, C*P*P) @ (C*P*P, D) + b  (tiled over rows)
# ---------------------------------------------------------------------------
def _patch_embed_kernel(x_ref, w_ref, b_ref, o_ref):
    x = x_ref[...].astype(jnp.bfloat16)
    o_ref[...] = (
        jnp.dot(x, w_ref[...], preferred_element_type=jnp.float32) + b_ref[...]
    )


def patch_embed(x_patches, w, b):
    M, K = x_patches.shape
    D = w.shape[1]
    tm = _largest_divisor(M, [512, 256, 128, 64, 32, 16, 8, 4, 2, 1])
    block_bytes = tm * K * 4 + K * D * 2 + D * 4 + tm * D * 4
    return pl.pallas_call(
        _patch_embed_kernel,
        out_shape=jax.ShapeDtypeStruct((M, D), jnp.float32),
        grid=(M // tm,),
        in_specs=[
            pl.BlockSpec((tm, K), lambda i: (i, 0)),
            pl.BlockSpec((K, D), lambda i: (0, 0)),   # weights stay resident
            pl.BlockSpec((1, D), lambda i: (0, 0)),
        ],
        out_specs=pl.BlockSpec((tm, D), lambda i: (i, 0)),
        compiler_params=pltpu.CompilerParams(
            dimension_semantics=("parallel",),
            vmem_limit_bytes=_vmem_limit(block_bytes),
        ),
    )(x_patches, w, b)


# ---------------------------------------------------------------------------
# fused mixer stack: grid = (batch_tiles, num_blocks)
# ---------------------------------------------------------------------------
def _mixer_stack_kernel(
    x_ref,                                     # (Bb, N, D)  f32
    ln1g_ref, ln1b_ref,                        # (1, 1, D)   f32
    tw1_ref, tb1_ref,                          # (1, T, N) bf16, (1, T, 1) f32
    tw2_ref, tb2_ref,                          # (1, N, T) bf16, (1, N, 1) f32
    ln2g_ref, ln2b_ref,                        # (1, 1, D)   f32
    cw1_ref, cb1_ref,                          # (1, D, Cm) bf16, (1, 1, Cm) f32
    cw2_ref, cb2_ref,                          # (1, Cm, D) bf16, (1, 1, D) f32
    o_ref,                                     # (Bb, N, D)  f32  (resident)
):
    l = pl.program_id(1)

    # o_ref holds the running activation across the (arbitrary) block axis.
    @pl.when(l == 0)
    def _():
        o_ref[...] = x_ref[...]

    x = o_ref[...]                             # (Bb, N, D) f32
    Bb, N, D = x.shape

    ln1g = ln1g_ref[0]                         # (1, D)
    ln1b = ln1b_ref[0]
    tw1 = tw1_ref[0]                           # (T, N)  bf16, (out, in)
    tb1 = tb1_ref[0]                           # (T, 1)
    tw2 = tw2_ref[0]                           # (N, T)  bf16, (out, in)
    tb2 = tb2_ref[0]                           # (N, 1)

    # ---- token mixing: LN -> MLP over N, channels stay on the lane axis ----
    # Weights are pre-stored in (out, in) layout so both matmuls are plain
    # (no transposes): h = W1 @ y, t = W2 @ gelu(h).
    for b in range(Bb):                        # static unroll over batch tile
        xb = x[b]                              # (N, D)
        yb = _layernorm(xb, ln1g, ln1b).astype(jnp.bfloat16)
        h = _gelu(
            jnp.dot(tw1, yb, preferred_element_type=jnp.float32) + tb1
        )                                      # (T, D) f32
        t = (
            jnp.dot(tw2, h.astype(jnp.bfloat16),
                    preferred_element_type=jnp.float32)
            + tb2
        )                                      # (N, D) f32
        o_ref[b] = xb + t                      # residual
    x = o_ref[...]                             # token-mixed (Bb, N, D)

    # ---- channel mixing: one big (Bb*N, D) @ (D, Cm) matmul ----------------
    ln2g = ln2g_ref[0]
    ln2b = ln2b_ref[0]
    cw1 = cw1_ref[0]                           # (D, Cm) bf16
    cb1 = cb1_ref[0]                           # (1, Cm)
    cw2 = cw2_ref[0]                           # (Cm, D) bf16
    cb2 = cb2_ref[0]                           # (1, D)

    y = _layernorm(x, ln2g, ln2b).astype(jnp.bfloat16).reshape(Bb * N, D)
    h = _gelu(
        jnp.dot(y, cw1, preferred_element_type=jnp.float32) + cb1
    )                                          # (Bb*N, Cm) f32
    c = (
        jnp.dot(h.astype(jnp.bfloat16), cw2,
                preferred_element_type=jnp.float32)
        + cb2
    )                                          # (Bb*N, D) f32
    o_ref[...] = x + c.reshape(Bb, N, D)       # residual


def mixer_stack(x, bp):
    """x: (B, N, D) f32; bp: dict of block params stacked on a leading L axis."""
    B, N, D = x.shape
    L, T, _ = bp["tk_w1"].shape
    Cm = bp["ch_w1"].shape[2]

    # batch tile: push the channel-mix M dim (Bb*N) towards 128-1024 rows
    Bb = 1
    for c in (32, 16, 8, 4, 2, 1):
        if B % c == 0 and c * N <= 1024:
            Bb = c
            break

    wblock_bytes = (
        4 * D * 4                       # LN gammas/betas + channel biases
        + 2 * T * N * 2 + T * 4 + N * 4 # token-mix weights (bf16) + biases
        + 2 * D * Cm * 2 + Cm * 4       # channel-mix weights (bf16) + bias
    )
    block_bytes = 2 * (Bb * N * D * 4) + wblock_bytes

    return pl.pallas_call(
        _mixer_stack_kernel,
        out_shape=jax.ShapeDtypeStruct((B, N, D), jnp.float32),
        grid=(B // Bb, L),
        in_specs=[
            pl.BlockSpec((Bb, N, D), lambda bt, l: (bt, 0, 0)),   # activations
            pl.BlockSpec((1, 1, D), lambda bt, l: (l, 0, 0)),     # ln1 gamma
            pl.BlockSpec((1, 1, D), lambda bt, l: (l, 0, 0)),     # ln1 beta
            pl.BlockSpec((1, T, N), lambda bt, l: (l, 0, 0)),     # token fc1 W
            pl.BlockSpec((1, T, 1), lambda bt, l: (l, 0, 0)),     # token fc1 b
            pl.BlockSpec((1, N, T), lambda bt, l: (l, 0, 0)),     # token fc2 W
            pl.BlockSpec((1, N, 1), lambda bt, l: (l, 0, 0)),     # token fc2 b
            pl.BlockSpec((1, 1, D), lambda bt, l: (l, 0, 0)),     # ln2 gamma
            pl.BlockSpec((1, 1, D), lambda bt, l: (l, 0, 0)),     # ln2 beta
            pl.BlockSpec((1, D, Cm), lambda bt, l: (l, 0, 0)),    # chan fc1 W
            pl.BlockSpec((1, 1, Cm), lambda bt, l: (l, 0, 0)),    # chan fc1 b
            pl.BlockSpec((1, Cm, D), lambda bt, l: (l, 0, 0)),    # chan fc2 W
            pl.BlockSpec((1, 1, D), lambda bt, l: (l, 0, 0)),     # chan fc2 b
        ],
        out_specs=pl.BlockSpec((Bb, N, D), lambda bt, l: (bt, 0, 0)),
        compiler_params=pltpu.CompilerParams(
            dimension_semantics=("parallel", "arbitrary"),
            vmem_limit_bytes=_vmem_limit(block_bytes),
        ),
    )(
        x,
        bp["ln1_g"], bp["ln1_b"],
        bp["tk_w1"], bp["tk_b1"], bp["tk_w2"], bp["tk_b2"],
        bp["ln2_g"], bp["ln2_b"],
        bp["ch_w1"], bp["ch_b1"], bp["ch_w2"], bp["ch_b2"],
    )


# ---------------------------------------------------------------------------
# head: LN over D -> mean over tokens -> classifier
# ---------------------------------------------------------------------------
def _head_kernel(x_ref, lng_ref, lnb_ref, w_ref, b_ref, o_ref):
    y = _layernorm(x_ref[...], lng_ref[...], lnb_ref[...])      # (Bt, N, D)
    m = jnp.mean(y, axis=1).astype(jnp.bfloat16)                # (Bt, D)
    o_ref[...] = (
        jnp.dot(m, w_ref[...], preferred_element_type=jnp.float32) + b_ref[...]
    )


def head(x, ln_g, ln_b, w, b):
    B, N, D = x.shape
    C = w.shape[1]
    Bt = _largest_divisor(B, [128, 64, 32, 16, 8, 4, 2, 1])
    block_bytes = Bt * N * D * 4 + D * C * 2 + C * 4 + Bt * C * 4 + 2 * D * 4
    return pl.pallas_call(
        _head_kernel,
        out_shape=jax.ShapeDtypeStruct((B, C), jnp.float32),
        grid=(B // Bt,),
        in_specs=[
            pl.BlockSpec((Bt, N, D), lambda i: (i, 0, 0)),
            pl.BlockSpec((1, D), lambda i: (0, 0)),
            pl.BlockSpec((1, D), lambda i: (0, 0)),
            pl.BlockSpec((D, C), lambda i: (0, 0)),
            pl.BlockSpec((1, C), lambda i: (0, 0)),
        ],
        out_specs=pl.BlockSpec((Bt, C), lambda i: (i, 0)),
        compiler_params=pltpu.CompilerParams(
            dimension_semantics=("parallel",),
            vmem_limit_bytes=_vmem_limit(block_bytes),
        ),
    )(x, ln_g, ln_b, w, b)


# ---------------------------------------------------------------------------
# model wrapper (glue in plain JAX)
# ---------------------------------------------------------------------------
def mlp_mixer_forward(x, params, patch_size):
    """x: (B, C, H, W) float32 (PyTorch NCHW convention)."""
    B, C, H, W = x.shape
    P = patch_size
    nh, nw = H // P, W // P
    N = nh * nw
    D = params["pe_w"].shape[1]

    # stride-P conv == extract non-overlapping patches + linear projection
    patches = (
        x.reshape(B, C, nh, P, nw, P)
        .transpose(0, 2, 4, 1, 3, 5)            # (B, nh, nw, C, P, P)
        .reshape(B * N, C * P * P)
    )
    tok = patch_embed(patches, params["pe_w"], params["pe_b"])   # (B*N, D)
    tok = tok.reshape(B, N, D)

    tok = mixer_stack(tok, params["blocks"])                     # all blocks

    return head(tok, params["ln_g"], params["ln_b"],
                params["cls_w"], params["cls_b"])


# ---------------------------------------------------------------------------
# parameter init (weights stored bf16, token-MLP weights in (out, in) layout,
# all mixer-block params stacked along a leading "block" axis)
# ---------------------------------------------------------------------------
def init_params(key, in_channels, dim, num_blocks, patch_size,
                tokens_mlp_dim, channels_mlp_dim, num_classes, image_size):
    N = (image_size // patch_size) ** 2
    K = in_channels * patch_size * patch_size
    D, T, Cm, L = dim, tokens_mlp_dim, channels_mlp_dim, num_blocks
    k = jax.random.split(key, 6)

    def w(kk, shape):
        return (jax.random.normal(kk, shape, jnp.float32) * 0.02).astype(
            jnp.bfloat16)

    blocks = {
        "ln1_g": jnp.ones((L, 1, D), jnp.float32),
        "ln1_b": jnp.zeros((L, 1, D), jnp.float32),
        "tk_w1": w(k[2], (L, T, N)),                 # (out, in)
        "tk_b1": jnp.zeros((L, T, 1), jnp.float32),
        "tk_w2": w(k[3], (L, N, T)),                 # (out, in)
        "tk_b2": jnp.zeros((L, N, 1), jnp.float32),
        "ln2_g": jnp.ones((L, 1, D), jnp.float32),
        "ln2_b": jnp.zeros((L, 1, D), jnp.float32),
        "ch_w1": w(k[4], (L, D, Cm)),                # (in, out)
        "ch_b1": jnp.zeros((L, 1, Cm), jnp.float32),
        "ch_w2": w(k[5], (L, Cm, D)),                # (in, out)
        "ch_b2": jnp.zeros((L, 1, D), jnp.float32),
    }
    return {
        "pe_w": w(k[0], (K, D)),
        "pe_b": jnp.zeros((1, D), jnp.float32),
        "ln_g": jnp.ones((1, D), jnp.float32),
        "ln_b": jnp.zeros((1, D), jnp.float32),
        "cls_w": w(k[1], (D, num_classes)),
        "cls_b": jnp.zeros((1, num_classes), jnp.float32),
        "blocks": blocks,
    }


# ---------------------------------------------------------------------------
# pure-JAX reference (same bf16 matmul / f32 norm policy) for correctness
# ---------------------------------------------------------------------------
def reference_forward(x, params, patch_size):
    B, C, H, W = x.shape
    P = patch_size
    nh, nw = H // P, W // P
    N = nh * nw
    D = params["pe_w"].shape[1]
    patches = (
        x.reshape(B, C, nh, P, nw, P)
        .transpose(0, 2, 4, 1, 3, 5)
        .reshape(B * N, C * P * P)
    )
    tok = jnp.dot(patches.astype(jnp.bfloat16), params["pe_w"],
                  preferred_element_type=jnp.float32) + params["pe_b"]
    tok = tok.reshape(B, N, D)

    bp = params["blocks"]
    L = bp["tk_w1"].shape[0]
    for l in range(L):
        y = _layernorm(tok, bp["ln1_g"][l], bp["ln1_b"][l]).astype(jnp.bfloat16)
        h = _gelu(jnp.einsum("tn,bnd->btd", bp["tk_w1"][l], y,
                             preferred_element_type=jnp.float32)
                  + bp["tk_b1"][l][None])
        t = jnp.einsum("nt,btd->bnd", bp["tk_w2"][l], h.astype(jnp.bfloat16),
                       preferred_element_type=jnp.float32) + bp["tk_b2"][l][None]
        tok = tok + t
        y = _layernorm(tok, bp["ln2_g"][l], bp["ln2_b"][l]).astype(jnp.bfloat16)
        h = _gelu(jnp.dot(y, bp["ch_w1"][l],
                          preferred_element_type=jnp.float32) + bp["ch_b1"][l])
        c = jnp.dot(h.astype(jnp.bfloat16), bp["ch_w2"][l],
                    preferred_element_type=jnp.float32) + bp["ch_b2"][l]
        tok = tok + c

    y = _layernorm(tok, params["ln_g"], params["ln_b"])
    m = jnp.mean(y, axis=1).astype(jnp.bfloat16)
    return (jnp.dot(m, params["cls_w"], preferred_element_type=jnp.float32)
            + params["cls_b"])


if __name__ == "__main__":
    # Small config consistent with MlpMixer's constructor; dims chosen so the
    # channel/lane axis is 128-aligned (D=128, Cm=256).
    batch = 8
    in_channels = 1
    dim = 128
    num_blocks = 4
    patch_size = 4
    tokens_mlp_dim = 64
    channels_mlp_dim = 256
    num_classes = 10
    image_size = 16                  # -> num_patches = (16 // 4) ** 2 = 16

    key = jax.random.PRNGKey(0)
    kp, kx = jax.random.split(key)
    params = init_params(kp, in_channels, dim, num_blocks, patch_size,
                         tokens_mlp_dim, channels_mlp_dim, num_classes,
                         image_size)
    x = jax.random.normal(
        kx, (batch, in_channels, image_size, image_size), jnp.float32)

    fwd = jax.jit(functools.partial(mlp_mixer_forward, patch_size=patch_size))
    out = jax.block_until_ready(fwd(x, params))

    ref_fwd = jax.jit(functools.partial(reference_forward,
                                        patch_size=patch_size))
    ref = jax.block_until_ready(ref_fwd(x, params))

    assert out.shape == (batch, num_classes), out.shape
    assert bool(jnp.all(jnp.isfinite(out)))
    assert bool(jnp.allclose(out, ref, atol=5e-2, rtol=5e-2)), float(
        jnp.max(jnp.abs(out - ref)))
    print("KERNEL_OK")
</pallas_src>

<mosaic_0001>
module attributes {stable_mosaic.version = 11 : i64} {
  func.func @_patch_embed_kernel(%arg0: i32, %arg1: memref<128x16xf32, #tpu.memory_space<vmem>>, %arg2: memref<16x128xbf16, #tpu.memory_space<vmem>>, %arg3: memref<1x128xf32, #tpu.memory_space<vmem>>, %arg4: memref<128x128xf32, #tpu.memory_space<vmem>>) attributes {dimension_semantics = [#tpu.dimension_semantics<parallel>], iteration_bounds = array<i64: 1>, scalar_prefetch = 0 : i64, scratch_operands = 0 : i64, tpu.core_type = #tpu.core_type<tc>, window_params = [{transform_indices = @transform_0, window_bounds = array<i64: 128, 16>}, {pipeline_mode = #tpu.pipeline_mode<synchronous>, transform_indices = @transform_1, window_bounds = array<i64: 16, 128>}, {pipeline_mode = #tpu.pipeline_mode<synchronous>, transform_indices = @transform_2, window_bounds = array<i64: 1, 128>}, {transform_indices = @transform_3, window_bounds = array<i64: 128, 128>}]} {
    %c0 = arith.constant 0 : index
    %c0_0 = arith.constant 0 : index
    %0 = vector.load %arg1[%c0, %c0_0] : memref<128x16xf32, #tpu.memory_space<vmem>>, vector<128x16xf32>
    %1 = arith.truncf %0 : vector<128x16xf32> to vector<128x16xbf16>
    %c0_1 = arith.constant 0 : index
    %c0_2 = arith.constant 0 : index
    %2 = vector.load %arg2[%c0_1, %c0_2] : memref<16x128xbf16, #tpu.memory_space<vmem>>, vector<16x128xbf16>
    %cst = arith.constant dense<0.000000e+00> : vector<128x128xf32>
    %3 = tpu.matmul %1, %2, %cst {dimension_numbers = #tpu.dot_dimension_numbers<[1], [0], [0], [1], [0, 0, 1, 1], [], []>} : vector<128x16xbf16>, vector<16x128xbf16>, vector<128x128xf32> -> vector<128x128xf32>
    %c0_3 = arith.constant 0 : index
    %c0_4 = arith.constant 0 : index
    %4 = vector.load %arg3[%c0_3, %c0_4] : memref<1x128xf32, #tpu.memory_space<vmem>>, vector<1x128xf32>
    %5 = vector.broadcast %4 : vector<1x128xf32> to vector<128x128xf32>
    %6 = arith.addf %3, %5 : vector<128x128xf32>
    %c0_5 = arith.constant 0 : index
    %c0_6 = arith.constant 0 : index
    %7 = vector.load %arg4[%c0_5, %c0_6] : memref<128x128xf32, #tpu.memory_space<vmem>>, vector<128x128xf32>
    tpu.vector_store %arg4[%c0_5, %c0_6], %6 {strides = array<i32>} : memref<128x128xf32, #tpu.memory_space<vmem>>, vector<128x128xf32>,
    return
  }
  func.func @transform_0(%arg0: i32) -> (i32, i32) {
    %c0_i32 = arith.constant 0 : i32
    %c0_i32_0 = arith.constant 0 : i32
    return %arg0, %c0_i32 : i32, i32
  }
  func.func @transform_1(%arg0: i32) -> (i32, i32) {
    %c0_i32 = arith.constant 0 : i32
    %c0_i32_0 = arith.constant 0 : i32
    %c0_i32_1 = arith.constant 0 : i32
    return %c0_i32, %c0_i32_0 : i32, i32
  }
  func.func @transform_2(%arg0: i32) -> (i32, i32) {
    %c0_i32 = arith.constant 0 : i32
    %c0_i32_0 = arith.constant 0 : i32
    %c0_i32_1 = arith.constant 0 : i32
    return %c0_i32, %c0_i32_0 : i32, i32
  }
  func.func @transform_3(%arg0: i32) -> (i32, i32) {
    %c0_i32 = arith.constant 0 : i32
    %c0_i32_0 = arith.constant 0 : i32
    return %arg0, %c0_i32 : i32, i32
  }
}

module attributes {stable_mosaic.version = 11 : i64} {
  func.func @_mixer_stack_kernel(%arg0: i32, %arg1: i32, %arg2: memref<8x16x128xf32, #tpu.memory_space<vmem>>, %arg3: memref<1x1x128xf32, #tpu.memory_space<vmem>>, %arg4: memref<1x1x128xf32, #tpu.memory_space<vmem>>, %arg5: memref<1x64x16xbf16, #tpu.memory_space<vmem>>, %arg6: memref<1x64x1xf32, #tpu.memory_space<vmem>>, %arg7: memref<1x16x64xbf16, #tpu.memory_space<vmem>>, %arg8: memref<1x16x1xf32, #tpu.memory_space<vmem>>, %arg9: memref<1x1x128xf32, #tpu.memory_space<vmem>>, %arg10: memref<1x1x128xf32, #tpu.memory_space<vmem>>, %arg11: memref<1x128x256xbf16, #tpu.memory_space<vmem>>, %arg12: memref<1x1x256xf32, #tpu.memory_space<vmem>>, %arg13: memref<1x256x128xbf16, #tpu.memory_space<vmem>>, %arg14: memref<1x1x128xf32, #tpu.memory_space<vmem>>, %arg15: memref<8x16x128xf32, #tpu.memory_space<vmem>>) attributes {dimension_semantics = [#tpu.dimension_semantics<parallel>, #tpu.dimension_semantics<arbitrary>], iteration_bounds = array<i64: 1, 4>, scalar_prefetch = 0 : i64, scratch_operands = 0 : i64, tpu.core_type = #tpu.core_type<tc>, window_params = [{transform_indices = @transform_0, window_bounds = array<i64: 8, 16, 128>}, {transform_indices = @transform_1, window_bounds = array<i64: 1, 1, 128>}, {transform_indices = @transform_2, window_bounds = array<i64: 1, 1, 128>}, {transform_indices = @transform_3, window_bounds = array<i64: 1, 64, 16>}, {transform_indices = @transform_4, window_bounds = array<i64: 1, 64, 1>}, {transform_indices = @transform_5, window_bounds = array<i64: 1, 16, 64>}, {transform_indices = @transform_6, window_bounds = array<i64: 1, 16, 1>}, {transform_indices = @transform_7, window_bounds = array<i64: 1, 1, 128>}, {transform_indices = @transform_8, window_bounds = array<i64: 1, 1, 128>}, {transform_indices = @transform_9, window_bounds = array<i64: 1, 128, 256>}, {transform_indices = @transform_10, window_bounds = array<i64: 1, 1, 256>}, {transform_indices = @transform_11, window_bounds = array<i64: 1, 256, 128>}, {transform_indices = @transform_12, window_bounds = array<i64: 1, 1, 128>}, {transform_indices = @transform_13, window_bounds = array<i64: 8, 16, 128>}]} {
    %c0_i32 = arith.constant 0 : i32
    %0 = arith.cmpi eq, %arg1, %c0_i32 : i32
    %1 = arith.extui %0 : i1 to i32
    %c0_i32_0 = arith.constant 0 : i32
    %2 = arith.cmpi ne, %1, %c0_i32_0 : i32
    scf.if %2 {
      %c0_151 = arith.constant 0 : index
      %c0_152 = arith.constant 0 : index
      %c0_153 = arith.constant 0 : index
      %425 = vector.load %arg2[%c0_151, %c0_152, %c0_153] : memref<8x16x128xf32, #tpu.memory_space<vmem>>, vector<8x16x128xf32>
      %c0_154 = arith.constant 0 : index
      %c0_155 = arith.constant 0 : index
      %c0_156 = arith.constant 0 : index
      %426 = vector.load %arg15[%c0_154, %c0_155, %c0_156] : memref<8x16x128xf32, #tpu.memory_space<vmem>>, vector<8x16x128xf32>
      tpu.vector_store %arg15[%c0_154, %c0_155, %c0_156], %425 {strides = array<i32>} : memref<8x16x128xf32, #tpu.memory_space<vmem>>, vector<8x16x128xf32>,
    } else {
    }
    %c0 = arith.constant 0 : index
    %c0_1 = arith.constant 0 : index
    %c0_2 = arith.constant 0 : index
    %3 = vector.load %arg15[%c0, %c0_1, %c0_2] : memref<8x16x128xf32, #tpu.memory_space<vmem>>, vector<8x16x128xf32>
    %c0_3 = arith.constant 0 : index
    %c0_4 = arith.constant 0 : index
    %c0_5 = arith.constant 0 : index
    %4 = vector.load %arg3[%c0_3, %c0_4, %c0_5] : memref<1x1x128xf32, #tpu.memory_space<vmem>>, vector<1x1x128xf32>
    %5 = vector.shape_cast %4 : vector<1x1x128xf32> to vector<1x128xf32>
    %c0_6 = arith.constant 0 : index
    %c0_7 = arith.constant 0 : index
    %c0_8 = arith.constant 0 : index
    %6 = vector.load %arg4[%c0_6, %c0_7, %c0_8] : memref<1x1x128xf32, #tpu.memory_space<vmem>>, vector<1x1x128xf32>
    %7 = vector.shape_cast %6 : vector<1x1x128xf32> to vector<1x128xf32>
    %c0_9 = arith.constant 0 : index
    %c0_10 = arith.constant 0 : index
    %c0_11 = arith.constant 0 : index
    %8 = vector.load %arg5[%c0_9, %c0_10, %c0_11] : memref<1x64x16xbf16, #tpu.memory_space<vmem>>, vector<1x64x16xbf16>
    %9 = vector.shape_cast %8 : vector<1x64x16xbf16> to vector<64x16xbf16>
    %c0_12 = arith.constant 0 : index
    %c0_13 = arith.constant 0 : index
    %c0_14 = arith.constant 0 : index
    %10 = vector.load %arg6[%c0_12, %c0_13, %c0_14] : memref<1x64x1xf32, #tpu.memory_space<vmem>>, vector<1x64x1xf32>
    %11 = vector.shape_cast %10 : vector<1x64x1xf32> to vector<64x1xf32>
    %c0_15 = arith.constant 0 : index
    %c0_16 = arith.constant 0 : index
    %c0_17 = arith.constant 0 : index
    %12 = vector.load %arg7[%c0_15, %c0_16, %c0_17] : memref<1x16x64xbf16, #tpu.memory_space<vmem>>, vector<1x16x64xbf16>
    %13 = vector.shape_cast %12 : vector<1x16x64xbf16> to vector<16x64xbf16>
    %c0_18 = arith.constant 0 : index
    %c0_19 = arith.constant 0 : index
    %c0_20 = arith.constant 0 : index
    %14 = vector.load %arg8[%c0_18, %c0_19, %c0_20] : memref<1x16x1xf32, #tpu.memory_space<vmem>>, vector<1x16x1xf32>
    %15 = vector.shape_cast %14 : vector<1x16x1xf32> to vector<16x1xf32>
    %16 = vector.extract_strided_slice %3 {offsets = [0, 0, 0], sizes = [1, 16, 128], strides = [1, 1, 1]} : vector<8x16x128xf32> to vector<1x16x128xf32>
    %17 = vector.shape_cast %16 : vector<1x16x128xf32> to vector<16x128xf32>
    %cst = arith.constant dense<0.000000e+00> : vector<16xf32>
    %18 = vector.multi_reduction <add>, %17, %cst [1] : vector<16x128xf32> to vector<16xf32>
    %19 = vector.shape_cast %18 : vector<16xf32> to vector<16x1xf32>
    %cst_21 = arith.constant 1.280000e+02 : f32
    %20 = vector.broadcast %cst_21 : f32 to vector<16x1xf32>
    %21 = arith.divf %19, %20 : vector<16x1xf32>
    %22 = vector.broadcast %21 : vector<16x1xf32> to vector<16x128xf32>
    %23 = arith.subf %17, %22 : vector<16x128xf32>
    %24 = arith.mulf %23, %23 : vector<16x128xf32>
    %cst_22 = arith.constant dense<0.000000e+00> : vector<16xf32>
    %25 = vector.multi_reduction <add>, %24, %cst_22 [1] : vector<16x128xf32> to vector<16xf32>
    %26 = vector.shape_cast %25 : vector<16xf32> to vector<16x1xf32>
    %cst_23 = arith.constant 1.280000e+02 : f32
    %27 = vector.broadcast %cst_23 : f32 to vector<16x1xf32>
    %28 = arith.divf %26, %27 : vector<16x1xf32>
    %29 = vector.broadcast %21 : vector<16x1xf32> to vector<16x128xf32>
    %30 = arith.subf %17, %29 : vector<16x128xf32>
    %cst_24 = arith.constant 9.99999974E-6 : f32
    %31 = vector.broadcast %cst_24 : f32 to vector<16x1xf32>
    %32 = arith.addf %28, %31 : vector<16x1xf32>
    %33 = math.rsqrt %32 : vector<16x1xf32>
    %34 = vector.broadcast %33 : vector<16x1xf32> to vector<16x128xf32>
    %35 = arith.mulf %30, %34 : vector<16x128xf32>
    %36 = vector.broadcast %5 : vector<1x128xf32> to vector<16x128xf32>
    %37 = arith.mulf %35, %36 : vector<16x128xf32>
    %38 = vector.broadcast %7 : vector<1x128xf32> to vector<16x128xf32>
    %39 = arith.addf %37, %38 : vector<16x128xf32>
    %40 = arith.truncf %39 : vector<16x128xf32> to vector<16x128xbf16>
    %cst_25 = arith.constant dense<0.000000e+00> : vector<64x128xf32>
    %41 = tpu.matmul %9, %40, %cst_25 {dimension_numbers = #tpu.dot_dimension_numbers<[1], [0], [0], [1], [0, 0, 1, 1], [], []>} : vector<64x16xbf16>, vector<16x128xbf16>, vector<64x128xf32> -> vector<64x128xf32>
    %42 = vector.broadcast %11 : vector<64x1xf32> to vector<64x128xf32>
    %43 = arith.addf %41, %42 : vector<64x128xf32>
    %cst_26 = arith.constant 5.000000e-01 : f32
    %44 = vector.broadcast %cst_26 : f32 to vector<64x128xf32>
    %45 = arith.mulf %44, %43 : vector<64x128xf32>
    %cst_27 = arith.constant 0.707106769 : f32
    %46 = vector.broadcast %cst_27 : f32 to vector<64x128xf32>
    %47 = arith.mulf %43, %46 : vector<64x128xf32>
    %48 = math.erf %47 : vector<64x128xf32>
    %cst_28 = arith.constant 1.000000e+00 : f32
    %49 = vector.broadcast %cst_28 : f32 to vector<64x128xf32>
    %50 = arith.addf %49, %48 : vector<64x128xf32>
    %51 = arith.mulf %45, %50 : vector<64x128xf32>
    %52 = arith.truncf %51 : vector<64x128xf32> to vector<64x128xbf16>
    %cst_29 = arith.constant dense<0.000000e+00> : vector<16x128xf32>
    %53 = tpu.matmul %13, %52, %cst_29 {dimension_numbers = #tpu.dot_dimension_numbers<[1], [0], [0], [1], [0, 0, 1, 1], [], []>} : vector<16x64xbf16>, vector<64x128xbf16>, vector<16x128xf32> -> vector<16x128xf32>
    %54 = vector.broadcast %15 : vector<16x1xf32> to vector<16x128xf32>
    %55 = arith.addf %53, %54 : vector<16x128xf32>
    %56 = arith.addf %17, %55 : vector<16x128xf32>
    %c0_30 = arith.constant 0 : index
    %c0_31 = arith.constant 0 : index
    %c0_32 = arith.constant 0 : index
    %57 = vector.load %arg15[%c0_30, %c0_31, %c0_32] : memref<8x16x128xf32, #tpu.memory_space<vmem>>, vector<1x16x128xf32>
    %58 = vector.shape_cast %57 : vector<1x16x128xf32> to vector<16x128xf32>
    %59 = vector.shape_cast %56 : vector<16x128xf32> to vector<1x16x128xf32>
    tpu.vector_store %arg15[%c0_30, %c0_31, %c0_32], %59 {strides = array<i32>} : memref<8x16x128xf32, #tpu.memory_space<vmem>>, vector<1x16x128xf32>,
    %60 = vector.extract_strided_slice %3 {offsets = [1, 0, 0], sizes = [1, 16, 128], strides = [1, 1, 1]} : vector<8x16x128xf32> to vector<1x16x128xf32>
    %61 = vector.shape_cast %60 : vector<1x16x128xf32> to vector<16x128xf32>
    %cst_33 = arith.constant dense<0.000000e+00> : vector<16xf32>
    %62 = vector.multi_reduction <add>, %61, %cst_33 [1] : vector<16x128xf32> to vector<16xf32>
    %63 = vector.shape_cast %62 : vector<16xf32> to vector<16x1xf32>
    %cst_34 = arith.constant 1.280000e+02 : f32
    %64 = vector.broadcast %cst_34 : f32 to vector<16x1xf32>
    %65 = arith.divf %63, %64 : vector<16x1xf32>
    %66 = vector.broadcast %65 : vector<16x1xf32> to vector<16x128xf32>
    %67 = arith.subf %61, %66 : vector<16x128xf32>
    %68 = arith.mulf %67, %67 : vector<16x128xf32>
    %cst_35 = arith.constant dense<0.000000e+00> : vector<16xf32>
    %69 = vector.multi_reduction <add>, %68, %cst_35 [1] : vector<16x128xf32> to vector<16xf32>
    %70 = vector.shape_cast %69 : vector<16xf32> to vector<16x1xf32>
    %cst_36 = arith.constant 1.280000e+02 : f32
    %71 = vector.broadcast %cst_36 : f32 to vector<16x1xf32>
    %72 = arith.divf %70, %71 : vector<16x1xf32>
    %73 = vector.broadcast %65 : vector<16x1xf32> to vector<16x128xf32>
    %74 = arith.subf %61, %73 : vector<16x128xf32>
    %cst_37 = arith.constant 9.99999974E-6 : f32
    %75 = vector.broadcast %cst_37 : f32 to vector<16x1xf32>
    %76 = arith.addf %72, %75 : vector<16x1xf32>
    %77 = math.rsqrt %76 : vector<16x1xf32>
    %78 = vector.broadcast %77 : vector<16x1xf32> to vector<16x128xf32>
    %79 = arith.mulf %74, %78 : vector<16x128xf32>
    %80 = vector.broadcast %5 : vector<1x128xf32> to vector<16x128xf32>
    %81 = arith.mulf %79, %80 : vector<16x128xf32>
    %82 = vector.broadcast %7 : vector<1x128xf32> to vector<16x128xf32>
    %83 = arith.addf %81, %82 : vector<16x128xf32>
    %84 = arith.truncf %83 : vector<16x128xf32> to vector<16x128xbf16>
    %cst_38 = arith.constant dense<0.000000e+00> : vector<64x128xf32>
    %85 = tpu.matmul %9, %84, %cst_38 {dimension_numbers = #tpu.dot_dimension_numbers<[1], [0], [0], [1], [0, 0, 1, 1], [], []>} : vector<64x16xbf16>, vector<16x128xbf16>, vector<64x128xf32> -> vector<64x128xf32>
    %86 = vector.broadcast %11 : vector<64x1xf32> to vector<64x128xf32>
    %87 = arith.addf %85, %86 : vector<64x128xf32>
    %cst_39 = arith.constant 5.000000e-01 : f32
    %88 = vector.broadcast %cst_39 : f32 to vector<64x128xf32>
    %89 = arith.mulf %88, %87 : vector<64x128xf32>
    %cst_40 = arith.constant 0.707106769 : f32
    %90 = vector.broadcast %cst_40 : f32 to vector<64x128xf32>
    %91 = arith.mulf %87, %90 : vector<64x128xf32>
    %92 = math.erf %91 : vector<64x128xf32>
    %cst_41 = arith.constant 1.000000e+00 : f32
    %93 = vector.broadcast %cst_41 : f32 to vector<64x128xf32>
    %94 = arith.addf %93, %92 : vector<64x128xf32>
    %95 = arith.mulf %89, %94 : vector<64x128xf32>
    %96 = arith.truncf %95 : vector<64x128xf32> to vector<64x128xbf16>
    %cst_42 = arith.constant dense<0.000000e+00> : vector<16x128xf32>
    %97 = tpu.matmul %13, %96, %cst_42 {dimension_numbers = #tpu.dot_dimension_numbers<[1], [0], [0], [1], [0, 0, 1, 1], [], []>} : vector<16x64xbf16>, vector<64x128xbf16>, vector<16x128xf32> -> vector<16x128xf32>
    %98 = vector.broadcast %15 : vector<16x1xf32> to vector<16x128xf32>
    %99 = arith.addf %97, %98 : vector<16x128xf32>
    %100 = arith.addf %61, %99 : vector<16x128xf32>
    %c1 = arith.constant 1 : index
    %c0_43 = arith.constant 0 : index
    %c0_44 = arith.constant 0 : index
    %101 = vector.load %arg15[%c1, %c0_43, %c0_44] : memref<8x16x128xf32, #tpu.memory_space<vmem>>, vector<1x16x128xf32>
    %102 = vector.shape_cast %101 : vector<1x16x128xf32> to vector<16x128xf32>
    %103 = vector.shape_cast %100 : vector<16x128xf32> to vector<1x16x128xf32>
    tpu.vector_store %arg15[%c1, %c0_43, %c0_44], %103 {strides = array<i32>} : memref<8x16x128xf32, #tpu.memory_space<vmem>>, vector<1x16x128xf32>,
    %104 = vector.extract_strided_slice %3 {offsets = [2, 0, 0], sizes = [1, 16, 128], strides = [1, 1, 1]} : vector<8x16x128xf32> to vector<1x16x128xf32>
    %105 = vector.shape_cast %104 : vector<1x16x128xf32> to vector<16x128xf32>
    %cst_45 = arith.constant dense<0.000000e+00> : vector<16xf32>
    %106 = vector.multi_reduction <add>, %105, %cst_45 [1] : vector<16x128xf32> to vector<16xf32>
    %107 = vector.shape_cast %106 : vector<16xf32> to vector<16x1xf32>
    %cst_46 = arith.constant 1.280000e+02 : f32
    %108 = vector.broadcast %cst_46 : f32 to vector<16x1xf32>
    %109 = arith.divf %107, %108 : vector<16x1xf32>
    %110 = vector.broadcast %109 : vector<16x1xf32> to vector<16x128xf32>
    %111 = arith.subf %105, %110 : vector<16x128xf32>
    %112 = arith.mulf %111, %111 : vector<16x128xf32>
    %cst_47 = arith.constant dense<0.000000e+00> : vector<16xf32>
    %113 = vector.multi_reduction <add>, %112, %cst_47 [1] : vector<16x128xf32> to vector<16xf32>
    %114 = vector.shape_cast %113 : vector<16xf32> to vector<16x1xf32>
    %cst_48 = arith.constant 1.280000e+02 : f32
    %115 = vector.broadcast %cst_48 : f32 to vector<16x1xf32>
    %116 = arith.divf %114, %115 : vector<16x1xf32>
    %117 = vector.broadcast %109 : vector<16x1xf32> to vector<16x128xf32>
    %118 = arith.subf %105, %117 : vector<16x128xf32>
    %cst_49 = arith.constant 9.99999974E-6 : f32
    %119 = vector.broadcast %cst_49 : f32 to vector<16x1xf32>
    %120 = arith.addf %116, %119 : vector<16x1xf32>
    %121 = math.rsqrt %120 : vector<16x1xf32>
    %122 = vector.broadcast %121 : vector<16x1xf32> to vector<16x128xf32>
    %123 = arith.mulf %118, %122 : vector<16x128xf32>
    %124 = vector.broadcast %5 : vector<1x128xf32> to vector<16x128xf32>
    %125 = arith.mulf %123, %124 : vector<16x128xf32>
    %126 = vector.broadcast %7 : vector<1x128xf32> to vector<16x128xf32>
    %127 = arith.addf %125, %126 : vector<16x128xf32>
    %128 = arith.truncf %127 : vector<16x128xf32> to vector<16x128xbf16>
    %cst_50 = arith.constant dense<0.000000e+00> : vector<64x128xf32>
    %129 = tpu.matmul %9, %128, %cst_50 {dimension_numbers = #tpu.dot_dimension_numbers<[1], [0], [0], [1], [0, 0, 1, 1], [], []>} : vector<64x16xbf16>, vector<16x128xbf16>, vector<64x128xf32> -> vector<64x128xf32>
    %130 = vector.broadcast %11 : vector<64x1xf32> to vector<64x128xf32>
    %131 = arith.addf %129, %130 : vector<64x128xf32>
    %cst_51 = arith.constant 5.000000e-01 : f32
    %132 = vector.broadcast %cst_51 : f32 to vector<64x128xf32>
    %133 = arith.mulf %132, %131 : vector<64x128xf32>
    %cst_52 = arith.constant 0.707106769 : f32
    %134 = vector.broadcast %cst_52 : f32 to vector<64x128xf32>
    %135 = arith.mulf %131, %134 : vector<64x128xf32>
    %136 = math.erf %135 : vector<64x128xf32>
    %cst_53 = arith.constant 1.000000e+00 : f32
    %137 = vector.broadcast %cst_53 : f32 to vector<64x128xf32>
    %138 = arith.addf %137, %136 : vector<64x128xf32>
    %139 = arith.mulf %133, %138 : vector<64x128xf32>
    %140 = arith.truncf %139 : vector<64x128xf32> to vector<64x128xbf16>
    %cst_54 = arith.constant dense<0.000000e+00> : vector<16x128xf32>
    %141 = tpu.matmul %13, %140, %cst_54 {dimension_numbers = #tpu.dot_dimension_numbers<[1], [0], [0], [1], [0, 0, 1, 1], [], []>} : vector<16x64xbf16>, vector<64x128xbf16>, vector<16x128xf32> -> vector<16x128xf32>
    %142 = vector.broadcast %15 : vector<16x1xf32> to vector<16x128xf32>
    %143 = arith.addf %141, %142 : vector<16x128xf32>
    %144 = arith.addf %105, %143 : vector<16x128xf32>
    %c2 = arith.constant 2 : index
    %c0_55 = arith.constant 0 : index
    %c0_56 = arith.constant 0 : index
    %145 = vector.load %arg15[%c2, %c0_55, %c0_56] : memref<8x16x128xf32, #tpu.memory_space<vmem>>, vector<1x16x128xf32>
    %146 = vector.shape_cast %145 : vector<1x16x128xf32> to vector<16x128xf32>
    %147 = vector.shape_cast %144 : vector<16x128xf32> to vector<1x16x128xf32>
    tpu.vector_store %arg15[%c2, %c0_55, %c0_56], %147 {strides = array<i32>} : memref<8x16x128xf32, #tpu.memory_space<vmem>>, vector<1x16x128xf32>,
    %148 = vector.extract_strided_slice %3 {offsets = [3, 0, 0], sizes = [1, 16, 128], strides = [1, 1, 1]} : vector<8x16x128xf32> to vector<1x16x128xf32>
    %149 = vector.shape_cast %148 : vector<1x16x128xf32> to vector<16x128xf32>
    %cst_57 = arith.constant dense<0.000000e+00> : vector<16xf32>
    %150 = vector.multi_reduction <add>, %149, %cst_57 [1] : vector<16x128xf32> to vector<16xf32>
    %151 = vector.shape_cast %150 : vector<16xf32> to vector<16x1xf32>
    %cst_58 = arith.constant 1.280000e+02 : f32
    %152 = vector.broadcast %cst_58 : f32 to vector<16x1xf32>
    %153 = arith.divf %151, %152 : vector<16x1xf32>
    %154 = vector.broadcast %153 : vector<16x1xf32> to vector<16x128xf32>
    %155 = arith.subf %149, %154 : vector<16x128xf32>
    %156 = arith.mulf %155, %155 : vector<16x128xf32>
    %cst_59 = arith.constant dense<0.000000e+00> : vector<16xf32>
    %157 = vector.multi_reduction <add>, %156, %cst_59 [1] : vector<16x128xf32> to vector<16xf32>
    %158 = vector.shape_cast %157 : vector<16xf32> to vector<16x1xf32>
    %cst_60 = arith.constant 1.280000e+02 : f32
    %159 = vector.broadcast %cst_60 : f32 to vector<16x1xf32>
    %160 = arith.divf %158, %159 : vector<16x1xf32>
    %161 = vector.broadcast %153 : vector<16x1xf32> to vector<16x128xf32>
    %162 = arith.subf %149, %161 : vector<16x128xf32>
    %cst_61 = arith.constant 9.99999974E-6 : f32
    %163 = vector.broadcast %cst_61 : f32 to vector<16x1xf32>
    %164 = arith.addf %160, %163 : vector<16x1xf32>
    %165 = math.rsqrt %164 : vector<16x1xf32>
    %166 = vector.broadcast %165 : vector<16x1xf32> to vector<16x128xf32>
    %167 = arith.mulf %162, %166 : vector<16x128xf32>
    %168 = vector.broadcast %5 : vector<1x128xf32> to vector<16x128xf32>
    %169 = arith.mulf %167, %168 : vector<16x128xf32>
    %170 = vector.broadcast %7 : vector<1x128xf32> to vector<16x128xf32>
    %171 = arith.addf %169, %170 : vector<16x128xf32>
    %172 = arith.truncf %171 : vector<16x128xf32> to vector<16x128xbf16>
    %cst_62 = arith.constant dense<0.000000e+00> : vector<64x128xf32>
    %173 = tpu.matmul %9, %172, %cst_62 {dimension_numbers = #tpu.dot_dimension_numbers<[1], [0], [0], [1], [0, 0, 1, 1], [], []>} : vector<64x16xbf16>, vector<16x128xbf16>, vector<64x128xf32> -> vector<64x128xf32>
    %174 = vector.broadcast %11 : vector<64x1xf32> to vector<64x128xf32>
    %175 = arith.addf %173, %174 : vector<64x128xf32>
    %cst_63 = arith.constant 5.000000e-01 : f32
    %176 = vector.broadcast %cst_63 : f32 to vector<64x128xf32>
    %177 = arith.mulf %176, %175 : vector<64x128xf32>
    %cst_64 = arith.constant 0.707106769 : f32
    %178 = vector.broadcast %cst_64 : f32 to vector<64x128xf32>
    %179 = arith.mulf %175, %178 : vector<64x128xf32>
    %180 = math.erf %179 : vector<64x128xf32>
    %cst_65 = arith.constant 1.000000e+00 : f32
    %181 = vector.broadcast %cst_65 : f32 to vector<64x128xf32>
    %182 = arith.addf %181, %180 : vector<64x128xf32>
    %183 = arith.mulf %177, %182 : vector<64x128xf32>
    %184 = arith.truncf %183 : vector<64x128xf32> to vector<64x128xbf16>
    %cst_66 = arith.constant dense<0.000000e+00> : vector<16x128xf32>
    %185 = tpu.matmul %13, %184, %cst_66 {dimension_numbers = #tpu.dot_dimension_numbers<[1], [0], [0], [1], [0, 0, 1, 1], [], []>} : vector<16x64xbf16>, vector<64x128xbf16>, vector<16x128xf32> -> vector<16x128xf32>
    %186 = vector.broadcast %15 : vector<16x1xf32> to vector<16x128xf32>
    %187 = arith.addf %185, %186 : vector<16x128xf32>
    %188 = arith.addf %149, %187 : vector<16x128xf32>
    %c3 = arith.constant 3 : index
    %c0_67 = arith.constant 0 : index
    %c0_68 = arith.constant 0 : index
    %189 = vector.load %arg15[%c3, %c0_67, %c0_68] : memref<8x16x128xf32, #tpu.memory_space<vmem>>, vector<1x16x128xf32>
    %190 = vector.shape_cast %189 : vector<1x16x128xf32> to vector<16x128xf32>
    %191 = vector.shape_cast %188 : vector<16x128xf32> to vector<1x16x128xf32>
    tpu.vector_store %arg15[%c3, %c0_67, %c0_68], %191 {strides = array<i32>} : memref<8x16x128xf32, #tpu.memory_space<vmem>>, vector<1x16x128xf32>,
    %192 = vector.extract_strided_slice %3 {offsets = [4, 0, 0], sizes = [1, 16, 128], strides = [1, 1, 1]} : vector<8x16x128xf32> to vector<1x16x128xf32>
    %193 = vector.shape_cast %192 : vector<1x16x128xf32> to vector<16x128xf32>
    %cst_69 = arith.constant dense<0.000000e+00> : vector<16xf32>
    %194 = vector.multi_reduction <add>, %193, %cst_69 [1] : vector<16x128xf32> to vector<16xf32>
    %195 = vector.shape_cast %194 : vector<16xf32> to vector<16x1xf32>
    %cst_70 = arith.constant 1.280000e+02 : f32
    %196 = vector.broadcast %cst_70 : f32 to vector<16x1xf32>
    %197 = arith.divf %195, %196 : vector<16x1xf32>
    %198 = vector.broadcast %197 : vector<16x1xf32> to vector<16x128xf32>
    %199 = arith.subf %193, %198 : vector<16x128xf32>
    %200 = arith.mulf %199, %199 : vector<16x128xf32>
    %cst_71 = arith.constant dense<0.000000e+00> : vector<16xf32>
    %201 = vector.multi_reduction <add>, %200, %cst_71 [1] : vector<16x128xf32> to vector<16xf32>
    %202 = vector.shape_cast %201 : vector<16xf32> to vector<16x1xf32>
    %cst_72 = arith.constant 1.280000e+02 : f32
    %203 = vector.broadcast %cst_72 : f32 to vector<16x1xf32>
    %204 = arith.divf %202, %203 : vector<16x1xf32>
    %205 = vector.broadcast %197 : vector<16x1xf32> to vector<16x128xf32>
    %206 = arith.subf %193, %205 : vector<16x128xf32>
    %cst_73 = arith.constant 9.99999974E-6 : f32
    %207 = vector.broadcast %cst_73 : f32 to vector<16x1xf32>
    %208 = arith.addf %204, %207 : vector<16x1xf32>
    %209 = math.rsqrt %208 : vector<16x1xf32>
    %210 = vector.broadcast %209 : vector<16x1xf32> to vector<16x128xf32>
    %211 = arith.mulf %206, %210 : vector<16x128xf32>
    %212 = vector.broadcast %5 : vector<1x128xf32> to vector<16x128xf32>
    %213 = arith.mulf %211, %212 : vector<16x128xf32>
    %214 = vector.broadcast %7 : vector<1x128xf32> to vector<16x128xf32>
    %215 = arith.addf %213, %214 : vector<16x128xf32>
    %216 = arith.truncf %215 : vector<16x128xf32> to vector<16x128xbf16>
    %cst_74 = arith.constant dense<0.000000e+00> : vector<64x128xf32>
    %217 = tpu.matmul %9, %216, %cst_74 {dimension_numbers = #tpu.dot_dimension_numbers<[1], [0], [0], [1], [0, 0, 1, 1], [], []>} : vector<64x16xbf16>, vector<16x128xbf16>, vector<64x128xf32> -> vector<64x128xf32>
    %218 = vector.broadcast %11 : vector<64x1xf32> to vector<64x128xf32>
    %219 = arith.addf %217, %218 : vector<64x128xf32>
    %cst_75 = arith.constant 5.000000e-01 : f32
    %220 = vector.broadcast %cst_75 : f32 to vector<64x128xf32>
    %221 = arith.mulf %220, %219 : vector<64x128xf32>
    %cst_76 = arith.constant 0.707106769 : f32
    %222 = vector.broadcast %cst_76 : f32 to vector<64x128xf32>
    %223 = arith.mulf %219, %222 : vector<64x128xf32>
    %224 = math.erf %223 : vector<64x128xf32>
    %cst_77 = arith.constant 1.000000e+00 : f32
    %225 = vector.broadcast %cst_77 : f32 to vector<64x128xf32>
    %226 = arith.addf %225, %224 : vector<64x128xf32>
    %227 = arith.mulf %221, %226 : vector<64x128xf32>
    %228 = arith.truncf %227 : vector<64x128xf32> to vector<64x128xbf16>
    %cst_78 = arith.constant dense<0.000000e+00> : vector<16x128xf32>
    %229 = tpu.matmul %13, %228, %cst_78 {dimension_numbers = #tpu.dot_dimension_numbers<[1], [0], [0], [1], [0, 0, 1, 1], [], []>} : vector<16x64xbf16>, vector<64x128xbf16>, vector<16x128xf32> -> vector<16x128xf32>
    %230 = vector.broadcast %15 : vector<16x1xf32> to vector<16x128xf32>
    %231 = arith.addf %229, %230 : vector<16x128xf32>
    %232 = arith.addf %193, %231 : vector<16x128xf32>
    %c4 = arith.constant 4 : index
    %c0_79 = arith.constant 0 : index
    %c0_80 = arith.constant 0 : index
    %233 = vector.load %arg15[%c4, %c0_79, %c0_80] : memref<8x16x128xf32, #tpu.memory_space<vmem>>, vector<1x16x128xf32>
    %234 = vector.shape_cast %233 : vector<1x16x128xf32> to vector<16x128xf32>
    %235 = vector.shape_cast %232 : vector<16x128xf32> to vector<1x16x128xf32>
    tpu.vector_store %arg15[%c4, %c0_79, %c0_80], %235 {strides = array<i32>} : memref<8x16x128xf32, #tpu.memory_space<vmem>>, vector<1x16x128xf32>,
    %236 = vector.extract_strided_slice %3 {offsets = [5, 0, 0], sizes = [1, 16, 128], strides = [1, 1, 1]} : vector<8x16x128xf32> to vector<1x16x128xf32>
    %237 = vector.shape_cast %236 : vector<1x16x128xf32> to vector<16x128xf32>
    %cst_81 = arith.constant dense<0.000000e+00> : vector<16xf32>
    %238 = vector.multi_reduction <add>, %237, %cst_81 [1] : vector<16x128xf32> to vector<16xf32>
    %239 = vector.shape_cast %238 : vector<16xf32> to vector<16x1xf32>
    %cst_82 = arith.constant 1.280000e+02 : f32
    %240 = vector.broadcast %cst_82 : f32 to vector<16x1xf32>
    %241 = arith.divf %239, %240 : vector<16x1xf32>
    %242 = vector.broadcast %241 : vector<16x1xf32> to vector<16x128xf32>
    %243 = arith.subf %237, %242 : vector<16x128xf32>
    %244 = arith.mulf %243, %243 : vector<16x128xf32>
    %cst_83 = arith.constant dense<0.000000e+00> : vector<16xf32>
    %245 = vector.multi_reduction <add>, %244, %cst_83 [1] : vector<16x128xf32> to vector<16xf32>
    %246 = vector.shape_cast %245 : vector<16xf32> to vector<16x1xf32>
    %cst_84 = arith.constant 1.280000e+02 : f32
    %247 = vector.broadcast %cst_84 : f32 to vector<16x1xf32>
    %248 = arith.divf %246, %247 : vector<16x1xf32>
    %249 = vector.broadcast %241 : vector<16x1xf32> to vector<16x128xf32>
    %250 = arith.subf %237, %249 : vector<16x128xf32>
    %cst_85 = arith.constant 9.99999974E-6 : f32
    %251 = vector.broadcast %cst_85 : f32 to vector<16x1xf32>
    %252 = arith.addf %248, %251 : vector<16x1xf32>
    %253 = math.rsqrt %252 : vector<16x1xf32>
    %254 = vector.broadcast %253 : vector<16x1xf32> to vector<16x128xf32>
    %255 = arith.mulf %250, %254 : vector<16x128xf32>
    %256 = vector.broadcast %5 : vector<1x128xf32> to vector<16x128xf32>
    %257 = arith.mulf %255, %256 : vector<16x128xf32>
    %258 = vector.broadcast %7 : vector<1x128xf32> to vector<16x128xf32>
    %259 = arith.addf %257, %258 : vector<16x128xf32>
    %260 = arith.truncf %259 : vector<16x128xf32> to vector<16x128xbf16>
    %cst_86 = arith.constant dense<0.000000e+00> : vector<64x128xf32>
    %261 = tpu.matmul %9, %260, %cst_86 {dimension_numbers = #tpu.dot_dimension_numbers<[1], [0], [0], [1], [0, 0, 1, 1], [], []>} : vector<64x16xbf16>, vector<16x128xbf16>, vector<64x128xf32> -> vector<64x128xf32>
    %262 = vector.broadcast %11 : vector<64x1xf32> to vector<64x128xf32>
    %263 = arith.addf %261, %262 : vector<64x128xf32>
    %cst_87 = arith.constant 5.000000e-01 : f32
    %264 = vector.broadcast %cst_87 : f32 to vector<64x128xf32>
    %265 = arith.mulf %264, %263 : vector<64x128xf32>
    %cst_88 = arith.constant 0.707106769 : f32
    %266 = vector.broadcast %cst_88 : f32 to vector<64x128xf32>
    %267 = arith.mulf %263, %266 : vector<64x128xf32>
    %268 = math.erf %267 : vector<64x128xf32>
    %cst_89 = arith.constant 1.000000e+00 : f32
    %269 = vector.broadcast %cst_89 : f32 to vector<64x128xf32>
    %270 = arith.addf %269, %268 : vector<64x128xf32>
    %271 = arith.mulf %265, %270 : vector<64x128xf32>
    %272 = arith.truncf %271 : vector<64x128xf32> to vector<64x128xbf16>
    %cst_90 = arith.constant dense<0.000000e+00> : vector<16x128xf32>
    %273 = tpu.matmul %13, %272, %cst_90 {dimension_numbers = #tpu.dot_dimension_numbers<[1], [0], [0], [1], [0, 0, 1, 1], [], []>} : vector<16x64xbf16>, vector<64x128xbf16>, vector<16x128xf32> -> vector<16x128xf32>
    %274 = vector.broadcast %15 : vector<16x1xf32> to vector<16x128xf32>
    %275 = arith.addf %273, %274 : vector<16x128xf32>
    %276 = arith.addf %237, %275 : vector<16x128xf32>
    %c5 = arith.constant 5 : index
    %c0_91 = arith.constant 0 : index
    %c0_92 = arith.constant 0 : index
    %277 = vector.load %arg15[%c5, %c0_91, %c0_92] : memref<8x16x128xf32, #tpu.memory_space<vmem>>, vector<1x16x128xf32>
    %278 = vector.shape_cast %277 : vector<1x16x128xf32> to vector<16x128xf32>
    %279 = vector.shape_cast %276 : vector<16x128xf32> to vector<1x16x128xf32>
    tpu.vector_store %arg15[%c5, %c0_91, %c0_92], %279 {strides = array<i32>} : memref<8x16x128xf32, #tpu.memory_space<vmem>>, vector<1x16x128xf32>,
    %280 = vector.extract_strided_slice %3 {offsets = [6, 0, 0], sizes = [1, 16, 128], strides = [1, 1, 1]} : vector<8x16x128xf32> to vector<1x16x128xf32>
    %281 = vector.shape_cast %280 : vector<1x16x128xf32> to vector<16x128xf32>
    %cst_93 = arith.constant dense<0.000000e+00> : vector<16xf32>
    %282 = vector.multi_reduction <add>, %281, %cst_93 [1] : vector<16x128xf32> to vector<16xf32>
    %283 = vector.shape_cast %282 : vector<16xf32> to vector<16x1xf32>
    %cst_94 = arith.constant 1.280000e+02 : f32
    %284 = vector.broadcast %cst_94 : f32 to vector<16x1xf32>
    %285 = arith.divf %283, %284 : vector<16x1xf32>
    %286 = vector.broadcast %285 : vector<16x1xf32> to vector<16x128xf32>
    %287 = arith.subf %281, %286 : vector<16x128xf32>
    %288 = arith.mulf %287, %287 : vector<16x128xf32>
    %cst_95 = arith.constant dense<0.000000e+00> : vector<16xf32>
    %289 = vector.multi_reduction <add>, %288, %cst_95 [1] : vector<16x128xf32> to vector<16xf32>
    %290 = vector.shape_cast %289 : vector<16xf32> to vector<16x1xf32>
    %cst_96 = arith.constant 1.280000e+02 : f32
    %291 = vector.broadcast %cst_96 : f32 to vector<16x1xf32>
    %292 = arith.divf %290, %291 : vector<16x1xf32>
    %293 = vector.broadcast %285 : vector<16x1xf32> to vector<16x128xf32>
    %294 = arith.subf %281, %293 : vector<16x128xf32>
    %cst_97 = arith.constant 9.99999974E-6 : f32
    %295 = vector.broadcast %cst_97 : f32 to vector<16x1xf32>
    %296 = arith.addf %292, %295 : vector<16x1xf32>
    %297 = math.rsqrt %296 : vector<16x1xf32>
    %298 = vector.broadcast %297 : vector<16x1xf32> to vector<16x128xf32>
    %299 = arith.mulf %294, %298 : vector<16x128xf32>
    %300 = vector.broadcast %5 : vector<1x128xf32> to vector<16x128xf32>
    %301 = arith.mulf %299, %300 : vector<16x128xf32>
    %302 = vector.broadcast %7 : vector<1x128xf32> to vector<16x128xf32>
    %303 = arith.addf %301, %302 : vector<16x128xf32>
    %304 = arith.truncf %303 : vector<16x128xf32> to vector<16x128xbf16>
    %cst_98 = arith.constant dense<0.000000e+00> : vector<64x128xf32>
    %305 = tpu.matmul %9, %304, %cst_98 {dimension_numbers = #tpu.dot_dimension_numbers<[1], [0], [0], [1], [0, 0, 1, 1], [], []>} : vector<64x16xbf16>, vector<16x128xbf16>, vector<64x128xf32> -> vector<64x128xf32>
    %306 = vector.broadcast %11 : vector<64x1xf32> to vector<64x128xf32>
    %307 = arith.addf %305, %306 : vector<64x128xf32>
    %cst_99 = arith.constant 5.000000e-01 : f32
    %308 = vector.broadcast %cst_99 : f32 to vector<64x128xf32>
    %309 = arith.mulf %308, %307 : vector<64x128xf32>
    %cst_100 = arith.constant 0.707106769 : f32
    %310 = vector.broadcast %cst_100 : f32 to vector<64x128xf32>
    %311 = arith.mulf %307, %310 : vector<64x128xf32>
    %312 = math.erf %311 : vector<64x128xf32>
    %cst_101 = arith.constant 1.000000e+00 : f32
    %313 = vector.broadcast %cst_101 : f32 to vector<64x128xf32>
    %314 = arith.addf %313, %312 : vector<64x128xf32>
    %315 = arith.mulf %309, %314 : vector<64x128xf32>
    %316 = arith.truncf %315 : vector<64x128xf32> to vector<64x128xbf16>
    %cst_102 = arith.constant dense<0.000000e+00> : vector<16x128xf32>
    %317 = tpu.matmul %13, %316, %cst_102 {dimension_numbers = #tpu.dot_dimension_numbers<[1], [0], [0], [1], [0, 0, 1, 1], [], []>} : vector<16x64xbf16>, vector<64x128xbf16>, vector<16x128xf32> -> vector<16x128xf32>
    %318 = vector.broadcast %15 : vector<16x1xf32> to vector<16x128xf32>
    %319 = arith.addf %317, %318 : vector<16x128xf32>
    %320 = arith.addf %281, %319 : vector<16x128xf32>
    %c6 = arith.constant 6 : index
    %c0_103 = arith.constant 0 : index
    %c0_104 = arith.constant 0 : index
    %321 = vector.load %arg15[%c6, %c0_103, %c0_104] : memref<8x16x128xf32, #tpu.memory_space<vmem>>, vector<1x16x128xf32>
    %322 = vector.shape_cast %321 : vector<1x16x128xf32> to vector<16x128xf32>
    %323 = vector.shape_cast %320 : vector<16x128xf32> to vector<1x16x128xf32>
    tpu.vector_store %arg15[%c6, %c0_103, %c0_104], %323 {strides = array<i32>} : memref<8x16x128xf32, #tpu.memory_space<vmem>>, vector<1x16x128xf32>,
    %324 = vector.extract_strided_slice %3 {offsets = [7, 0, 0], sizes = [1, 16, 128], strides = [1, 1, 1]} : vector<8x16x128xf32> to vector<1x16x128xf32>
    %325 = vector.shape_cast %324 : vector<1x16x128xf32> to vector<16x128xf32>
    %cst_105 = arith.constant dense<0.000000e+00> : vector<16xf32>
    %326 = vector.multi_reduction <add>, %325, %cst_105 [1] : vector<16x128xf32> to vector<16xf32>
    %327 = vector.shape_cast %326 : vector<16xf32> to vector<16x1xf32>
    %cst_106 = arith.constant 1.280000e+02 : f32
    %328 = vector.broadcast %cst_106 : f32 to vector<16x1xf32>
    %329 = arith.divf %327, %328 : vector<16x1xf32>
    %330 = vector.broadcast %329 : vector<16x1xf32> to vector<16x128xf32>
    %331 = arith.subf %325, %330 : vector<16x128xf32>
    %332 = arith.mulf %331, %331 : vector<16x128xf32>
    %cst_107 = arith.constant dense<0.000000e+00> : vector<16xf32>
    %333 = vector.multi_reduction <add>, %332, %cst_107 [1] : vector<16x128xf32> to vector<16xf32>
    %334 = vector.shape_cast %333 : vector<16xf32> to vector<16x1xf32>
    %cst_108 = arith.constant 1.280000e+02 : f32
    %335 = vector.broadcast %cst_108 : f32 to vector<16x1xf32>
    %336 = arith.divf %334, %335 : vector<16x1xf32>
    %337 = vector.broadcast %329 : vector<16x1xf32> to vector<16x128xf32>
    %338 = arith.subf %325, %337 : vector<16x128xf32>
    %cst_109 = arith.constant 9.99999974E-6 : f32
    %339 = vector.broadcast %cst_109 : f32 to vector<16x1xf32>
    %340 = arith.addf %336, %339 : vector<16x1xf32>
    %341 = math.rsqrt %340 : vector<16x1xf32>
    %342 = vector.broadcast %341 : vector<16x1xf32> to vector<16x128xf32>
    %343 = arith.mulf %338, %342 : vector<16x128xf32>
    %344 = vector.broadcast %5 : vector<1x128xf32> to vector<16x128xf32>
    %345 = arith.mulf %343, %344 : vector<16x128xf32>
    %346 = vector.broadcast %7 : vector<1x128xf32> to vector<16x128xf32>
    %347 = arith.addf %345, %346 : vector<16x128xf32>
    %348 = arith.truncf %347 : vector<16x128xf32> to vector<16x128xbf16>
    %cst_110 = arith.constant dense<0.000000e+00> : vector<64x128xf32>
    %349 = tpu.matmul %9, %348, %cst_110 {dimension_numbers = #tpu.dot_dimension_numbers<[1], [0], [0], [1], [0, 0, 1, 1], [], []>} : vector<64x16xbf16>, vector<16x128xbf16>, vector<64x128xf32> -> vector<64x128xf32>
    %350 = vector.broadcast %11 : vector<64x1xf32> to vector<64x128xf32>
    %351 = arith.addf %349, %350 : vector<64x128xf32>
    %cst_111 = arith.constant 5.000000e-01 : f32
    %352 = vector.broadcast %cst_111 : f32 to vector<64x128xf32>
    %353 = arith.mulf %352, %351 : vector<64x128xf32>
    %cst_112 = arith.constant 0.707106769 : f32
    %354 = vector.broadcast %cst_112 : f32 to vector<64x128xf32>
    %355 = arith.mulf %351, %354 : vector<64x128xf32>
    %356 = math.erf %355 : vector<64x128xf32>
    %cst_113 = arith.constant 1.000000e+00 : f32
    %357 = vector.broadcast %cst_113 : f32 to vector<64x128xf32>
    %358 = arith.addf %357, %356 : vector<64x128xf32>
    %359 = arith.mulf %353, %358 : vector<64x128xf32>
    %360 = arith.truncf %359 : vector<64x128xf32> to vector<64x128xbf16>
    %cst_114 = arith.constant dense<0.000000e+00> : vector<16x128xf32>
    %361 = tpu.matmul %13, %360, %cst_114 {dimension_numbers = #tpu.dot_dimension_numbers<[1], [0], [0], [1], [0, 0, 1, 1], [], []>} : vector<16x64xbf16>, vector<64x128xbf16>, vector<16x128xf32> -> vector<16x128xf32>
    %362 = vector.broadcast %15 : vector<16x1xf32> to vector<16x128xf32>
    %363 = arith.addf %361, %362 : vector<16x128xf32>
    %364 = arith.addf %325, %363 : vector<16x128xf32>
    %c7 = arith.constant 7 : index
    %c0_115 = arith.constant 0 : index
    %c0_116 = arith.constant 0 : index
    %365 = vector.load %arg15[%c7, %c0_115, %c0_116] : memref<8x16x128xf32, #tpu.memory_space<vmem>>, vector<1x16x128xf32>
    %366 = vector.shape_cast %365 : vector<1x16x128xf32> to vector<16x128xf32>
    %367 = vector.shape_cast %364 : vector<16x128xf32> to vector<1x16x128xf32>
    tpu.vector_store %arg15[%c7, %c0_115, %c0_116], %367 {strides = array<i32>} : memref<8x16x128xf32, #tpu.memory_space<vmem>>, vector<1x16x128xf32>,
    %c0_117 = arith.constant 0 : index
    %c0_118 = arith.constant 0 : index
    %c0_119 = arith.constant 0 : index
    %368 = vector.load %arg15[%c0_117, %c0_118, %c0_119] : memref<8x16x128xf32, #tpu.memory_space<vmem>>, vector<8x16x128xf32>
    %c0_120 = arith.constant 0 : index
    %c0_121 = arith.constant 0 : index
    %c0_122 = arith.constant 0 : index
    %369 = vector.load %arg9[%c0_120, %c0_121, %c0_122] : memref<1x1x128xf32, #tpu.memory_space<vmem>>, vector<1x1x128xf32>
    %370 = vector.shape_cast %369 : vector<1x1x128xf32> to vector<1x128xf32>
    %c0_123 = arith.constant 0 : index
    %c0_124 = arith.constant 0 : index
    %c0_125 = arith.constant 0 : index
    %371 = vector.load %arg10[%c0_123, %c0_124, %c0_125] : memref<1x1x128xf32, #tpu.memory_space<vmem>>, vector<1x1x128xf32>
    %372 = vector.shape_cast %371 : vector<1x1x128xf32> to vector<1x128xf32>
    %c0_126 = arith.constant 0 : index
    %c0_127 = arith.constant 0 : index
    %c0_128 = arith.constant 0 : index
    %373 = vector.load %arg11[%c0_126, %c0_127, %c0_128] : memref<1x128x256xbf16, #tpu.memory_space<vmem>>, vector<1x128x256xbf16>
    %374 = vector.shape_cast %373 : vector<1x128x256xbf16> to vector<128x256xbf16>
    %c0_129 = arith.constant 0 : index
    %c0_130 = arith.constant 0 : index
    %c0_131 = arith.constant 0 : index
    %375 = vector.load %arg12[%c0_129, %c0_130, %c0_131] : memref<1x1x256xf32, #tpu.memory_space<vmem>>, vector<1x1x256xf32>
    %376 = vector.shape_cast %375 : vector<1x1x256xf32> to vector<1x256xf32>
    %c0_132 = arith.constant 0 : index
    %c0_133 = arith.constant 0 : index
    %c0_134 = arith.constant 0 : index
    %377 = vector.load %arg13[%c0_132, %c0_133, %c0_134] : memref<1x256x128xbf16, #tpu.memory_space<vmem>>, vector<1x256x128xbf16>
    %378 = vector.shape_cast %377 : vector<1x256x128xbf16> to vector<256x128xbf16>
    %c0_135 = arith.constant 0 : index
    %c0_136 = arith.constant 0 : index
    %c0_137 = arith.constant 0 : index
    %379 = vector.load %arg14[%c0_135, %c0_136, %c0_137] : memref<1x1x128xf32, #tpu.memory_space<vmem>>, vector<1x1x128xf32>
    %380 = vector.shape_cast %379 : vector<1x1x128xf32> to vector<1x128xf32>
    %cst_138 = arith.constant dense<0.000000e+00> : vector<8x16xf32>
    %381 = vector.multi_reduction <add>, %368, %cst_138 [2] : vector<8x16x128xf32> to vector<8x16xf32>
    %382 = vector.shape_cast %381 : vector<8x16xf32> to vector<8x16x1xf32>
    %cst_139 = arith.constant 1.280000e+02 : f32
    %383 = vector.broadcast %cst_139 : f32 to vector<8x16x1xf32>
    %384 = arith.divf %382, %383 : vector<8x16x1xf32>
    %385 = vector.broadcast %384 : vector<8x16x1xf32> to vector<8x16x128xf32>
    %386 = arith.subf %368, %385 : vector<8x16x128xf32>
    %387 = arith.mulf %386, %386 : vector<8x16x128xf32>
    %cst_140 = arith.constant dense<0.000000e+00> : vector<8x16xf32>
    %388 = vector.multi_reduction <add>, %387, %cst_140 [2] : vector<8x16x128xf32> to vector<8x16xf32>
    %389 = vector.shape_cast %388 : vector<8x16xf32> to vector<8x16x1xf32>
    %cst_141 = arith.constant 1.280000e+02 : f32
    %390 = vector.broadcast %cst_141 : f32 to vector<8x16x1xf32>
    %391 = arith.divf %389, %390 : vector<8x16x1xf32>
    %392 = vector.broadcast %384 : vector<8x16x1xf32> to vector<8x16x128xf32>
    %393 = arith.subf %368, %392 : vector<8x16x128xf32>
    %cst_142 = arith.constant 9.99999974E-6 : f32
    %394 = vector.broadcast %cst_142 : f32 to vector<8x16x1xf32>
    %395 = arith.addf %391, %394 : vector<8x16x1xf32>
    %396 = math.rsqrt %395 : vector<8x16x1xf32>
    %397 = vector.broadcast %396 : vector<8x16x1xf32> to vector<8x16x128xf32>
    %398 = arith.mulf %393, %397 : vector<8x16x128xf32>
    %399 = vector.shape_cast %370 : vector<1x128xf32> to vector<1x1x128xf32>
    %400 = vector.broadcast %399 : vector<1x1x128xf32> to vector<8x16x128xf32>
    %401 = arith.mulf %398, %400 : vector<8x16x128xf32>
    %402 = vector.shape_cast %372 : vector<1x128xf32> to vector<1x1x128xf32>
    %403 = vector.broadcast %402 : vector<1x1x128xf32> to vector<8x16x128xf32>
    %404 = arith.addf %401, %403 : vector<8x16x128xf32>
    %405 = arith.truncf %404 : vector<8x16x128xf32> to vector<8x16x128xbf16>
    %406 = vector.shape_cast %405 : vector<8x16x128xbf16> to vector<128x128xbf16>
    %cst_143 = arith.constant dense<0.000000e+00> : vector<128x256xf32>
    %407 = tpu.matmul %406, %374, %cst_143 {dimension_numbers = #tpu.dot_dimension_numbers<[1], [0], [0], [1], [0, 0, 1, 1], [], []>} : vector<128x128xbf16>, vector<128x256xbf16>, vector<128x256xf32> -> vector<128x256xf32>
    %408 = vector.broadcast %376 : vector<1x256xf32> to vector<128x256xf32>
    %409 = arith.addf %407, %408 : vector<128x256xf32>
    %cst_144 = arith.constant 5.000000e-01 : f32
    %410 = vector.broadcast %cst_144 : f32 to vector<128x256xf32>
    %411 = arith.mulf %410, %409 : vector<128x256xf32>
    %cst_145 = arith.constant 0.707106769 : f32
    %412 = vector.broadcast %cst_145 : f32 to vector<128x256xf32>
    %413 = arith.mulf %409, %412 : vector<128x256xf32>
    %414 = math.erf %413 : vector<128x256xf32>
    %cst_146 = arith.constant 1.000000e+00 : f32
    %415 = vector.broadcast %cst_146 : f32 to vector<128x256xf32>
    %416 = arith.addf %415, %414 : vector<128x256xf32>
    %417 = arith.mulf %411, %416 : vector<128x256xf32>
    %418 = arith.truncf %417 : vector<128x256xf32> to vector<128x256xbf16>
    %cst_147 = arith.constant dense<0.000000e+00> : vector<128x128xf32>
    %419 = tpu.matmul %418, %378, %cst_147 {dimension_numbers = #tpu.dot_dimension_numbers<[1], [0], [0], [1], [0, 0, 1, 1], [], []>} : vector<128x256xbf16>, vector<256x128xbf16>, vector<128x128xf32> -> vector<128x128xf32>
    %420 = vector.broadcast %380 : vector<1x128xf32> to vector<128x128xf32>
    %421 = arith.addf %419, %420 : vector<128x128xf32>
    %422 = vector.shape_cast %421 : vector<128x128xf32> to vector<8x16x128xf32>
    %423 = arith.addf %368, %422 : vector<8x16x128xf32>
    %c0_148 = arith.constant 0 : index
    %c0_149 = arith.constant 0 : index
    %c0_150 = arith.constant 0 : index
    %424 = vector.load %arg15[%c0_148, %c0_149, %c0_150] : memref<8x16x128xf32, #tpu.memory_space<vmem>>, vector<8x16x128xf32>
    tpu.vector_store %arg15[%c0_148, %c0_149, %c0_150], %423 {strides = array<i32>} : memref<8x16x128xf32, #tpu.memory_space<vmem>>, vector<8x16x128xf32>,
    return
  }
  func.func @transform_0(%arg0: i32, %arg1: i32) -> (i32, i32, i32) {
    %c0_i32 = arith.constant 0 : i32
    %c0_i32_0 = arith.constant 0 : i32
    %c0_i32_1 = arith.constant 0 : i32
    return %arg0, %c0_i32, %c0_i32_0 : i32, i32, i32
  }
  func.func @transform_1(%arg0: i32, %arg1: i32) -> (i32, i32, i32) {
    %c0_i32 = arith.constant 0 : i32
    %c0_i32_0 = arith.constant 0 : i32
    %c0_i32_1 = arith.constant 0 : i32
    return %arg1, %c0_i32, %c0_i32_0 : i32, i32, i32
  }
  func.func @transform_2(%arg0: i32, %arg1: i32) -> (i32, i32, i32) {
    %c0_i32 = arith.constant 0 : i32
    %c0_i32_0 = arith.constant 0 : i32
    %c0_i32_1 = arith.constant 0 : i32
    return %arg1, %c0_i32, %c0_i32_0 : i32, i32, i32
  }
  func.func @transform_3(%arg0: i32, %arg1: i32) -> (i32, i32, i32) {
    %c0_i32 = arith.constant 0 : i32
    %c0_i32_0 = arith.constant 0 : i32
    %c0_i32_1 = arith.constant 0 : i32
    return %arg1, %c0_i32, %c0_i32_0 : i32, i32, i32
  }
  func.func @transform_4(%arg0: i32, %arg1: i32) -> (i32, i32, i32) {
    %c0_i32 = arith.constant 0 : i32
    %c0_i32_0 = arith.constant 0 : i32
    %c0_i32_1 = arith.constant 0 : i32
    return %arg1, %c0_i32, %c0_i32_0 : i32, i32, i32
  }
  func.func @transform_5(%arg0: i32, %arg1: i32) -> (i32, i32, i32) {
    %c0_i32 = arith.constant 0 : i32
    %c0_i32_0 = arith.constant 0 : i32
    %c0_i32_1 = arith.constant 0 : i32
    return %arg1, %c0_i32, %c0_i32_0 : i32, i32, i32
  }
  func.func @transform_6(%arg0: i32, %arg1: i32) -> (i32, i32, i32) {
    %c0_i32 = arith.constant 0 : i32
    %c0_i32_0 = arith.constant 0 : i32
    %c0_i32_1 = arith.constant 0 : i32
    return %arg1, %c0_i32, %c0_i32_0 : i32, i32, i32
  }
  func.func @transform_7(%arg0: i32, %arg1: i32) -> (i32, i32, i32) {
    %c0_i32 = arith.constant 0 : i32
    %c0_i32_0 = arith.constant 0 : i32
    %c0_i32_1 = arith.constant 0 : i32
    return %arg1, %c0_i32, %c0_i32_0 : i32, i32, i32
  }
  func.func @transform_8(%arg0: i32, %arg1: i32) -> (i32, i32, i32) {
    %c0_i32 = arith.constant 0 : i32
    %c0_i32_0 = arith.constant 0 : i32
    %c0_i32_1 = arith.constant 0 : i32
    return %arg1, %c0_i32, %c0_i32_0 : i32, i32, i32
  }
  func.func @transform_9(%arg0: i32, %arg1: i32) -> (i32, i32, i32) {
    %c0_i32 = arith.constant 0 : i32
    %c0_i32_0 = arith.constant 0 : i32
    %c0_i32_1 = arith.constant 0 : i32
    return %arg1, %c0_i32, %c0_i32_0 : i32, i32, i32
  }
  func.func @transform_10(%arg0: i32, %arg1: i32) -> (i32, i32, i32) {
    %c0_i32 = arith.constant 0 : i32
    %c0_i32_0 = arith.constant 0 : i32
    %c0_i32_1 = arith.constant 0 : i32
    return %arg1, %c0_i32, %c0_i32_0 : i32, i32, i32
  }
  func.func @transform_11(%arg0: i32, %arg1: i32) -> (i32, i32, i32) {
    %c0_i32 = arith.constant 0 : i32
    %c0_i32_0 = arith.constant 0 : i32
    %c0_i32_1 = arith.constant 0 : i32
    return %arg1, %c0_i32, %c0_i32_0 : i32, i32, i32
  }
  func.func @transform_12(%arg0: i32, %arg1: i32) -> (i32, i32, i32) {
    %c0_i32 = arith.constant 0 : i32
    %c0_i32_0 = arith.constant 0 : i32
    %c0_i32_1 = arith.constant 0 : i32
    return %arg1, %c0_i32, %c0_i32_0 : i32, i32, i32
  }
  func.func @transform_13(%arg0: i32, %arg1: i32) -> (i32, i32, i32) {
    %c0_i32 = arith.constant 0 : i32
    %c0_i32_0 = arith.constant 0 : i32
    %c0_i32_1 = arith.constant 0 : i32
    return %arg0, %c0_i32, %c0_i32_0 : i32, i32, i32
  }
}

module attributes {stable_mosaic.version = 11 : i64} {
  func.func @_head_kernel(%arg0: i32, %arg1: memref<8x16x128xf32, #tpu.memory_space<vmem>>, %arg2: memref<1x128xf32, #tpu.memory_space<vmem>>, %arg3: memref<1x128xf32, #tpu.memory_space<vmem>>, %arg4: memref<128x10xbf16, #tpu.memory_space<vmem>>, %arg5: memref<1x10xf32, #tpu.memory_space<vmem>>, %arg6: memref<8x10xf32, #tpu.memory_space<vmem>>) attributes {dimension_semantics = [#tpu.dimension_semantics<parallel>], iteration_bounds = array<i64: 1>, scalar_prefetch = 0 : i64, scratch_operands = 0 : i64, tpu.core_type = #tpu.core_type<tc>, window_params = [{transform_indices = @transform_0, window_bounds = array<i64: 8, 16, 128>}, {pipeline_mode = #tpu.pipeline_mode<synchronous>, transform_indices = @transform_1, window_bounds = array<i64: 1, 128>}, {pipeline_mode = #tpu.pipeline_mode<synchronous>, transform_indices = @transform_2, window_bounds = array<i64: 1, 128>}, {pipeline_mode = #tpu.pipeline_mode<synchronous>, transform_indices = @transform_3, window_bounds = array<i64: 128, 10>}, {pipeline_mode = #tpu.pipeline_mode<synchronous>, transform_indices = @transform_4, window_bounds = array<i64: 1, 10>}, {transform_indices = @transform_5, window_bounds = array<i64: 8, 10>}]} {
    %c0 = arith.constant 0 : index
    %c0_0 = arith.constant 0 : index
    %c0_1 = arith.constant 0 : index
    %0 = vector.load %arg1[%c0, %c0_0, %c0_1] : memref<8x16x128xf32, #tpu.memory_space<vmem>>, vector<8x16x128xf32>
    %c0_2 = arith.constant 0 : index
    %c0_3 = arith.constant 0 : index
    %1 = vector.load %arg2[%c0_2, %c0_3] : memref<1x128xf32, #tpu.memory_space<vmem>>, vector<1x128xf32>
    %c0_4 = arith.constant 0 : index
    %c0_5 = arith.constant 0 : index
    %2 = vector.load %arg3[%c0_4, %c0_5] : memref<1x128xf32, #tpu.memory_space<vmem>>, vector<1x128xf32>
    %cst = arith.constant dense<0.000000e+00> : vector<8x16xf32>
    %3 = vector.multi_reduction <add>, %0, %cst [2] : vector<8x16x128xf32> to vector<8x16xf32>
    %4 = vector.shape_cast %3 : vector<8x16xf32> to vector<8x16x1xf32>
    %cst_6 = arith.constant 1.280000e+02 : f32
    %5 = vector.broadcast %cst_6 : f32 to vector<8x16x1xf32>
    %6 = arith.divf %4, %5 : vector<8x16x1xf32>
    %7 = vector.broadcast %6 : vector<8x16x1xf32> to vector<8x16x128xf32>
    %8 = arith.subf %0, %7 : vector<8x16x128xf32>
    %9 = arith.mulf %8, %8 : vector<8x16x128xf32>
    %cst_7 = arith.constant dense<0.000000e+00> : vector<8x16xf32>
    %10 = vector.multi_reduction <add>, %9, %cst_7 [2] : vector<8x16x128xf32> to vector<8x16xf32>
    %11 = vector.shape_cast %10 : vector<8x16xf32> to vector<8x16x1xf32>
    %cst_8 = arith.constant 1.280000e+02 : f32
    %12 = vector.broadcast %cst_8 : f32 to vector<8x16x1xf32>
    %13 = arith.divf %11, %12 : vector<8x16x1xf32>
    %14 = vector.broadcast %6 : vector<8x16x1xf32> to vector<8x16x128xf32>
    %15 = arith.subf %0, %14 : vector<8x16x128xf32>
    %cst_9 = arith.constant 9.99999974E-6 : f32
    %16 = vector.broadcast %cst_9 : f32 to vector<8x16x1xf32>
    %17 = arith.addf %13, %16 : vector<8x16x1xf32>
    %18 = math.rsqrt %17 : vector<8x16x1xf32>
    %19 = vector.broadcast %18 : vector<8x16x1xf32> to vector<8x16x128xf32>
    %20 = arith.mulf %15, %19 : vector<8x16x128xf32>
    %21 = vector.shape_cast %1 : vector<1x128xf32> to vector<1x1x128xf32>
    %22 = vector.broadcast %21 : vector<1x1x128xf32> to vector<8x16x128xf32>
    %23 = arith.mulf %20, %22 : vector<8x16x128xf32>
    %24 = vector.shape_cast %2 : vector<1x128xf32> to vector<1x1x128xf32>
    %25 = vector.broadcast %24 : vector<1x1x128xf32> to vector<8x16x128xf32>
    %26 = arith.addf %23, %25 : vector<8x16x128xf32>
    %cst_10 = arith.constant dense<0.000000e+00> : vector<8x128xf32>
    %27 = vector.multi_reduction <add>, %26, %cst_10 [1] : vector<8x16x128xf32> to vector<8x128xf32>
    %cst_11 = arith.constant 1.600000e+01 : f32
    %28 = vector.broadcast %cst_11 : f32 to vector<8x128xf32>
    %29 = arith.divf %27, %28 : vector<8x128xf32>
    %30 = arith.truncf %29 : vector<8x128xf32> to vector<8x128xbf16>
    %c0_12 = arith.constant 0 : index
    %c0_13 = arith.constant 0 : index
    %31 = vector.load %arg4[%c0_12, %c0_13] : memref<128x10xbf16, #tpu.memory_space<vmem>>, vector<128x10xbf16>
    %cst_14 = arith.constant dense<0.000000e+00> : vector<8x10xf32>
    %32 = tpu.matmul %30, %31, %cst_14 {dimension_numbers = #tpu.dot_dimension_numbers<[1], [0], [0], [1], [0, 0, 1, 1], [], []>} : vector<8x128xbf16>, vector<128x10xbf16>, vector<8x10xf32> -> vector<8x10xf32>
    %c0_15 = arith.constant 0 : index
    %c0_16 = arith.constant 0 : index
    %33 = vector.load %arg5[%c0_15, %c0_16] : memref<1x10xf32, #tpu.memory_space<vmem>>, vector<1x10xf32>
    %34 = vector.broadcast %33 : vector<1x10xf32> to vector<8x10xf32>
    %35 = arith.addf %32, %34 : vector<8x10xf32>
    %c0_17 = arith.constant 0 : index
    %c0_18 = arith.constant 0 : index
    %36 = vector.load %arg6[%c0_17, %c0_18] : memref<8x10xf32, #tpu.memory_space<vmem>>, vector<8x10xf32>
    tpu.vector_store %arg6[%c0_17, %c0_18], %35 {strides = array<i32>} : memref<8x10xf32, #tpu.memory_space<vmem>>, vector<8x10xf32>,
    return
  }
  func.func @transform_0(%arg0: i32) -> (i32, i32, i32) {
    %c0_i32 = arith.constant 0 : i32
    %c0_i32_0 = arith.constant 0 : i32
    %c0_i32_1 = arith.constant 0 : i32
    return %arg0, %c0_i32, %c0_i32_0 : i32, i32, i32
  }
  func.func @transform_1(%arg0: i32) -> (i32, i32) {
    %c0_i32 = arith.constant 0 : i32
    %c0_i32_0 = arith.constant 0 : i32
    %c0_i32_1 = arith.constant 0 : i32
    return %c0_i32, %c0_i32_0 : i32, i32
  }
  func.func @transform_2(%arg0: i32) -> (i32, i32) {
    %c0_i32 = arith.constant 0 : i32
    %c0_i32_0 = arith.constant 0 : i32
    %c0_i32_1 = arith.constant 0 : i32
    return %c0_i32, %c0_i32_0 : i32, i32
  }
  func.func @transform_3(%arg0: i32) -> (i32, i32) {
    %c0_i32 = arith.constant 0 : i32
    %c0_i32_0 = arith.constant 0 : i32
    %c0_i32_1 = arith.constant 0 : i32
    return %c0_i32, %c0_i32_0 : i32, i32
  }
  func.func @transform_4(%arg0: i32) -> (i32, i32) {
    %c0_i32 = arith.constant 0 : i32
    %c0_i32_0 = arith.constant 0 : i32
    %c0_i32_1 = arith.constant 0 : i32
    return %c0_i32, %c0_i32_0 : i32, i32
  }
  func.func @transform_5(%arg0: i32) -> (i32, i32) {
    %c0_i32 = arith.constant 0 : i32
    %c0_i32_0 = arith.constant 0 : i32
    return %arg0, %c0_i32 : i32, i32
  }
}

</mosaic_0001>

<bundles_post_ra>
// kernel: mlp_mixer_forward.3
= control target key start
LH: loop header
LB: loop body
LE: loop exit
PB: predicated region body
PF: predicated region fallthrough
CT: control target
= control target key end

     0   :  { %vm54_vm0 = vcmask 130048   ;;  %s366_s1 = inlined_call_operand.vmem [shape: bf16[16,128], index: 1, kind: input, shape index: {}]   ;;  %s367_s0 = inlined_call_operand.vmem [shape: f32[128,16], index: 0, kind: input, shape index: {}]   ;;  %s368_s2 = inlined_call_operand.vmem [shape: f32[1,128], index: 2, kind: input, shape index: {}]   ;;  %s369_s3 = inlined_call_operand.vmem [shape: f32[128,128], index: 3, kind: output, shape index: {}]  }
   0x1   :  { %v235_v0 = vld [vmem:[%s366_s1] sm:$0xff]   ;;  %v16_v2 = vld [vmem:[%s367_s0 + $0x8] sm:$0xff]  ;;  %v17_v6 = vld [vmem:[%s367_s0 + $0x10] sm:$0xff] }
   0x2   :  { %v15_v1 = vld [vmem:[%s367_s0] sm:$0xff]  ;;  %215 = vmatprep.subr.bf16.mxu0 %v235_v0  ;;  %233 = vmatprep.subr.bf16.mxu1 %v235_v0  ;;  %v24_v5 = vld [vmem:[%s367_s0 + $0x48] sm:$0xff]  ;;  %v18_v7 = vld [vmem:[%s367_s0 + $0x18] sm:$0xff] }
   0x3   :  { %v23_v3 = vld [vmem:[%s367_s0 + $0x40] sm:$0xff]  ;;  %v31_v4 = vpack.c.bf16 %v16_v2, %v15_v1  ;;  %216 = vmatpush3.bf16.msra.mxu0 %v235_v0  ;;  %234 = vmatpush3.bf16.msra.mxu1 %v235_v0  ;;  %v32_v9 = vpack.c.bf16 %v18_v7, %v17_v6  ;;  %v25_v10 = vld [vmem:[%s367_s0 + $0x50] sm:$0xff]  ;;  %v26_v11 = vld [vmem:[%s367_s0 + $0x58] sm:$0xff] }
   0x4   :  { %v35_v8 = vpack.c.bf16 %v24_v5, %v23_v3  ;;  %v19_v12 = vld [vmem:[%s367_s0 + $0x20] sm:$0xff]  ;;  %v36_v13 = vpack.c.bf16 %v26_v11, %v25_v10  ;;  %v20_v14 = vld [vmem:[%s367_s0 + $0x28] sm:$0xff]  ;;  %v21_v19 = vld [vmem:[%s367_s0 + $0x30] sm:$0xff] }
   0x5   :  { %217 = vmatprep.mubr.msk.bf16.mxu0 %vm54_vm0, %v31_v4  ;;  %v27_v15 = vld [vmem:[%s367_s0 + $0x60] sm:$0xff]  ;;  %v28_v16 = vld [vmem:[%s367_s0 + $0x68] sm:$0xff]  ;;  %v33_v17 = vpack.c.bf16 %v20_v14, %v19_v12  ;;  %v22_v20 = vld [vmem:[%s367_s0 + $0x38] sm:$0xff] }
   0x6   :  { %225 = vmatprep.mubr.msk.bf16.mxu1 %vm54_vm0, %v35_v8  ;;  %v37_v18 = vpack.c.bf16 %v28_v16, %v27_v15  ;;  %218 = vmatmul.mubr.msk.bf16.vlgmr.msra.gmra.mrb[0].mxu0 %vm54_vm0, %v32_v9  ;;  %v29_v21 = vld [vmem:[%s367_s0 + $0x70] sm:$0xff]  ;;  %v30_v22 = vld [vmem:[%s367_s0 + $0x78] sm:$0xff]  ;;  %v34_v23 = vpack.c.bf16 %v22_v20, %v21_v19  ;;  %v196_v25 = vld [vmem:[%s368_s2] ss:$0 sm:$0xff] }
   0x7   :  { %226 = vmatmul.mubr.msk.bf16.vlgmr.msra.gmra.mrb[0].mxu1 %vm54_vm0, %v36_v13  ;;  %221 = vmatprep.mubr.msk.bf16.mxu0 %vm54_vm0, %v33_v17  ;;  %v38_v24 = vpack.c.bf16 %v30_v22, %v29_v21 }
   0x8   :  { %229 = vmatprep.mubr.msk.bf16.mxu1 %vm54_vm0, %v37_v18 }
   0xe   :  { %222 = vmatmul.mubr.msk.bf16.gmra.mrb[4].mxu0 %vm54_vm0, %v34_v23 }
   0xf   :  { %230 = vmatmul.mubr.msk.bf16.gmra.mrb[4].mxu1 %vm54_vm0, %v38_v24 }
  0xd9   :  { %v219_v26 = vpop.f32.mrb[0].mxu0 }
  0xda   :  { %v227_v27 = vpop.f32.mrb[0].mxu1  ;;  %v122_v28 = vadd.f32 %v219_v26, %v196_v25  ;;  %v113_v30 = vpop.f32.mrb[1].mxu0 }
  0xdb   :  { %v154_v29 = vadd.f32 %v227_v27, %v196_v25  ;;  %v145_v31 = vpop.f32.mrb[1].mxu1  ;;  %v114_v32 = vadd.f32 %v196_v25, %v113_v30  ;;  %v220_v34 = vpop.f32.mrb[2].mxu0 }
  0xdc   :  { %v146_v33 = vadd.f32 %v196_v25, %v145_v31  ;;  %v228_v35 = vpop.f32.mrb[2].mxu1  ;;  %178 = vst [vmem:[%s369_s3 + $0x10] sm:$0xff] %v122_v28  ;;  %v125_v36 = vadd.f32 %v220_v34, %v196_v25  ;;  %v116_v38 = vpop.f32.mrb[3].mxu0 }
  0xdd   :  { %186 = vst [vmem:[%s369_s3 + $0x50] sm:$0xff] %v154_v29  ;;  %v157_v37 = vadd.f32 %v228_v35, %v196_v25  ;;  %v148_v39 = vpop.f32.mrb[3].mxu1  ;;  %176 = vst [vmem:[%s369_s3] sm:$0xff] %v114_v32  ;;  %v117_v40 = vadd.f32 %v196_v25, %v116_v38 }
  0xde   :  { %184 = vst [vmem:[%s369_s3 + $0x40] sm:$0xff] %v146_v33  ;;  %v149_v41 = vadd.f32 %v196_v25, %v148_v39  ;;  %179 = vst [vmem:[%s369_s3 + $0x18] sm:$0xff] %v125_v36 }
  0xdf   :  { %187 = vst [vmem:[%s369_s3 + $0x58] sm:$0xff] %v157_v37  ;;  %177 = vst [vmem:[%s369_s3 + $0x8] sm:$0xff] %v117_v40 }
  0xe0   :  { %185 = vst [vmem:[%s369_s3 + $0x48] sm:$0xff] %v149_v41 }
  0xe1   :  { %v223_v42 = vpop.f32.mrb[4].mxu0 }
  0xe2   :  { %v231_v43 = vpop.f32.mrb[4].mxu1  ;;  %v138_v44 = vadd.f32 %v223_v42, %v196_v25  ;;  %v129_v46 = vpop.f32.mrb[5].mxu0 }
  0xe3   :  { %v170_v45 = vadd.f32 %v231_v43, %v196_v25  ;;  %v161_v47 = vpop.f32.mrb[5].mxu1  ;;  %v130_v48 = vadd.f32 %v196_v25, %v129_v46  ;;  %v224_v50 = vpop.f32.mrb[6].mxu0 }
  0xe4   :  { %v162_v49 = vadd.f32 %v196_v25, %v161_v47  ;;  %v232_v51 = vpop.f32.mrb[6].mxu1  ;;  %182 = vst [vmem:[%s369_s3 + $0x30] sm:$0xff] %v138_v44  ;;  %v141_v52 = vadd.f32 %v224_v50, %v196_v25  ;;  %v132_v54 = vpop.f32.mrb[7].mxu0 }
  0xe5   :  { %190 = vst [vmem:[%s369_s3 + $0x70] sm:$0xff] %v170_v45  ;;  %v173_v53 = vadd.f32 %v232_v51, %v196_v25  ;;  %v164_v55 = vpop.f32.mrb[7].mxu1  ;;  %180 = vst [vmem:[%s369_s3 + $0x20] sm:$0xff] %v130_v48  ;;  %v133_v56 = vadd.f32 %v196_v25, %v132_v54 }
  0xe6   :  { %188 = vst [vmem:[%s369_s3 + $0x60] sm:$0xff] %v162_v49  ;;  %v165_v57 = vadd.f32 %v196_v25, %v164_v55  ;;  %183 = vst [vmem:[%s369_s3 + $0x38] sm:$0xff] %v141_v52 }
  0xe7   :  { %191 = vst [vmem:[%s369_s3 + $0x78] sm:$0xff] %v173_v53  ;;  %181 = vst [vmem:[%s369_s3 + $0x28] sm:$0xff] %v133_v56 }
  0xe8   :  { %189 = vst [vmem:[%s369_s3 + $0x68] sm:$0xff] %v165_v57 }

// kernel: mlp_mixer_forward.5
= control target key start
LH: loop header
LB: loop body
LE: loop exit
PB: predicated region body
PF: predicated region fallthrough
CT: control target
= control target key end

     0   :  { %s862_s0 = inlined_call_operand.vmem [shape: f32[8,16,128], index: 0, kind: input, shape index: {}]   ;;  %s863_s1 = inlined_call_operand.vmem [shape: f32[1,128], index: 1, kind: input, shape index: {}]   ;;  %s864_s2 = inlined_call_operand.vmem [shape: f32[1,128], index: 2, kind: input, shape index: {}]   ;;  %s865_s3 = inlined_call_operand.vmem [shape: bf16[128,10], index: 3, kind: input, shape index: {}]   ;;  %s866_s4 = inlined_call_operand.vmem [shape: f32[1,10], index: 4, kind: input, shape index: {}]   ;;  %s867_s5 = inlined_call_operand.hbm [shape: f32[8,10], index: 5, kind: output, shape index: {}]  }
   0x1   :  { %v22_v0 = vld [vmem:[%s862_s0] sm:$0xff]  ;;  %v24_v1 = vld [vmem:[%s862_s0 + $0x10] sm:$0xff]  ;;  %v23_v2 = vld [vmem:[%s862_s0 + $0x8] sm:$0xff] }
   0x2   :  { %40 = vadd.xlane.f32.xlu0 %v22_v0  ;;  %44 = vadd.xlane.f32.xlu1 %v24_v1  ;;  %v25_v3 = vld [vmem:[%s862_s0 + $0x18] sm:$0xff]  ;;  %v26_v4 = vld [vmem:[%s862_s0 + $0x20] sm:$0xff]  ;;  %v27_v5 = vld [vmem:[%s862_s0 + $0x28] sm:$0xff] }
   0x3   :  { %v28_v6 = vld [vmem:[%s862_s0 + $0x30] sm:$0xff]  ;;  %v29_v7 = vld [vmem:[%s862_s0 + $0x38] sm:$0xff] }
   0x6   :  { %42 = vadd.xlane.f32.xlu0 %v23_v2  ;;  %46 = vadd.xlane.f32.xlu1 %v25_v3 }
   0xa   :  { %48 = vadd.xlane.f32.xlu0 %v26_v4  ;;  %50 = vadd.xlane.f32.xlu1 %v27_v5 }
   0xb   :  { %10 = vsyncpa [#allocation3], 0  ;;  %v30_v8 = vld [vmem:[%s862_s0 + $0x40] sm:$0xff]  ;;  %v31_v9 = vld [vmem:[%s862_s0 + $0x48] sm:$0xff]  ;;  %vm601_vm0 = vmmov 0   ;;  %vm373_vm1 = vcmask 1041409  }
   0xc   :  { %v32_v10 = vld [vmem:[%s862_s0 + $0x50] sm:$0xff]  ;;  %v669_v11 = vld [vmem:[%s862_s0 + $0x58] sm:$0xff]  ;;  %v675_v12 = vld [vmem:[%s862_s0 + $0x60] sm:$0xff]  ;;  %vm375_vm2 = vcmask 1042434   ;;  %vm377_vm3 = vcmask 1043459   ;;  %vm379_vm4 = vcmask 1044484  }
   0xd   :  { %v680_v13 = vld [vmem:[%s862_s0 + $0x68] sm:$0xff]  ;;  %v687_v14 = vld [vmem:[%s862_s0 + $0x70] sm:$0xff]  ;;  %v692_v15 = vld [vmem:[%s862_s0 + $0x78] sm:$0xff]  ;;  %vm381_vm5 = vcmask 1045509   ;;  %vm383_vm6 = vcmask 1046534   ;;  %vm385_vm7 = vcmask 1047559  }
   0xe   :  { %52 = vadd.xlane.f32.xlu0 %v28_v6  ;;  %54 = vadd.xlane.f32.xlu1 %v29_v7  ;;  %s602_s18 = smov [#allocation2]   ;;  %vm477_vm8 = vcmask 80896  }
   0xf   :  { %s485_s19 = sshll.u32 %s602_s18, 4  ;;  %s486_s19 = int_to_ptr.vmem [resolvable:$true] %s485_s19 }
  0x10   :  { %s576_s20 = scalar_lea.vmem %s486_s19, 128  ;;  %p581_p1 = scmp.lt.s32.totalorder %s486_s19, %s486_s19 }
  0x11   :  { %p577_p0 = scmp.ne.s32.totalorder %s486_s19, %s576_s20  ;;  %p582_p2 = scmp.lt.s32.totalorder %s576_s20, %s576_s20 }
  0x12   :  { %56 = vadd.xlane.f32.xlu0 %v30_v8  ;;  %58 = vadd.xlane.f32.xlu1 %v31_v9 }
  0x13   :  { %p583_p3 = por %p582_p2, %p581_p1 }
  0x15   :  { %p584_p4 = pnand %p583_p3, %p577_p0 }
  0x16   :  { %60 = vadd.xlane.f32.xlu0 %v32_v10  ;;  %62 = vadd.xlane.f32.xlu1 %v669_v11 }
  0x1a   :  { %64 = vadd.xlane.f32.xlu0 %v675_v12  ;;  %66 = vadd.xlane.f32.xlu1 %v680_v13 }
  0x1e   :  { %68 = vadd.xlane.f32.xlu0 %v687_v14  ;;  %70 = vadd.xlane.f32.xlu1 %v692_v15 }
  0x8f   :  { %v41_v16 = vpop.xlane.xlu0 %40  ;;  %v45_v17 = vpop.xlane.xlu1 %44 }
  0x90   :  { %v73_v18 = vmul.f32 0.0078125, %v41_v16  ;;  %v75_v19 = vmul.f32 0.0078125, %v45_v17 }
  0x92   :  { %v696_v20 = vsub.f32 %v22_v0, %v73_v18  ;;  %v698_v21 = vsub.f32 %v24_v1, %v75_v19  ;;  %v600_v18 = vmov 0.0   ;;  %v538_v19 = vld [vmem:[%s865_s3 + $0x10] sm:$0xff]  }
  0x93   :  { %v43_v22 = vpop.xlane.xlu0 %42  ;;  %v47_v23 = vpop.xlane.xlu1 %46  ;;  %513 = vmatprep.subr.bf16.mxu0 %v600_v18  ;;  %529 = vmatprep.mubr.msk.bf16.mxu0 %vm601_vm0, %v600_v18 }
  0x94   :  { %v74_v24 = vmul.f32 0.0078125, %v43_v22  ;;  %v105_v25 = vmul.f32 %v696_v20, %v696_v20  ;;  %v76_v26 = vmul.f32 0.0078125, %v47_v23  ;;  %v107_v29 = vmul.f32 %v698_v21, %v698_v21  ;;  %v539_v22 = vld [vmem:[%s865_s3 + $0x18] sm:$0xff]   ;;  %v540_v23 = vld [vmem:[%s865_s3 + $0x20] sm:$0xff]  }
  0x96   :  { %v702_v27 = vsub.f32 %v23_v2, %v74_v24  ;;  %121 = vadd.xlane.f32.xlu0 %v105_v25  ;;  %v704_v28 = vsub.f32 %v25_v3, %v76_v26  ;;  %v541_v24 = vld [vmem:[%s865_s3 + $0x28] sm:$0xff]   ;;  %v542_v25 = vld [vmem:[%s865_s3 + $0x30] sm:$0xff]   ;;  %v543_v26 = vld [vmem:[%s865_s3 + $0x38] sm:$0xff]  }
  0x97   :  { %v49_v30 = vpop.xlane.xlu0 %48  ;;  %v51_v31 = vpop.xlane.xlu1 %50 }
  0x98   :  { %v77_v32 = vmul.f32 0.0078125, %v49_v30  ;;  %v106_v33 = vmul.f32 %v702_v27, %v702_v27  ;;  %v78_v34 = vmul.f32 0.0078125, %v51_v31  ;;  %v108_v37 = vmul.f32 %v704_v28, %v704_v28 }
  0x9a   :  { %v710_v35 = vsub.f32 %v26_v4, %v77_v32  ;;  %125 = vadd.xlane.f32.xlu0 %v107_v29  ;;  %123 = vadd.xlane.f32.xlu1 %v106_v33  ;;  %v712_v36 = vsub.f32 %v27_v5, %v78_v34 }
  0x9b   :  { %v53_v38 = vpop.xlane.xlu0 %52  ;;  %v55_v39 = vpop.xlane.xlu1 %54 }
  0x9c   :  { %v79_v40 = vmul.f32 0.0078125, %v53_v38  ;;  %v109_v41 = vmul.f32 %v710_v35, %v710_v35  ;;  %v80_v42 = vmul.f32 0.0078125, %v55_v39  ;;  %v110_v45 = vmul.f32 %v712_v36, %v712_v36 }
  0x9e   :  { %v718_v43 = vsub.f32 %v28_v6, %v79_v40  ;;  %127 = vadd.xlane.f32.xlu1 %v108_v37  ;;  %129 = vadd.xlane.f32.xlu0 %v109_v41  ;;  %v720_v44 = vsub.f32 %v29_v7, %v80_v42 }
  0x9f   :  { %v57_v46 = vpop.xlane.xlu0 %56  ;;  %v59_v47 = vpop.xlane.xlu1 %58 }
  0xa0   :  { %v81_v48 = vmul.f32 0.0078125, %v57_v46  ;;  %v111_v49 = vmul.f32 %v718_v43, %v718_v43  ;;  %v82_v50 = vmul.f32 0.0078125, %v59_v47  ;;  %v112_v53 = vmul.f32 %v720_v44, %v720_v44 }
  0xa2   :  { %v726_v51 = vsub.f32 %v30_v8, %v81_v48  ;;  %131 = vadd.xlane.f32.xlu1 %v110_v45  ;;  %133 = vadd.xlane.f32.xlu0 %v111_v49  ;;  %v728_v52 = vsub.f32 %v31_v9, %v82_v50 }
  0xa3   :  { %v61_v54 = vpop.xlane.xlu0 %60  ;;  %v63_v55 = vpop.xlane.xlu1 %62 }
  0xa4   :  { %v83_v56 = vmul.f32 0.0078125, %v61_v54  ;;  %v113_v57 = vmul.f32 %v726_v51, %v726_v51  ;;  %v84_v58 = vmul.f32 0.0078125, %v63_v55  ;;  %v114_v61 = vmul.f32 %v728_v52, %v728_v52 }
  0xa6   :  { %v734_v59 = vsub.f32 %v32_v10, %v83_v56  ;;  %135 = vadd.xlane.f32.xlu1 %v112_v53  ;;  %137 = vadd.xlane.f32.xlu0 %v113_v57  ;;  %v737_v60 = vsub.f32 %v669_v11, %v84_v58 }
  0xa7   :  { %v65_v62 = vpop.xlane.xlu0 %64  ;;  %v67_v63 = vpop.xlane.xlu1 %66 }
  0xa8   :  { %v85_v0 = vmul.f32 0.0078125, %v65_v62  ;;  %v115_v1 = vmul.f32 %v734_v59, %v734_v59  ;;  %v86_v2 = vmul.f32 0.0078125, %v67_v63  ;;  %v116_v5 = vmul.f32 %v737_v60, %v737_v60 }
  0xaa   :  { %v744_v3 = vsub.f32 %v675_v12, %v85_v0  ;;  %139 = vadd.xlane.f32.xlu1 %v114_v61  ;;  %141 = vadd.xlane.f32.xlu0 %v115_v1  ;;  %v747_v4 = vsub.f32 %v680_v13, %v86_v2 }
  0xab   :  { %v69_v6 = vpop.xlane.xlu0 %68  ;;  %v71_v7 = vpop.xlane.xlu1 %70 }
  0xac   :  { %v87_v8 = vmul.f32 0.0078125, %v69_v6  ;;  %v117_v9 = vmul.f32 %v744_v3, %v744_v3  ;;  %v88_v10 = vmul.f32 0.0078125, %v71_v7  ;;  %v118_v13 = vmul.f32 %v747_v4, %v747_v4  ;;  %v793_v6 = vld [vmem:[%s863_s1] ss:$0 sm:$0xff] }
  0xae   :  { %v754_v11 = vsub.f32 %v687_v14, %v87_v8  ;;  %143 = vadd.xlane.f32.xlu1 %v116_v5  ;;  %145 = vadd.xlane.f32.xlu0 %v117_v9  ;;  %v757_v12 = vsub.f32 %v692_v15, %v88_v10  ;;  %v536_v14 = vld [vmem:[%s865_s3] sm:$0xff]   ;;  %v537_v15 = vld [vmem:[%s865_s3 + $0x8] sm:$0xff]  }
  0xaf   :  { %514 = vmatpush3.bf16.msra.mxu0 %v536_v14 }
  0xb0   :  { %v119_v16 = vmul.f32 %v754_v11, %v754_v11  ;;  %v120_v17 = vmul.f32 %v757_v12, %v757_v12  ;;  %515 = vmatprep.subr.bf16.mxu0 %v600_v18 }
  0xb2   :  { %147 = vadd.xlane.f32.xlu1 %v118_v13  ;;  %149 = vadd.xlane.f32.xlu0 %v119_v16 }
  0xb3   :  { %516 = vmatpush3.bf16.msra.mxu0 %v537_v15 }
  0xb4   :  { %517 = vmatprep.subr.bf16.mxu0 %v600_v18 }
  0xb6   :  { %151 = vadd.xlane.f32.xlu1 %v120_v17 }
  0xb7   :  { %518 = vmatpush3.bf16.msra.mxu0 %v538_v19 }
  0xb8   :  { %519 = vmatprep.subr.bf16.mxu0 %v600_v18 }
  0xbb   :  { %520 = vmatpush3.bf16.msra.mxu0 %v539_v22 }
  0xbc   :  { %521 = vmatprep.subr.bf16.mxu0 %v600_v18 }
  0xbf   :  { %522 = vmatpush3.bf16.msra.mxu0 %v540_v23 }
  0xc0   :  { %523 = vmatprep.subr.bf16.mxu0 %v600_v18 }
  0xc3   :  { %524 = vmatpush3.bf16.msra.mxu0 %v541_v24 }
  0xc4   :  { %525 = vmatprep.subr.bf16.mxu0 %v600_v18 }
  0xc7   :  { %526 = vmatpush3.bf16.msra.mxu0 %v542_v25 }
  0xc8   :  { %527 = vmatprep.subr.bf16.mxu0 %v600_v18 }
  0xcb   :  { %528 = vmatpush3.bf16.msra.mxu0 %v543_v26 }
 0x123   :  { %v122_v29 = vpop.xlane.xlu0 %121 }
 0x124   :  { %v153_v30 = vmul.f32 0.0078125, %v122_v29 }
 0x126   :  { %v169_v31 = vadd.f32 1e-05, %v153_v30 }
 0x127   :  { %v124_v32 = vpop.xlane.xlu1 %123  ;;  %v126_v33 = vpop.xlane.xlu0 %125 }
 0x128   :  { %v154_v34 = vmul.f32 0.0078125, %v124_v32  ;;  %v155_v37 = vmul.f32 0.0078125, %v126_v33  ;;  %544 = vrsqrt.f32 %v169_v31 }
 0x12a   :  { %v170_v38 = vadd.f32 1e-05, %v154_v34  ;;  %v171_v39 = vadd.f32 1e-05, %v155_v37 }
 0x12b   :  { %v128_v40 = vpop.xlane.xlu1 %127  ;;  %v130_v41 = vpop.xlane.xlu0 %129 }
 0x12c   :  { %546 = vrsqrt.f32 %v170_v38  ;;  %v156_v42 = vmul.f32 0.0078125, %v128_v40  ;;  %v157_v45 = vmul.f32 0.0078125, %v130_v41 }
 0x12d   :  { %548 = vrsqrt.f32 %v171_v39 }
 0x12e   :  { %v172_v46 = vadd.f32 1e-05, %v156_v42  ;;  %v173_v47 = vadd.f32 1e-05, %v157_v45 }
 0x12f   :  { %v132_v48 = vpop.xlane.xlu1 %131  ;;  %v134_v49 = vpop.xlane.xlu0 %133 }
 0x130   :  { %550 = vrsqrt.f32 %v172_v46  ;;  %v158_v50 = vmul.f32 0.0078125, %v132_v48  ;;  %v159_v53 = vmul.f32 0.0078125, %v134_v49 }
 0x131   :  { %552 = vrsqrt.f32 %v173_v47 }
 0x132   :  { %v174_v54 = vadd.f32 1e-05, %v158_v50  ;;  %v175_v55 = vadd.f32 1e-05, %v159_v53  ;;  %v545_v56 = vpop.eup %544 }
 0x133   :  { %v136_v57 = vpop.xlane.xlu1 %135  ;;  %v138_v58 = vpop.xlane.xlu0 %137  ;;  %v201_v0 = vmul.f32 %v545_v56, %v696_v20 }
 0x134   :  { %554 = vrsqrt.f32 %v174_v54  ;;  %v160_v61 = vmul.f32 0.0078125, %v136_v57  ;;  %v161_v62 = vmul.f32 0.0078125, %v138_v58 }
 0x135   :  { %556 = vrsqrt.f32 %v175_v55  ;;  %v223_v14 = vmul.f32 %v793_v6, %v201_v0 }
 0x136   :  { %v547_v63 = vpop.eup %546  ;;  %v176_v1 = vadd.f32 1e-05, %v160_v61  ;;  %v177_v2 = vadd.f32 1e-05, %v161_v62 }
 0x137   :  { %v549_v5 = vpop.eup %548  ;;  %v202_v7 = vmul.f32 %v547_v63, %v702_v27  ;;  %v140_v8 = vpop.xlane.xlu1 %139  ;;  %v802_v27 = vld [vmem:[%s864_s2] ss:$0 sm:$0xff] }
 0x138   :  { %v142_v9 = vpop.xlane.xlu0 %141  ;;  %v203_v10 = vmul.f32 %v549_v5, %v698_v21  ;;  %558 = vrsqrt.f32 %v176_v1  ;;  %v162_v13 = vmul.f32 0.0078125, %v140_v8  ;;  %v245_v33 = vadd.f32 %v802_v27, %v223_v14 }
 0x139   :  { %v163_v16 = vmul.f32 0.0078125, %v142_v9  ;;  %v224_v17 = vmul.f32 %v793_v6, %v202_v7  ;;  %560 = vrsqrt.f32 %v177_v2 }
 0x13a   :  { %v551_v20 = vpop.eup %550  ;;  %v178_v18 = vadd.f32 1e-05, %v162_v13  ;;  %v225_v22 = vmul.f32 %v793_v6, %v203_v10 }
 0x13b   :  { %v179_v15 = vadd.f32 1e-05, %v163_v16  ;;  %v553_v19 = vpop.eup %552  ;;  %v204_v21 = vmul.f32 %v551_v20, %v704_v28  ;;  %v144_v23 = vpop.xlane.xlu1 %143  ;;  %v246_v29 = vadd.f32 %v802_v27, %v224_v17 }
 0x13c   :  { %v146_v24 = vpop.xlane.xlu0 %145  ;;  %v205_v25 = vmul.f32 %v553_v19, %v710_v35  ;;  %562 = vrsqrt.f32 %v178_v18  ;;  %v164_v26 = vmul.f32 0.0078125, %v144_v23  ;;  %v247_v28 = vadd.f32 %v802_v27, %v225_v22 }
 0x13d   :  { %v226_v30 = vmul.f32 %v793_v6, %v204_v21  ;;  %564 = vrsqrt.f32 %v179_v15  ;;  %v165_v31 = vmul.f32 0.0078125, %v146_v24  ;;  %v261_v47 = vadd.f32 %v246_v29, %v245_v33 }
 0x13e   :  { %v555_v32 = vpop.eup %554  ;;  %v227_v34 = vmul.f32 %v793_v6, %v205_v25  ;;  %v180_v37 = vadd.f32 1e-05, %v164_v26 }
 0x13f   :  { %v557_v38 = vpop.eup %556  ;;  %v248_v39 = vadd.f32 %v802_v27, %v226_v30  ;;  %v206_v35 = vmul.f32 %v555_v32, %v712_v36  ;;  %v181_v40 = vadd.f32 1e-05, %v165_v31  ;;  %v148_v41 = vpop.xlane.xlu1 %147  ;;  %v262_v0 = vrot.slane %v261_v47, 4 }
 0x140   :  { %v150_v42 = vpop.xlane.xlu0 %149  ;;  %v207_v45 = vmul.f32 %v557_v38, %v718_v43  ;;  %566 = vrsqrt.f32 %v180_v37  ;;  %v166_v46 = vmul.f32 0.0078125, %v148_v41  ;;  %v249_v53 = vadd.f32 %v802_v27, %v227_v34 }
 0x141   :  { %v268_v48 = vadd.f32 %v248_v39, %v247_v28  ;;  %v228_v49 = vmul.f32 %v793_v6, %v206_v35  ;;  %568 = vrsqrt.f32 %v181_v40  ;;  %v167_v55 = vmul.f32 0.0078125, %v150_v42 }
 0x142   :  { %v559_v50 = vpop.eup %558  ;;  %v182_v54 = vadd.f32 1e-05, %v166_v46  ;;  %v229_v58 = vmul.f32 %v793_v6, %v207_v45  ;;  %v263_v14 = vadd.f32 %v262_v0, %v261_v47 }
 0x143   :  { %v561_v56 = vpop.eup %560  ;;  %v269_v57 = vrot.slane %v268_v48, 4  ;;  %v250_v36 = vadd.f32 %v802_v27, %v228_v49  ;;  %v208_v43 = vmul.f32 %v559_v50, %v720_v44  ;;  %v152_v61 = vpop.xlane.xlu1 %151  ;;  %v183_v63 = vadd.f32 1e-05, %v167_v55 }
 0x144   :  { %v209_v62 = vmul.f32 %v561_v56, %v726_v51  ;;  %570 = vrsqrt.f32 %v182_v54  ;;  %v168_v7 = vmul.f32 0.0078125, %v152_v61  ;;  %v251_v13 = vadd.f32 %v802_v27, %v229_v58 }
 0x145   :  { %v275_v1 = vadd.f32 %v250_v36, %v249_v53  ;;  %v230_v2 = vmul.f32 %v793_v6, %v208_v43  ;;  %572 = vrsqrt.f32 %v183_v63  ;;  %v270_v9 = vadd.f32 %v269_v57, %v268_v48 }
 0x146   :  { %v563_v5 = vpop.eup %562  ;;  %v231_v44 = vmul.f32 %v793_v6, %v209_v62  ;;  %v184_v20 = vadd.f32 1e-05, %v168_v7  ;;  %v264_v33 = vrot.slane %v263_v14, 2 }
 0x147   :  { %v565_v8 = vpop.eup %564  ;;  %v276_v10 = vrot.slane %v275_v1, 4  ;;  %v252_v16 = vadd.f32 %v802_v27, %v230_v2  ;;  %v210_v51 = vmul.f32 %v563_v5, %v728_v52  ;;  %v271_v26 = vrot.slane %v270_v9, 2 }
 0x148   :  { %v211_v17 = vmul.f32 %v565_v8, %v734_v59  ;;  %574 = vrsqrt.f32 %v184_v20  ;;  %v253_v29 = vadd.f32 %v802_v27, %v231_v44  ;;  %v265_v47 = vadd.f32 %v264_v33, %v263_v14 }
 0x149   :  { %v282_v18 = vadd.f32 %v252_v16, %v251_v13  ;;  %v277_v19 = vadd.f32 %v276_v10, %v275_v1  ;;  %v232_v22 = vmul.f32 %v793_v6, %v210_v51  ;;  %v272_v41 = vadd.f32 %v271_v26, %v270_v9 }
 0x14a   :  { %v567_v15 = vpop.eup %566  ;;  %v233_v21 = vmul.f32 %v793_v6, %v211_v17  ;;  %v266_v62 = vrot.slane %v265_v47, 1 }
 0x14b   :  { %v569_v23 = vpop.eup %568  ;;  %v283_v24 = vrot.slane %v282_v18, 4  ;;  %v212_v25 = vmul.f32 %v567_v15, %v737_v60  ;;  %v254_v52 = vadd.f32 %v802_v27, %v232_v22  ;;  %v278_v34 = vrot.slane %v277_v19, 2 }
 0x14c   :  { %v213_v59 = vmul.f32 %v569_v23, %v744_v3  ;;  %v255_v38 = vadd.f32 %v802_v27, %v233_v21  ;;  %v273_v57 = vrot.slane %v272_v41, 1  ;;  %v267_v44 = vadd.f32 %v266_v62, %v265_v47 }
 0x14d   :  { %v284_v30 = vadd.f32 %v283_v24, %v282_v18  ;;  %v234_v31 = vmul.f32 %v793_v6, %v212_v25  ;;  %v289_v37 = vadd.f32 %v254_v52, %v253_v29  ;;  %v279_v48 = vadd.f32 %v278_v34, %v277_v19 }
 0x14e   :  { %v571_v32 = vpop.eup %570  ;;  %v235_v60 = vmul.f32 %v793_v6, %v213_v59  ;;  %v274_v7 = vadd.f32 %v273_v57, %v272_v41  ;;  %v318_v25 = vmul.f32 0.0625, %v267_v44 }
 0x14f   :  { %v285_v28 = vrot.slane %v284_v30, 2  ;;  %v256_v39 = vadd.f32 %v802_v27, %v234_v31  ;;  %v214_v35 = vmul.f32 %v571_v32, %v747_v4  ;;  %v573_v40 = vpop.eup %572  ;;  %v290_v42 = vrot.slane %v289_v37, 4 }
 0x150   :  { %v215_v46 = vmul.f32 %v573_v40, %v754_v11  ;;  %v257_v53 = vadd.f32 %v802_v27, %v235_v60  ;;  %v280_v11 = vrot.slane %v279_v48, 1  ;;  %v319_v22 = vmul.f32 0.0625, %v274_v7 }
 0x151   :  { %v296_v3 = vadd.f32 %v256_v39, %v255_v38  ;;  %v236_v45 = vmul.f32 %v793_v6, %v214_v35  ;;  %v291_v49 = vadd.f32 %v290_v42, %v289_v37  ;;  %v286_v55 = vadd.f32 %v285_v28, %v284_v30 }
 0x152   :  { %v575_v56 = vpop.eup %574  ;;  %v237_v36 = vmul.f32 %v793_v6, %v215_v46  ;;  %v327_v30 = vpack.c.bf16 %v319_v22, %v319_v22  ;;  %v326_v34 = vpack.c.bf16 %v318_v25, %v318_v25 }
 0x153   :  { %v297_v50 = vrot.slane %v296_v3, 4  ;;  %v258_v54 = vadd.f32 %v802_v27, %v236_v45  ;;  %v292_v4 = vrot.slane %v291_v49, 2  ;;  %v216_v58 = vmul.f32 %v575_v56, %v757_v12 }
 0x154   :  { %v287_v1 = vrot.slane %v286_v55, 1  ;;  %v259_v9 = vadd.f32 %v802_v27, %v237_v36  ;;  %v281_v12 = vadd.f32 %v280_v11, %v279_v48  ;;  %v366_v60 = vunpack.c.l.b16 %v327_v30 }
 0x155   :  { %v298_v43 = vadd.f32 %v297_v50, %v296_v3  ;;  %v303_v61 = vadd.f32 %v258_v54, %v257_v53  ;;  %v293_v63 = vadd.f32 %v292_v4, %v291_v49  ;;  %v238_v0 = vmul.f32 %v793_v6, %v216_v58 }
 0x156   :  { %v288_v51 = vadd.f32 %v287_v1, %v286_v55  ;;  %v320_v21 = vmul.f32 0.0625, %v281_v12  ;;  %v365_v42 = vunpack.c.l.b16 %v326_v34 }
 0x157   :  { %v299_v2 = vrot.slane %v298_v43, 2  ;;  %v304_v5 = vrot.slane %v303_v61, 4  ;;  %v294_v8 = vrot.slane %v293_v63, 1  ;;  %v260_v10 = vadd.f32 %v802_v27, %v238_v0 }
 0x158   :  { %v321_v26 = vmul.f32 0.0625, %v288_v51  ;;  %v328_v31 = vpack.c.bf16 %v320_v21, %v320_v21  ;;  %v374_v48 = vsel %vm373_vm1, %v366_v60, %v365_v42 }
 0x159   :  { %v300_v13 = vadd.f32 %v299_v2, %v298_v43  ;;  %v305_v16 = vadd.f32 %v304_v5, %v303_v61  ;;  %v310_v14 = vadd.f32 %v260_v10, %v259_v9  ;;  %v295_v18 = vadd.f32 %v294_v8, %v293_v63  ;;  %v495_v43 = vld [vmem:[%s866_s4] ss:$0 sm:$0xff] }
 0x15a   :  { %v329_v37 = vpack.c.bf16 %v321_v26, %v321_v26  ;;  %v367_v40 = vunpack.c.l.b16 %v328_v31 }
 0x15b   :  { %v301_v17 = vrot.slane %v300_v13, 1  ;;  %v306_v20 = vrot.slane %v305_v16, 2  ;;  %v311_v19 = vrot.slane %v310_v14, 4  ;;  %v322_v29 = vmul.f32 0.0625, %v295_v18 }
 0x15c   :  { %v368_v3 = vunpack.c.l.b16 %v329_v37  ;;  %v376_v50 = vsel %vm375_vm2, %v367_v40, %v374_v48 }
 0x15d   :  { %v302_v15 = vadd.f32 %v301_v17, %v300_v13  ;;  %v307_v6 = vadd.f32 %v306_v20, %v305_v16  ;;  %v312_v24 = vadd.f32 %v311_v19, %v310_v14  ;;  %v330_v38 = vpack.c.bf16 %v322_v29, %v322_v29 }
 0x15e   :  { %v378_v54 = vsel %vm377_vm3, %v368_v3, %v376_v50 }
 0x15f   :  { %v308_v23 = vrot.slane %v307_v6, 1  ;;  %v313_v52 = vrot.slane %v312_v24, 2  ;;  %v323_v59 = vmul.f32 0.0625, %v302_v15  ;;  %v369_v45 = vunpack.c.l.b16 %v330_v38 }
 0x161   :  { %v309_v27 = vadd.f32 %v308_v23, %v307_v6  ;;  %v314_v32 = vadd.f32 %v313_v52, %v312_v24  ;;  %v331_v39 = vpack.c.bf16 %v323_v59, %v323_v59  ;;  %v380_v55 = vsel %vm379_vm4, %v369_v45, %v378_v54 }
 0x163   :  { %v324_v33 = vmul.f32 0.0625, %v309_v27  ;;  %v315_v28 = vrot.slane %v314_v32, 1  ;;  %v370_v47 = vunpack.c.l.b16 %v331_v39 }
 0x165   :  { %v332_v35 = vpack.c.bf16 %v324_v33, %v324_v33  ;;  %v316_v41 = vadd.f32 %v315_v28, %v314_v32  ;;  %v382_v57 = vsel %vm381_vm5, %v370_v47, %v380_v55 }
 0x167   :  { %v325_v46 = vmul.f32 0.0625, %v316_v41  ;;  %v371_v49 = vunpack.c.l.b16 %v332_v35 }
 0x169   :  { %v333_v53 = vpack.c.bf16 %v325_v46, %v325_v46  ;;  %v384_v4 = vsel %vm383_vm6, %v371_v49, %v382_v57 }
 0x16b   :  { %v372_v56 = vunpack.c.l.b16 %v333_v53 }
 0x16d   :  { %v386_v36 = vsel %vm385_vm7, %v372_v56, %v384_v4 }
 0x16e   :  { %v387_v58 = vpack.c.b16 %v386_v36, %v386_v36 }
 0x170   :  { %530 = vmatmul.mubr.bf16.vlgmr.msra.gmra.mrb[0].mxu0 %v387_v58 }
 0x243   :  { %v471_v61 = vpop.f32.mrb[0].mxu0 }
 0x244   :  { %v472_v62 = vadd.f32 %v495_v43, %v471_v61  ;;  %v531_v11 = vpop.f32.mrb[1].mxu0 }
 0x245   :  { %v474_v63 = vpop.f32.mrb[2].mxu0 }
 0x246   :  { %v532_v0 = vpop.f32.mrb[3].mxu0  ;;  %478 = vst.msk [vmem:[#allocation2] sm:$0xff] %vm477_vm8, %v472_v62 }
 0x247   :  { %587 = shalt.err (!%p584_p4)
}
 0x248   :  { %s588_s4 = scalar_lea.hbm %s867_s5, 128 }
 0x249   :  { %p589_p5 = scmp.ne.s32.totalorder %s867_s5, %s588_s4  ;;  %p592_p6 = scmp.lt.u32.totalorder %s588_s4, %s867_s5 }
 0x24b   :  { %p594_p7 = pnand %p592_p6, %p589_p5 }
 0x24d   :  { %597 = shalt.err (!%p594_p7)
}
 0x24e   :  { %488 = dma.vmem_to_hbm [thread:$0]  %s486_s19, 128, %s867_s5, [#allocation3]  }
 0x24f   :  { %598 = dma.done.wait [#allocation3], 128  }
 0x250   :  { %599 = vsyncadd [#allocation3], 4294967168 }
 0x251   :  { %492 = vsyncpa [#allocation3], 1 }

// kernel: mlp_mixer_forward.4
= control target key start
LH: loop header
LB: loop body
LE: loop exit
PB: predicated region body
PF: predicated region fallthrough
CT: control target
= control target key end

     0   :  { %s4295_s25 = smov 0   ;;  %s4297_s26 = smov 0   ;;  %s5484_s0 = inlined_call_operand.vmem [shape: f32[8,16,128], index: 0, kind: input, shape index: {}]   ;;  %s5485_s1 = inlined_call_operand.vmem [shape: f32[4,1,128], index: 1, kind: input, shape index: {}]   ;;  %s5486_s2 = inlined_call_operand.vmem [shape: f32[4,1,128], index: 2, kind: input, shape index: {}]   ;;  %s5487_s3 = inlined_call_operand.vmem [shape: bf16[4,64,16], index: 3, kind: input, shape index: {}]   ;;  %s5488_s4 = inlined_call_operand.vmem [shape: f32[4,64,1], index: 4, kind: input, shape index: {}]   ;;  %s5489_s5 = inlined_call_operand.vmem [shape: bf16[4,16,64], index: 5, kind: input, shape index: {}]   ;;  %s5490_s6 = inlined_call_operand.vmem [shape: f32[4,16,1], index: 6, kind: input, shape index: {}]   ;;  %s5491_s7 = inlined_call_operand.vmem [shape: f32[4,1,128], index: 7, kind: input, shape index: {}]   ;;  %s5492_s8 = inlined_call_operand.vmem [shape: f32[4,1,128], index: 8, kind: input, shape index: {}]   ;;  %s5493_s9 = inlined_call_operand.vmem [shape: bf16[4,128,256], index: 9, kind: input, shape index: {}]   ;;  %s5494_s10 = inlined_call_operand.vmem [shape: f32[4,1,256], index: 10, kind: input, shape index: {}]   ;;  %s5495_s11 = inlined_call_operand.vmem [shape: bf16[4,256,128], index: 11, kind: input, shape index: {}]   ;;  %s5496_s12 = inlined_call_operand.vmem [shape: f32[4,1,128], index: 12, kind: input, shape index: {}]   ;;  %s5497_s13 = inlined_call_operand.vmem [shape: f32[8,16,128], index: 13, kind: output, shape index: {}]  }
   0x1   :  { %5501 = sst [smem:[#allocation6_spill]] %s5485_s1  ;;  %s4299_s27 = smov 0  }
   0x2   :  { %5502 = sst [smem:[#allocation7_spill]] %s5486_s2 }
   0x3   :  { %5503 = sst [smem:[#allocation8_spill]] %s5487_s3 }
   0x4   :  { %5504 = sst [smem:[#allocation9_spill]] %s5488_s4 }
   0x5 LB: > { %5505 = sst [smem:[#allocation2_spill]] %s4216_s26  ;;  %s32_s28 = sadd.s32 1, %s4216_s26  ;;  %s4220_s27 = sphi %s4299_s27, %s23_s27   ;;  %s4216_s26 = sphi %s4297_s26, %s5521_s26   ;;  %s4212_s25 = sphi %s4295_s25, %s5520_s25  }
   0x6   : > { %5506 = sst [smem:[#allocation3_spill]] %s4220_s27  ;;  %p3410_p0 = scmp.ge.s32.totalorder %s4220_s27, 1 }
   0x7   : > { %p33_p1 = scmp.ge.s32.totalorder %s32_s28, 4  ;;  %p510_p2 = scmp.lt.s32.totalorder %s4220_s27, 5 }
   0x9   : > { %s5523_s28 = smov (%p33_p1, %s32_s28), 0  ;;  %p511_p3 = pnand %p3410_p0, %p510_p2 }
   0xa   : > { %5507 = sst [smem:[#allocation4_spill]] %s5523_s28 }
   0xb   : > { %514 = sbr.rel (%p511_p3) target bundleno = 1957 (0x7a5), region = 72 }
  0x12   : > { %p612_p4 = scmp.lt.s32.totalorder %s4212_s25, 3  ;;  %s5510_s3 = sld [smem:[#allocation8_spill]] }
  0x13   : > { %s5512_s4 = sld [smem:[#allocation9_spill]]  ;;  %p3424_p5 = scmp.ne.s32.totalorder %s4212_s25, 0 }
  0x14   : > { %s4317_s29 = scalar_select %p612_p4, %s4212_s25, 3 }
  0x15   : > { %v673_v0 = vld [vmem:[%s5484_s0] sm:$0xff] (!%p3424_p5)  ;;  %v674_v1 = vld [vmem:[%s5484_s0 + $0x8] sm:$0xff] (!%p3424_p5)  ;;  %v675_v2 = vld [vmem:[%s5484_s0 + $0x10] sm:$0xff] (!%p3424_p5) }
  0x16   : > { %s3525_s19 = sshll.u32 %s4317_s29, 5  ;;  %s3526_s20 = sshll.u32 %s4317_s29, 6  ;;  %689 = vst [vmem:[%s5497_s13] sm:$0xff] (!%p3424_p5), %v673_v0  ;;  %690 = vst [vmem:[%s5497_s13 + $0x8] sm:$0xff] (!%p3424_p5), %v674_v1  ;;  %v676_v3 = vld [vmem:[%s5484_s0 + $0x18] sm:$0xff] (!%p3424_p5)  ;;  %v677_v4 = vld [vmem:[%s5484_s0 + $0x20] sm:$0xff] (!%p3424_p5) }
  0x17   : > { %s3527_s28 = sshll.u32 %s4317_s29, 3  ;;  %s3528_s26 = sshll.u32 %s4317_s29, 4  ;;  %691 = vst [vmem:[%s5497_s13 + $0x10] sm:$0xff] (!%p3424_p5), %v675_v2  ;;  %v678_v5 = vld [vmem:[%s5484_s0 + $0x28] sm:$0xff] (!%p3424_p5)  ;;  %692 = vst [vmem:[%s5497_s13 + $0x18] sm:$0xff] (!%p3424_p5), %v676_v3  ;;  %v679_v6 = vld [vmem:[%s5484_s0 + $0x30] sm:$0xff] (!%p3424_p5) }
  0x18   : > { %s4332_s23 = scalar_lea.vmem %s5510_s3, %s3525_s19  ;;  %s4344_s16 = scalar_lea.vmem %s5489_s5, %s3527_s28  ;;  %693 = vst [vmem:[%s5497_s13 + $0x20] sm:$0xff] (!%p3424_p5), %v677_v4  ;;  %694 = vst [vmem:[%s5497_s13 + $0x28] sm:$0xff] (!%p3424_p5), %v678_v5  ;;  %v680_v7 = vld [vmem:[%s5484_s0 + $0x38] sm:$0xff] (!%p3424_p5)  ;;  %v681_v8 = vld [vmem:[%s5484_s0 + $0x40] sm:$0xff] (!%p3424_p5) }
  0x19   : > { %5511 = sst [smem:[#allocation5_spill]] %s4332_s23  ;;  %s4337_s14 = scalar_lea.vmem %s5512_s4, %s3526_s20  ;;  %695 = vst [vmem:[%s5497_s13 + $0x30] sm:$0xff] (!%p3424_p5), %v679_v6  ;;  %696 = vst [vmem:[%s5497_s13 + $0x38] sm:$0xff] (!%p3424_p5), %v680_v7  ;;  %v682_v9 = vld [vmem:[%s5484_s0 + $0x48] sm:$0xff] (!%p3424_p5)  ;;  %v683_v10 = vld [vmem:[%s5484_s0 + $0x50] sm:$0xff] (!%p3424_p5) }
  0x1a   : > { %s4349_s2 = scalar_lea.vmem %s5490_s6, %s3528_s26  ;;  %s640_s22 = scalar_lea.vmem %s5491_s7, %s4317_s29  ;;  %697 = vst [vmem:[%s5497_s13 + $0x40] sm:$0xff] (!%p3424_p5), %v681_v8  ;;  %v684_v11 = vld [vmem:[%s5484_s0 + $0x58] sm:$0xff] (!%p3424_p5)  ;;  %698 = vst [vmem:[%s5497_s13 + $0x48] sm:$0xff] (!%p3424_p5), %v682_v9  ;;  %v685_v12 = vld [vmem:[%s5484_s0 + $0x60] sm:$0xff] (!%p3424_p5) }
  0x1b   : > { %s3529_s30 = sshll.u32 %s4317_s29, 7  ;;  %s3421_s4 = sshll.u32 %s4317_s29, 1  ;;  %699 = vst [vmem:[%s5497_s13 + $0x50] sm:$0xff] (!%p3424_p5), %v683_v10  ;;  %700 = vst [vmem:[%s5497_s13 + $0x58] sm:$0xff] (!%p3424_p5), %v684_v11  ;;  %v686_v13 = vld [vmem:[%s5484_s0 + $0x68] sm:$0xff] (!%p3424_p5)  ;;  %v687_v14 = vld [vmem:[%s5484_s0 + $0x70] sm:$0xff] (!%p3424_p5) }
  0x1c   : > { %s4364_s27 = scalar_lea.vmem %s5493_s9, %s3529_s30  ;;  %s4369_s26 = scalar_lea.vmem %s5494_s10, %s3421_s4  ;;  %701 = vst [vmem:[%s5497_s13 + $0x60] sm:$0xff] (!%p3424_p5), %v685_v12  ;;  %702 = vst [vmem:[%s5497_s13 + $0x68] sm:$0xff] (!%p3424_p5), %v686_v13  ;;  %v688_v15 = vld [vmem:[%s5484_s0 + $0x78] sm:$0xff] (!%p3424_p5) }
  0x1d   : > { %s4374_s21 = scalar_lea.vmem %s5495_s11, %s3529_s30  ;;  %s660_s24 = scalar_lea.vmem %s5496_s12, %s4317_s29  ;;  %703 = vst [vmem:[%s5497_s13 + $0x70] sm:$0xff] (!%p3424_p5), %v687_v14  ;;  %704 = vst [vmem:[%s5497_s13 + $0x78] sm:$0xff] (!%p3424_p5), %v688_v15 }
  0x1e   : > { %672 = sbr.rel (%p3424_p5) target bundleno = 37 (0x25), region = 76 }
  0x25 PF: > { %v705_v16 = vld [vmem:[%s5497_s13] sm:$0xff]  ;;  %v4222_v17 = vmov 0   ;;  %v706_v18 = vld [vmem:[%s5497_s13 + $0x8] sm:$0xff]  ;;  %v707_v19 = vld [vmem:[%s5497_s13 + $0x10] sm:$0xff]  ;;  %s5513_s25 = sld [smem:[#allocation5_spill]]  ;;  %vm843_vm0 = vcmask 130048  }
  0x26   : > { %743 = vadd.xlane.f32.xlu0 %v705_v16  ;;  %3879 = vset.pattern.permute.xlu1 %v4222_v17  ;;  %v4491_v20 = vld [vmem:[%s5497_s13 + $0x20] sm:$0xff]  ;;  %v4496_v21 = vld [vmem:[%s5497_s13 + $0x30] sm:$0xff]  ;;  %v708_v37 = vld [vmem:[%s5497_s13 + $0x18] sm:$0xff]  ;;  %s5514_s1 = sld [smem:[#allocation6_spill]]  ;;  %s5516_s30 = sld [smem:[#allocation7_spill]]  ;;  %vm4224_vm1 = vmmov 0  }
  0x27   : > { %3878 = vset.pattern.permute.xlu0 %v4222_v17  ;;  %v4502_v22 = vld [vmem:[%s5497_s13 + $0x40] sm:$0xff]  ;;  %v4509_v23 = vld [vmem:[%s5497_s13 + $0x50] sm:$0xff]  ;;  %v710_v39 = vld [vmem:[%s5497_s13 + $0x28] sm:$0xff]  ;;  %vm980_vm2 = vcmask 523264  }
  0x28   : > { %v4515_v24 = vld [vmem:[%s5497_s13 + $0x60] sm:$0xff]  ;;  %v4540_v40 = vld [vmem:[%s5497_s13 + $0x38] sm:$0xff]  ;;  %v4546_v41 = vld [vmem:[%s5497_s13 + $0x48] sm:$0xff] }
  0x29   : > { %v731_v25 = vld [vmem:[%s4337_s14] sm:$0xff]  ;;  %v4552_v42 = vld [vmem:[%s5497_s13 + $0x58] sm:$0xff]  ;;  %v4558_v43 = vld [vmem:[%s5497_s13 + $0x68] sm:$0xff] }
  0x2a   : > { %745 = vadd.xlane.f32.xlu0 %v706_v18  ;;  %v738_v44 = vld [vmem:[%s4337_s14 + $0x38] sm:$0xff]  ;;  %v732_v45 = vld [vmem:[%s4337_s14 + $0x8] sm:$0xff]  ;;  %v733_v47 = vld [vmem:[%s4337_s14 + $0x10] sm:$0xff] }
  0x2b   : > { %v4564_v46 = vld [vmem:[%s5513_s25] sm:$0xff]   ;;  %v734_v48 = vld [vmem:[%s4337_s14 + $0x18] sm:$0xff]  ;;  %v736_v50 = vld [vmem:[%s4337_s14 + $0x28] sm:$0xff] }
  0x2c   : > { %3677 = vmatprep.mubr.msk.bf16.mxu0 %vm843_vm0, %v4564_v46  ;;  %3699 = vmatprep.mubr.msk.bf16.mxu1 %vm843_vm0, %v4564_v46  ;;  %v735_v49 = vld [vmem:[%s4337_s14 + $0x20] sm:$0xff]  ;;  %s5515_s23 = scalar_lea.vmem %s5514_s1, %s4317_s29  ;;  %v4596_v12 = vld [vmem:[%s5497_s13 + $0x78] sm:$0xff]  ;;  %s5517_s18 = scalar_lea.vmem %s5516_s30, %s4317_s29 }
  0x2d   : > { %v4588_v8 = vld [vmem:[%s5515_s23] ss:$0 sm:$0xff]  ;;  %s5518_s1 = scalar_lea.vmem %s5492_s8, %s4317_s29 }
  0x2e   : > { %1029 = vadd.xlane.f32.xlu0 %v707_v19  ;;  %v4605_v15 = vld [vmem:[%s5517_s18] ss:$0 sm:$0xff] }
  0x32   : > { %1211 = vadd.xlane.f32.xlu0 %v4491_v20 }
  0x36   : > { %1393 = vadd.xlane.f32.xlu0 %v4496_v21 }
  0x3a   : > { %1575 = vadd.xlane.f32.xlu0 %v4502_v22 }
  0x3e   : > { %1757 = vadd.xlane.f32.xlu0 %v4509_v23 }
  0x42   : > { %1939 = vadd.xlane.f32.xlu0 %v4515_v24 }
  0x58   : > { %785 = vperm.xlu0 %3878, %v731_v25  }
  0xb3   : > { %v744_v26 = vpop.xlane.xlu0 %743 }
  0xb4   : > { %v748_v27 = vmul.f32 0.0078125, %v744_v26 }
  0xb6   : > { %v4519_v28 = vsub.f32 %v705_v16, %v748_v27 }
  0xb7   : > { %v746_v29 = vpop.xlane.xlu0 %745 }
  0xb8   : > { %v749_v30 = vmul.f32 0.0078125, %v746_v29  ;;  %v752_v31 = vmul.f32 %v4519_v28, %v4519_v28 }
  0xba   : > { %v4523_v32 = vsub.f32 %v706_v18, %v749_v30  ;;  %754 = vadd.xlane.f32.xlu1 %v752_v31  ;;  %v4622_v30 = vld [vmem:[%s5513_s25 + $0x8] sm:$0xff]   ;;  %v737_v31 = vld [vmem:[%s4337_s14 + $0x30] sm:$0xff] }
  0xbb   : > { %v1030_v33 = vpop.xlane.xlu0 %1029 }
  0xbc   : > { %v1033_v34 = vmul.f32 0.0078125, %v1030_v33  ;;  %v753_v35 = vmul.f32 %v4523_v32, %v4523_v32 }
  0xbe   : > { %v4527_v36 = vsub.f32 %v707_v19, %v1033_v34  ;;  %756 = vadd.xlane.f32.xlu1 %v753_v35 }
  0xbf   : > { %v1212_v51 = vpop.xlane.xlu0 %1211 }
  0xc0   : > { %v1037_v38 = vmul.f32 %v4527_v36, %v4527_v36  ;;  %v1215_v34 = vmul.f32 0.0078125, %v1212_v51 }
  0xc2   : > { %1031 = vadd.xlane.f32.xlu1 %v708_v37  ;;  %1039 = vadd.xlane.f32.xlu0 %v1037_v38  ;;  %v4640_v35 = vsub.f32 %v4491_v20, %v1215_v34 }
  0xc3   : > { %v1394_v55 = vpop.xlane.xlu0 %1393 }
  0xc4   : > { %v1397_v38 = vmul.f32 0.0078125, %v1394_v55 }
  0xc6   : > { %1213 = vadd.xlane.f32.xlu1 %v710_v39 }
  0xc7   : > { %v1576_v61 = vpop.xlane.xlu0 %1575 }
  0xc8   : > { %v1579_v3 = vmul.f32 0.0078125, %v1576_v61  ;;  %v4223_v61 = vmov 0.0  }
  0xca   : > { %1395 = vadd.xlane.f32.xlu1 %v4540_v40  ;;  %v4591_v10 = vsub.f32 %v4502_v22, %v1579_v3 }
  0xcb   : > { %v1758_v5 = vpop.xlane.xlu0 %1757 }
  0xcc   : > { %v1761_v11 = vmul.f32 0.0078125, %v1758_v5  ;;  %v1583_v25 = vmul.f32 %v4591_v10, %v4591_v10 }
  0xce   : > { %1577 = vadd.xlane.f32.xlu1 %v4546_v41  ;;  %v4609_v19 = vsub.f32 %v4509_v23, %v1761_v11 }
  0xcf   : > { %v1940_v16 = vpop.xlane.xlu0 %1939 }
  0xd0   : > { %v1943_v22 = vmul.f32 0.0078125, %v1940_v16  ;;  %v1765_v23 = vmul.f32 %v4609_v19, %v4609_v19 }
  0xd2   : > { %1759 = vadd.xlane.f32.xlu1 %v4552_v42  ;;  %v4617_v29 = vsub.f32 %v4515_v24, %v1943_v22  ;;  %v4635_v24 = vld [vmem:[%s5513_s25 + $0x18] sm:$0xff]  }
  0xd4   : > { %v1947_v33 = vmul.f32 %v4617_v29, %v4617_v29 }
  0xd6   : > { %1941 = vadd.xlane.f32.xlu1 %v4558_v43 }
  0xd8   : > { %820 = vperm.xlu0 %3878, %v738_v44  }
  0xe7   : > { %790 = vperm.xlu1 %3879, %v732_v45   ;;  %v4645_v45 = vsub.f32 %v4496_v21, %v1397_v38 }
  0xeb   : > { %795 = vperm.xlu1 %3879, %v733_v47  }
  0xef   : > { %800 = vperm.xlu1 %3879, %v734_v48   ;;  %v4650_v48 = vld [vmem:[%s5497_s13 + $0x70] sm:$0xff] }
  0xf3   : > { %805 = vperm.xlu1 %3879, %v735_v49  }
  0xf7   : > { %810 = vperm.xlu1 %3879, %v736_v50   ;;  %v1401_v50 = vmul.f32 %v4645_v45, %v4645_v45 }
 0x147   : > { %v755_v52 = vpop.xlane.xlu1 %754 }
 0x148   : > { %v758_v53 = vmul.f32 0.0078125, %v755_v52 }
 0x14a   : > { %v760_v54 = vadd.f32 1e-05, %v758_v53 }
 0x14b   : > { %v757_v56 = vpop.xlane.xlu1 %756 }
 0x14c   : > { %3925 = vrsqrt.f32 %v760_v54  ;;  %v759_v57 = vmul.f32 0.0078125, %v757_v56 }
 0x14e   : > { %v761_v58 = vadd.f32 1e-05, %v759_v57 }
 0x14f   : > { %v1032_v59 = vpop.xlane.xlu1 %1031 }
 0x150   : > { %3927 = vrsqrt.f32 %v761_v58  ;;  %v1034_v60 = vmul.f32 0.0078125, %v1032_v59 }
 0x152   : > { %v4574_v62 = vsub.f32 %v708_v37, %v1034_v60  ;;  %v4679_v60 = vpop.permute.xlu0 %785 }
 0x153   : > { %v1214_v63 = vpop.xlane.xlu1 %1213 }
 0x154   : > { %v1216_v0 = vmul.f32 0.0078125, %v1214_v63  ;;  %v1038_v1 = vmul.f32 %v4574_v62, %v4574_v62 }
 0x156   : > { %v3926_v2 = vpop.eup %3925  ;;  %v4578_v4 = vsub.f32 %v710_v39, %v1216_v0  ;;  %1041 = vadd.xlane.f32.xlu1 %v1038_v1  ;;  %v1219_v39 = vmul.f32 %v4640_v35, %v4640_v35  ;;  %v1040_v63 = vpop.xlane.xlu0 %1039 }
 0x157   : > { %v764_v6 = vmul.f32 %v3926_v2, %v4519_v28  ;;  %v1396_v37 = vpop.xlane.xlu1 %1395  ;;  %v1043_v1 = vmul.f32 0.0078125, %v1040_v63 }
 0x158   : > { %v1220_v7 = vmul.f32 %v4578_v4, %v4578_v4  ;;  %v1398_v47 = vmul.f32 0.0078125, %v1396_v37 }
 0x159   : > { %v772_v14 = vmul.f32 %v4588_v8, %v764_v6  ;;  %v1045_v2 = vadd.f32 1e-05, %v1043_v1 }
 0x15a   : > { %v3928_v9 = vpop.eup %3927  ;;  %1223 = vadd.xlane.f32.xlu0 %v1220_v7  ;;  %v4653_v49 = vsub.f32 %v4540_v40, %v1398_v47  ;;  %v4690_v5 = vpop.permute.xlu0 %820 }
 0x15b   : > { %v765_v13 = vmul.f32 %v3928_v9, %v4523_v32  ;;  %v780_v26 = vadd.f32 %v4605_v15, %v772_v14  ;;  %v4626_v32 = vld [vmem:[%s5513_s25 + $0x10] sm:$0xff]   ;;  %v1578_v44 = vpop.xlane.xlu1 %1577  ;;  %3929 = vrsqrt.f32 %v1045_v2 }
 0x15c   : > { %v1580_v20 = vmul.f32 0.0078125, %v1578_v44  ;;  %v1402_v53 = vmul.f32 %v4653_v49, %v4653_v49 }
 0x15d   : > { %v773_v18 = vmul.f32 %v4588_v8, %v765_v13 }
 0x15e   : > { %2123 = vadd.xlane.f32.xlu0 %v4596_v12  ;;  %v4659_v21 = vsub.f32 %v4546_v41, %v1580_v20  ;;  %v741_v20 = vld [vmem:[%s4349_s2] sm:$0xff] }
 0x15f   : > { %v781_v27 = vadd.f32 %v4605_v15, %v773_v18  ;;  %v1760_v51 = vpop.xlane.xlu1 %1759 }
 0x160   : > { %v1762_v52 = vmul.f32 0.0078125, %v1760_v51  ;;  %v1584_v56 = vmul.f32 %v4659_v21, %v4659_v21 }
 0x161   : > { %v782_v28 = vpack.c.bf16 %v781_v27, %v780_v26 }
 0x162   : > { %1585 = vadd.xlane.f32.xlu0 %v1583_v25  ;;  %v4664_v55 = vsub.f32 %v4552_v42, %v1762_v52 }
 0x163   : > { %3675 = vmatprep.subr.bf16.mxu0 %v782_v28  ;;  %v1942_v54 = vpop.xlane.xlu1 %1941 }
 0x164   : > { %3676 = vmatpush3.bf16.msra.mxu0 %v782_v28  ;;  %v1944_v40 = vmul.f32 0.0078125, %v1942_v54  ;;  %v1766_v41 = vmul.f32 %v4664_v55, %v4664_v55 }
 0x165   : > { %3685 = vmatprep.subr.bf16.mxu0 %v4223_v61  ;;  %v3930_v14 = vpop.eup %3929 }
 0x166   : > { %1767 = vadd.xlane.f32.xlu0 %v1765_v23  ;;  %v4669_v57 = vsub.f32 %v4558_v43, %v1944_v40  ;;  %v1049_v22 = vmul.f32 %v3930_v14, %v4527_v36  ;;  %v742_v36 = vld [vmem:[%s4349_s2 + $0x8] sm:$0xff] }
 0x167   : > { %3678 = vmatmul.mubr.msk.bf16.vlgmr.msra.gmra.mrb[0].mxu0 %vm843_vm0, %v4622_v30  ;;  %815 = vperm.xlu1 %3879, %v737_v31   ;;  %v4675_v59 = vpop.permute.xlu1 %790 }
 0x168   : > { %3681 = vmatprep.mubr.msk.bf16.mxu0 %vm843_vm0, %v4626_v32  ;;  %v1948_v58 = vmul.f32 %v4669_v57, %v4669_v57  ;;  %v1051_v28 = vmul.f32 %v4588_v8, %v1049_v22 }
 0x16a   : > { %1949 = vadd.xlane.f32.xlu0 %v1947_v33  ;;  %v1053_v31 = vadd.f32 %v4605_v15, %v1051_v28 }
 0x16b   : > { %v4677_v42 = vpop.permute.xlu1 %795 }
 0x16f   : > { %3682 = vmatmul.mubr.msk.bf16.gmra.mrb[4].mxu0 %vm843_vm0, %v4635_v24  ;;  %v4682_v43 = vpop.permute.xlu1 %800 }
 0x170   : > { %3693 = vmatprep.mubr.msk.bf16.mxu0 %vm4224_vm1, %v4223_v61 }
 0x173   : > { %v4684_v0 = vpop.permute.xlu1 %805 }
 0x177   : > { %v4686_v3 = vpop.permute.xlu1 %810 }
 0x18b   : > { %1221 = vadd.xlane.f32.xlu1 %v1219_v39 }
 0x18f   : > { %2121 = vadd.xlane.f32.xlu1 %v4650_v48 }
 0x193   : > { %1403 = vadd.xlane.f32.xlu1 %v1401_v50 }
 0x197   : > { %1405 = vadd.xlane.f32.xlu1 %v1402_v53 }
 0x19b   : > { %1587 = vadd.xlane.f32.xlu1 %v1584_v56 }
 0x19f   : > { %1769 = vadd.xlane.f32.xlu1 %v1766_v41 }
 0x1a3   : > { %1951 = vadd.xlane.f32.xlu1 %v1948_v58 }
 0x1e3   : > { %v1042_v6 = vpop.xlane.xlu1 %1041 }
 0x1e4   : > { %v1044_v7 = vmul.f32 0.0078125, %v1042_v6 }
 0x1e6   : > { %v1046_v9 = vadd.f32 1e-05, %v1044_v7 }
 0x1e7   : > { %v1224_v11 = vpop.xlane.xlu0 %1223 }
 0x1e8   : > { %3931 = vrsqrt.f32 %v1046_v9  ;;  %v1226_v54 = vmul.f32 0.0078125, %v1224_v11 }
 0x1ea   : > { %v1228_v9 = vadd.f32 1e-05, %v1226_v54 }
 0x1eb   : > { %v2124_v13 = vpop.xlane.xlu0 %2123 }
 0x1ec   : > { %v2126_v16 = vmul.f32 0.0078125, %v2124_v13 }
 0x1ee   : > { %v4693_v18 = vsub.f32 %v4596_v12, %v2126_v16 }
 0x1f0   : > { %v2130_v25 = vmul.f32 %v4693_v18, %v4693_v18 }
 0x1f2   : > { %v3932_v26 = vpop.eup %3931  ;;  %2133 = vadd.xlane.f32.xlu1 %v2130_v25 }
 0x1f3   : > { %v1050_v27 = vmul.f32 %v3932_v26, %v4574_v62  ;;  %v4713_v62 = vpop.permute.xlu1 %815 }
 0x1f5   : > { %v1052_v23 = vmul.f32 %v4588_v8, %v1050_v27 }
 0x1f7   : > { %v1054_v33 = vadd.f32 %v4605_v15, %v1052_v23 }
 0x1f9   : > { %v1055_v34 = vpack.c.bf16 %v1054_v33, %v1053_v31 }
 0x1fb   : > { %3697 = vmatprep.subr.bf16.mxu1 %v1055_v34 }
 0x1fc   : > { %3698 = vmatpush3.bf16.msra.mxu1 %v1055_v34 }
 0x1fd   : > { %3707 = vmatprep.subr.bf16.mxu1 %v4223_v61 }
 0x1ff   : > { %3700 = vmatmul.mubr.msk.bf16.vlgmr.msra.gmra.mrb[0].mxu1 %vm843_vm0, %v4622_v30 }
 0x200   : > { %3703 = vmatprep.mubr.msk.bf16.mxu1 %vm843_vm0, %v4626_v32 }
 0x203   : > { %972 = vperm.xlu1 %3879, %v742_v36  }
 0x207   : > { %3704 = vmatmul.mubr.msk.bf16.gmra.mrb[4].mxu1 %vm843_vm0, %v4635_v24 }
 0x208   : > { %3715 = vmatprep.mubr.msk.bf16.mxu1 %vm4224_vm1, %v4223_v61 }
 0x218   : > { %v1222_v12 = vpop.xlane.xlu1 %1221 }
 0x219   : > { %v1225_v41 = vmul.f32 0.0078125, %v1222_v12 }
 0x21b   : > { %v1227_v14 = vadd.f32 1e-05, %v1225_v41 }
 0x21c   : > { %v2122_v37 = vpop.xlane.xlu1 %2121 }
 0x21d   : > { %v2125_v38 = vmul.f32 0.0078125, %v2122_v37 }
 0x21f   : > { %v4716_v39 = vsub.f32 %v4650_v48, %v2125_v38 }
 0x220   : > { %v1404_v47 = vpop.xlane.xlu1 %1403 }
 0x221   : > { %v2129_v44 = vmul.f32 %v4716_v39, %v4716_v39  ;;  %v1407_v22 = vmul.f32 0.0078125, %v1404_v47 }
 0x223   : > { %2131 = vadd.xlane.f32.xlu0 %v2129_v44  ;;  %v1409_v37 = vadd.f32 1e-05, %v1407_v22  ;;  %v1586_v44 = vpop.xlane.xlu0 %1585 }
 0x224   : > { %v1406_v51 = vpop.xlane.xlu1 %1405 }
 0x225   : > { %v1408_v1 = vmul.f32 0.0078125, %v1406_v51 }
 0x227   : > { %v1410_v11 = vadd.f32 1e-05, %v1408_v1 }
 0x228   : > { %v1588_v34 = vpop.xlane.xlu1 %1587 }
 0x239   : > { %967 = vperm.xlu0 %3878, %v741_v20  }
 0x23a   : > { %v3679_v50 = vpop.f32.mrb[0].mxu0 }
 0x23b   : > { %v899_v52 = vadd.f32 %v3679_v50, %v4677_v42  ;;  %v890_v53 = vpop.f32.mrb[1].mxu0  ;;  %v1590_v50 = vmul.f32 0.0078125, %v1588_v34 }
 0x23c   : > { %v891_v40 = vadd.f32 %v890_v53, %v4679_v60  ;;  %v3680_v56 = vpop.f32.mrb[2].mxu0 }
 0x23d   : > { %v931_v58 = vmul.f32 0.70710677, %v899_v52  ;;  %v902_v48 = vadd.f32 %v3680_v56, %v4682_v43  ;;  %v893_v63 = vpop.f32.mrb[3].mxu0  ;;  %v1589_v56 = vmul.f32 0.0078125, %v1586_v44 }
 0x23e   : > { %v929_v2 = vmul.f32 0.70710677, %v891_v40  ;;  %v894_v6 = vadd.f32 %v893_v63, %v4675_v59  ;;  %v923_v63 = vmul.f32 0.5, %v899_v52 }
 0x23f   : > { %3933 = verf.f32 %v931_v58  ;;  %v932_v7 = vmul.f32 0.70710677, %v902_v48  ;;  %v924_v1 = vmul.f32 0.5, %v902_v48 }
 0x240   : > { %3935 = verf.f32 %v929_v2  ;;  %v930_v13 = vmul.f32 0.70710677, %v894_v6 }
 0x241   : > { %3937 = verf.f32 %v932_v7  ;;  %v1592_v7 = vadd.f32 1e-05, %v1590_v50 }
 0x242   : > { %3939 = verf.f32 %v930_v13  ;;  %v3683_v16 = vpop.f32.mrb[4].mxu0  ;;  %v922_v13 = vmul.f32 0.5, %v894_v6 }
 0x243   : > { %v915_v25 = vadd.f32 %v3683_v16, %v4713_v62  ;;  %v906_v26 = vpop.f32.mrb[5].mxu0  ;;  %3941 = vrsqrt.f32 %v1228_v9  ;;  %v921_v9 = vmul.f32 0.5, %v891_v40 }
 0x244   : > { %v907_v27 = vadd.f32 %v906_v26, %v4684_v0  ;;  %v3684_v28 = vpop.f32.mrb[6].mxu0  ;;  %3943 = vrsqrt.f32 %v1227_v14 }
 0x245   : > { %v935_v23 = vmul.f32 0.70710677, %v915_v25  ;;  %v918_v31 = vadd.f32 %v3684_v28, %v4690_v5  ;;  %v909_v33 = vpop.f32.mrb[7].mxu0  ;;  %3945 = vrsqrt.f32 %v1410_v11  ;;  %v1591_v28 = vadd.f32 1e-05, %v1589_v56 }
 0x246   : > { %v933_v36 = vmul.f32 0.70710677, %v907_v27  ;;  %v910_v12 = vadd.f32 %v909_v33, %v4686_v3  ;;  %v925_v56 = vmul.f32 0.5, %v907_v27 }
 0x247   : > { %3947 = verf.f32 %v935_v23  ;;  %v936_v38 = vmul.f32 0.70710677, %v918_v31  ;;  %v928_v50 = vmul.f32 0.5, %v918_v31 }
 0x248   : > { %3949 = verf.f32 %v933_v36  ;;  %v934_v47 = vmul.f32 0.70710677, %v910_v12 }
 0x249   : > { %v3934_v20 = vpop.eup %3933  ;;  %3951 = verf.f32 %v936_v38 }
 0x24a   : > { %v3936_v51 = vpop.eup %3935  ;;  %v947_v53 = vadd.f32 1.0, %v3934_v20  ;;  %3953 = verf.f32 %v934_v47  ;;  %v927_v20 = vmul.f32 0.5, %v915_v25  ;;  %v1768_v25 = vpop.xlane.xlu0 %1767 }
 0x24b   : > { %v3938_v54 = vpop.eup %3937  ;;  %3955 = vrsqrt.f32 %v1409_v37  ;;  %v945_v41 = vadd.f32 1.0, %v3936_v51 }
 0x24c   : > { %v3940_v58 = vpop.eup %3939  ;;  %v948_v2 = vadd.f32 1.0, %v3938_v54  ;;  %v955_v16 = vmul.f32 %v947_v53, %v923_v63  ;;  %3957 = vrsqrt.f32 %v1592_v7  ;;  %v1770_v63 = vpop.xlane.xlu1 %1769 }
 0x24d   : > { %v946_v14 = vadd.f32 1.0, %v3940_v58  ;;  %v3942_v11 = vpop.eup %3941  ;;  %v953_v23 = vmul.f32 %v945_v41, %v921_v9  ;;  %3959 = vrsqrt.f32 %v1591_v28  ;;  %v926_v41 = vmul.f32 0.5, %v910_v12 }
 0x24e   : > { %v956_v22 = vmul.f32 %v948_v2, %v924_v1  ;;  %v3944_v26 = vpop.eup %3943  ;;  %v1232_v53 = vmul.f32 %v3942_v11, %v4578_v4  ;;  %v1772_v12 = vmul.f32 0.0078125, %v1770_v63 }
 0x24f   : > { %v954_v33 = vmul.f32 %v946_v14, %v922_v13  ;;  %v3946_v34 = vpop.eup %3945  ;;  %v1231_v48 = vmul.f32 %v3944_v26, %v4640_v35 }
 0x250   : > { %v962_v36 = vpack.c.bf16 %v956_v22, %v955_v16  ;;  %v1414_v7 = vmul.f32 %v3946_v34, %v4653_v49  ;;  %v1234_v4 = vmul.f32 %v4588_v8, %v1232_v53  ;;  %v1771_v49 = vmul.f32 0.0078125, %v1768_v25 }
 0x251   : > { %v3948_v38 = vpop.eup %3947  ;;  %v961_v37 = vpack.c.bf16 %v954_v33, %v953_v23  ;;  %v1233_v35 = vmul.f32 %v4588_v8, %v1231_v48  ;;  %v1774_v33 = vadd.f32 1e-05, %v1772_v12 }
 0x252   : > { %v3950_v44 = vpop.eup %3949  ;;  %v951_v52 = vadd.f32 1.0, %v3948_v38  ;;  %v1416_v16 = vmul.f32 %v4588_v8, %v1414_v7  ;;  %v1236_v26 = vadd.f32 %v4605_v15, %v1234_v4 }
 0x253   : > { %v3952_v47 = vpop.eup %3951  ;;  %v949_v40 = vadd.f32 1.0, %v3950_v44  ;;  %3686 = vmatpush3.bf16.msra.mxu0 %v961_v37  ;;  %v1235_v11 = vadd.f32 %v4605_v15, %v1233_v35  ;;  %v1773_v37 = vadd.f32 1e-05, %v1771_v49  ;;  %3961 = vrsqrt.f32 %v1774_v33 }
 0x254   : > { %v3954_v6 = vpop.eup %3953  ;;  %v952_v51 = vadd.f32 1.0, %v3952_v47  ;;  %3687 = vmatprep.subr.bf16.mxu0 %v4223_v61  ;;  %v959_v1 = vmul.f32 %v951_v52, %v927_v20  ;;  %v1950_v20 = vpop.xlane.xlu0 %1949 }
 0x255   : > { %v3956_v54 = vpop.eup %3955  ;;  %v950_v58 = vadd.f32 1.0, %v3954_v6  ;;  %v957_v9 = vmul.f32 %v949_v40, %v925_v56  ;;  %v1237_v34 = vpack.c.bf16 %v1236_v26, %v1235_v11  ;;  %3963 = vrsqrt.f32 %v1773_v37  ;;  %v1952_v40 = vpop.xlane.xlu1 %1951 }
 0x256   : > { %v960_v2 = vmul.f32 %v952_v51, %v928_v50  ;;  %v1413_v27 = vmul.f32 %v3956_v54, %v4645_v45  ;;  %v3958_v22 = vpop.eup %3957  ;;  %v1418_v45 = vadd.f32 %v4605_v15, %v1416_v16  ;;  %v1954_v50 = vmul.f32 0.0078125, %v1952_v40 }
 0x257   : > { %v958_v13 = vmul.f32 %v950_v58, %v926_v41  ;;  %3688 = vmatpush3.bf16.msra.mxu0 %v962_v36  ;;  %v3960_v23 = vpop.eup %3959  ;;  %v4743_v36 = vld [vmem:[%s4344_s16] sm:$0xff]   ;;  %v1596_v38 = vmul.f32 %v3958_v22, %v4659_v21  ;;  %v1953_v54 = vmul.f32 0.0078125, %v1950_v20 }
 0x258   : > { %v964_v31 = vpack.c.bf16 %v960_v2, %v959_v1  ;;  %3689 = vmatprep.subr.bf16.mxu0 %v4223_v61  ;;  %v1415_v28 = vmul.f32 %v4588_v8, %v1413_v27  ;;  %v1595_v52 = vmul.f32 %v3960_v23, %v4591_v10  ;;  %v1956_v41 = vadd.f32 1e-05, %v1954_v50 }
 0x259   : > { %v963_v14 = vpack.c.bf16 %v958_v13, %v957_v9  ;;  %v1598_v47 = vmul.f32 %v4588_v8, %v1596_v38  ;;  %v1955_v63 = vadd.f32 1e-05, %v1953_v54 }
 0x25a   : > { %v1417_v44 = vadd.f32 %v4605_v15, %v1415_v28  ;;  %v1597_v21 = vmul.f32 %v4588_v8, %v1595_v52  ;;  %3965 = vrsqrt.f32 %v1956_v41 }
 0x25b   : > { %3690 = vmatpush3.bf16.msra.mxu0 %v963_v14  ;;  %v1600_v6 = vadd.f32 %v4605_v15, %v1598_v47  ;;  %3967 = vrsqrt.f32 %v1955_v63 }
 0x25c   : > { %3691 = vmatprep.subr.bf16.mxu0 %v4223_v61  ;;  %v1419_v48 = vpack.c.bf16 %v1418_v45, %v1417_v44  ;;  %v1599_v10 = vadd.f32 %v4605_v15, %v1597_v21 }
 0x25d   : > { %v3962_v53 = vpop.eup %3961 }
 0x25e   : > { %v1601_v51 = vpack.c.bf16 %v1600_v6, %v1599_v10  ;;  %v1778_v58 = vmul.f32 %v3962_v53, %v4664_v55 }
 0x25f   : > { %3692 = vmatpush3.bf16.msra.mxu0 %v964_v31  ;;  %v3964_v56 = vpop.eup %3963 }
 0x260   : > { %3719 = vmatprep.subr.bf16.mxu0 %v1237_v34  ;;  %v1777_v1 = vmul.f32 %v3964_v56, %v4609_v19  ;;  %v1780_v2 = vmul.f32 %v4588_v8, %v1778_v58 }
 0x262   : > { %3694 = vmatmul.mubr.msk.bf16.vlgmr.msra.gmra.mrb[8].mxu0 %vm980_vm2, %v4743_v36  ;;  %v1779_v35 = vmul.f32 %v4588_v8, %v1777_v1  ;;  %v1782_v7 = vadd.f32 %v4605_v15, %v1780_v2 }
 0x263   : > { %3720 = vmatpush3.bf16.msra.mxu0 %v1237_v34  ;;  %3721 = vmatprep.mubr.msk.bf16.mxu0 %vm843_vm0, %v4564_v46 }
 0x264   : > { %3741 = vmatprep.subr.bf16.mxu0 %v1419_v48  ;;  %v1781_v9 = vadd.f32 %v4605_v15, %v1779_v35  ;;  %v3966_v55 = vpop.eup %3965 }
 0x265   : > { %v3968_v13 = vpop.eup %3967  ;;  %v1960_v25 = vmul.f32 %v3966_v55, %v4669_v57 }
 0x266   : > { %v1783_v19 = vpack.c.bf16 %v1782_v7, %v1781_v9  ;;  %v1959_v31 = vmul.f32 %v3968_v13, %v4617_v29 }
 0x267   : > { %v1962_v4 = vmul.f32 %v4588_v8, %v1960_v25 }
 0x268   : > { %v1961_v27 = vmul.f32 %v4588_v8, %v1959_v31 }
 0x269   : > { %v1964_v12 = vadd.f32 %v4605_v15, %v1962_v4 }
 0x26a   : > { %3722 = vmatmul.mubr.msk.bf16.vlgmr.msra.gmra.mrb[12].mxu0 %vm843_vm0, %v4622_v30  ;;  %v1963_v14 = vadd.f32 %v4605_v15, %v1961_v27 }
 0x26b   : > { %3742 = vmatpush3.bf16.msra.mxu0 %v1419_v48  ;;  %3725 = vmatprep.mubr.msk.bf16.mxu0 %vm843_vm0, %v4626_v32 }
 0x26c   : > { %3763 = vmatprep.subr.bf16.mxu0 %v1601_v51  ;;  %v1965_v57 = vpack.c.bf16 %v1964_v12, %v1963_v14 }
 0x272   : > { %3726 = vmatmul.mubr.msk.bf16.gmra.mrb[16].mxu0 %vm843_vm0, %v4635_v24 }
 0x273   : > { %3743 = vmatprep.mubr.msk.bf16.mxu0 %vm843_vm0, %v4564_v46 }
 0x27a   : > { %3744 = vmatmul.mubr.msk.bf16.vlgmr.msra.gmra.mrb[20].mxu0 %vm843_vm0, %v4622_v30 }
 0x27b   : > { %3764 = vmatpush3.bf16.msra.mxu0 %v1601_v51  ;;  %3747 = vmatprep.mubr.msk.bf16.mxu0 %vm843_vm0, %v4626_v32 }
 0x27c   : > { %3785 = vmatprep.subr.bf16.mxu0 %v1783_v19 }
 0x27f   : > { %v2134_v29 = vpop.xlane.xlu1 %2133 }
 0x280   : > { %v2136_v11 = vmul.f32 0.0078125, %v2134_v29 }
 0x282   : > { %3748 = vmatmul.mubr.msk.bf16.gmra.mrb[24].mxu0 %vm843_vm0, %v4635_v24  ;;  %v2138_v16 = vadd.f32 1e-05, %v2136_v11 }
 0x283   : > { %3765 = vmatprep.mubr.msk.bf16.mxu0 %vm843_vm0, %v4564_v46 }
 0x284   : > { %3969 = vrsqrt.f32 %v2138_v16 }
 0x28a   : > { %3766 = vmatmul.mubr.msk.bf16.vlgmr.msra.gmra.mrb[28].mxu0 %vm843_vm0, %v4622_v30 }
 0x28b   : > { %3786 = vmatpush3.bf16.msra.mxu0 %v1783_v19  ;;  %3769 = vmatprep.mubr.msk.bf16.mxu0 %vm843_vm0, %v4626_v32 }
 0x28c   : > { %3807 = vmatprep.subr.bf16.mxu0 %v1965_v57 }
 0x28e   : > { %v3970_v28 = vpop.eup %3969 }
 0x28f   : > { %v2142_v23 = vmul.f32 %v3970_v28, %v4693_v18 }
 0x291   : > { %v2144_v45 = vmul.f32 %v4588_v8, %v2142_v23 }
 0x292   : > { %3770 = vmatmul.mubr.msk.bf16.gmra.mrb[32].mxu0 %vm843_vm0, %v4635_v24 }
 0x293   : > { %3787 = vmatprep.mubr.msk.bf16.mxu0 %vm843_vm0, %v4564_v46  ;;  %v2146_v44 = vadd.f32 %v4605_v15, %v2144_v45 }
 0x29a   : > { %3788 = vmatmul.mubr.msk.bf16.vlgmr.msra.gmra.mrb[36].mxu0 %vm843_vm0, %v4622_v30 }
 0x29b   : > { %3808 = vmatpush3.bf16.msra.mxu0 %v1965_v57  ;;  %3791 = vmatprep.mubr.msk.bf16.mxu0 %vm843_vm0, %v4626_v32 }
 0x2a2   : > { %3792 = vmatmul.mubr.msk.bf16.gmra.mrb[40].mxu0 %vm843_vm0, %v4635_v24 }
 0x2a3   : > { %3809 = vmatprep.mubr.msk.bf16.mxu0 %vm843_vm0, %v4564_v46 }
 0x2aa   : > { %3810 = vmatmul.mubr.msk.bf16.vlgmr.msra.gmra.mrb[44].mxu0 %vm843_vm0, %v4622_v30 }
 0x2ab   : > { %3813 = vmatprep.mubr.msk.bf16.mxu0 %vm843_vm0, %v4626_v32 }
 0x2b0   : > { %v2132_v22 = vpop.xlane.xlu0 %2131 }
 0x2b1   : > { %v2135_v49 = vmul.f32 0.0078125, %v2132_v22 }
 0x2b2   : > { %3814 = vmatmul.mubr.msk.bf16.gmra.mrb[48].mxu0 %vm843_vm0, %v4635_v24 }
 0x2b3   : > { %v2137_v26 = vadd.f32 1e-05, %v2135_v49  ;;  %3831 = vmatprep.mubr.msk.bf16.mxu0 %vm843_vm0, %v4564_v46 }
 0x2b5   : > { %3971 = vrsqrt.f32 %v2137_v26 }
 0x2bf   : > { %v3972_v33 = vpop.eup %3971 }
 0x2c0   : > { %v2141_v34 = vmul.f32 %v3972_v33, %v4716_v39 }
 0x2c2   : > { %v2143_v38 = vmul.f32 %v4588_v8, %v2141_v34 }
 0x2c4   : > { %v2145_v37 = vadd.f32 %v4605_v15, %v2143_v38 }
 0x2c6   : > { %v2147_v52 = vpack.c.bf16 %v2146_v44, %v2145_v37 }
 0x2c8   : > { %3829 = vmatprep.subr.bf16.mxu0 %v2147_v52 }
 0x2c9   : > { %3830 = vmatpush3.bf16.msra.mxu0 %v2147_v52 }
 0x2cc   : > { %3832 = vmatmul.mubr.msk.bf16.vlgmr.msra.gmra.mrb[52].mxu0 %vm843_vm0, %v4622_v30 }
 0x2cd   : > { %3835 = vmatprep.mubr.msk.bf16.mxu0 %vm843_vm0, %v4626_v32 }
 0x2d2   : > { %v3701_v46 = vpop.f32.mrb[0].mxu1 }
 0x2d3   : > { %v1099_v18 = vadd.f32 %v3701_v46, %v4677_v42  ;;  %v1090_v39 = vpop.f32.mrb[1].mxu1 }
 0x2d4   : > { %v1091_v48 = vadd.f32 %v1090_v39, %v4679_v60  ;;  %v3702_v8 = vpop.f32.mrb[2].mxu1  ;;  %3836 = vmatmul.mubr.msk.bf16.gmra.mrb[56].mxu0 %vm843_vm0, %v4635_v24 }
 0x2d5   : > { %v1131_v15 = vmul.f32 0.70710677, %v1099_v18  ;;  %v1102_v47 = vadd.f32 %v3702_v8, %v4682_v43  ;;  %v1093_v21 = vpop.f32.mrb[3].mxu1  ;;  %2722 = vmatprep.mubr.bf16.mxu0 %v4222_v17  ;;  %v1123_v13 = vmul.f32 0.5, %v1099_v18 }
 0x2d6   : > { %v1129_v30 = vmul.f32 0.70710677, %v1091_v48  ;;  %v1094_v40 = vadd.f32 %v1093_v21, %v4675_v59  ;;  %v1121_v4 = vmul.f32 0.5, %v1091_v48  ;;  %v4838_v21 = vpop.permute.xlu0 %967 }
 0x2d7   : > { %3973 = verf.f32 %v1131_v15  ;;  %v1132_v32 = vmul.f32 0.70710677, %v1102_v47  ;;  %v1124_v25 = vmul.f32 0.5, %v1102_v47 }
 0x2d8   : > { %3975 = verf.f32 %v1129_v30  ;;  %v1130_v6 = vmul.f32 0.70710677, %v1094_v40  ;;  %v1122_v27 = vmul.f32 0.5, %v1094_v40 }
 0x2d9   : > { %3977 = verf.f32 %v1132_v32 }
 0x2da   : > { %3979 = verf.f32 %v1130_v6  ;;  %v3705_v20 = vpop.f32.mrb[4].mxu1  ;;  %v4841_v6 = vpop.permute.xlu1 %972 }
 0x2db   : > { %v1115_v10 = vadd.f32 %v3705_v20, %v4713_v62  ;;  %v1106_v50 = vpop.f32.mrb[5].mxu1 }
 0x2dc   : > { %v1107_v24 = vadd.f32 %v1106_v50, %v4684_v0  ;;  %v3706_v51 = vpop.f32.mrb[6].mxu1 }
 0x2dd   : > { %v1135_v53 = vmul.f32 0.70710677, %v1115_v10  ;;  %v1118_v54 = vadd.f32 %v3706_v51, %v4690_v5  ;;  %v1109_v56 = vpop.f32.mrb[7].mxu1  ;;  %v1127_v45 = vmul.f32 0.5, %v1115_v10  ;;  %v4181_v10 = vld [vmem:[%s5497_s13] sm:$0xff] }
 0x2de   : > { %v1133_v41 = vmul.f32 0.70710677, %v1107_v24  ;;  %v1110_v58 = vadd.f32 %v1109_v56, %v4686_v3  ;;  %v1125_v44 = vmul.f32 0.5, %v1107_v24 }
 0x2df   : > { %3981 = verf.f32 %v1135_v53  ;;  %v1136_v63 = vmul.f32 0.70710677, %v1118_v54  ;;  %v1128_v38 = vmul.f32 0.5, %v1118_v54  ;;  %v4182_v53 = vld [vmem:[%s5497_s13 + $0x8] sm:$0xff] }
 0x2e0   : > { %3983 = verf.f32 %v1133_v41  ;;  %v1134_v1 = vmul.f32 0.70710677, %v1110_v58  ;;  %v1126_v52 = vmul.f32 0.5, %v1110_v58 }
 0x2e1   : > { %v3974_v2 = vpop.eup %3973  ;;  %3985 = verf.f32 %v1136_v63 }
 0x2e2   : > { %v3976_v35 = vpop.eup %3975  ;;  %v1147_v7 = vadd.f32 1.0, %v3974_v2  ;;  %3987 = verf.f32 %v1134_v1 }
 0x2e3   : > { %v3978_v9 = vpop.eup %3977  ;;  %v1145_v19 = vadd.f32 1.0, %v3976_v35 }
 0x2e4   : > { %v3980_v55 = vpop.eup %3979  ;;  %v1148_v31 = vadd.f32 1.0, %v3978_v9  ;;  %v1155_v14 = vmul.f32 %v1147_v7, %v1123_v13 }
 0x2e5   : > { %v1146_v12 = vadd.f32 1.0, %v3980_v55  ;;  %v1153_v29 = vmul.f32 %v1145_v19, %v1121_v4 }
 0x2e6   : > { %v1156_v57 = vmul.f32 %v1148_v31, %v1124_v25 }
 0x2e7   : > { %v1154_v11 = vmul.f32 %v1146_v12, %v1122_v27 }
 0x2e8   : > { %v1162_v16 = vpack.c.bf16 %v1156_v57, %v1155_v14 }
 0x2e9   : > { %v3982_v22 = vpop.eup %3981  ;;  %v1161_v49 = vpack.c.bf16 %v1154_v11, %v1153_v29 }
 0x2ea   : > { %v3984_v26 = vpop.eup %3983  ;;  %v1151_v28 = vadd.f32 1.0, %v3982_v22 }
 0x2eb   : > { %v3986_v23 = vpop.eup %3985  ;;  %v1149_v33 = vadd.f32 1.0, %v3984_v26  ;;  %3708 = vmatpush3.bf16.msra.mxu1 %v1161_v49 }
 0x2ec   : > { %v3988_v34 = vpop.eup %3987  ;;  %v1152_v37 = vadd.f32 1.0, %v3986_v23  ;;  %3709 = vmatprep.subr.bf16.mxu1 %v4223_v61  ;;  %v1159_v18 = vmul.f32 %v1151_v28, %v1127_v45 }
 0x2ed   : > { %v1150_v46 = vadd.f32 1.0, %v3988_v34  ;;  %v1157_v48 = vmul.f32 %v1149_v33, %v1125_v44 }
 0x2ee   : > { %v1160_v39 = vmul.f32 %v1152_v37, %v1128_v38 }
 0x2ef   : > { %v1158_v8 = vmul.f32 %v1150_v46, %v1126_v52  ;;  %3710 = vmatpush3.bf16.msra.mxu1 %v1162_v16 }
 0x2f0   : > { %v1164_v15 = vpack.c.bf16 %v1160_v39, %v1159_v18  ;;  %3711 = vmatprep.subr.bf16.mxu1 %v4223_v61 }
 0x2f1   : > { %v1163_v47 = vpack.c.bf16 %v1158_v8, %v1157_v48 }
 0x2f3   : > { %3712 = vmatpush3.bf16.msra.mxu1 %v1163_v47 }
 0x2f4   : > { %3713 = vmatprep.subr.bf16.mxu1 %v4223_v61 }
 0x2f7   : > { %3714 = vmatpush3.bf16.msra.mxu1 %v1164_v15 }
 0x2f8   : > { %3729 = vmatprep.subr.bf16.mxu1 %v4223_v61 }
 0x2fa   : > { %3716 = vmatmul.mubr.msk.bf16.vlgmr.msra.gmra.mrb[8].mxu1 %vm980_vm2, %v4743_v36 }
 0x2fb   : > { %3737 = vmatprep.mubr.msk.bf16.mxu1 %vm4224_vm1, %v4223_v61 }
 0x335   : > { %v1018_v30 = vpop.f32.mrb[8].mxu0 }
 0x336   : > { %v1019_v40 = vadd.f32 %v1018_v30, %v4838_v21  ;;  %v3695_v32 = vpop.f32.mrb[9].mxu0 }
 0x337   : > { %v1021_v20 = vpop.f32.mrb[10].mxu0 }
 0x338   : > { %v4846_v50 = vadd.f32 %v4181_v10, %v1019_v40  ;;  %v1022_v24 = vadd.f32 %v1021_v20, %v4841_v6  ;;  %v3696_v51 = vpop.f32.mrb[11].mxu0 }
 0x33a   : > { %v4852_v54 = vadd.f32 %v4182_v53, %v1022_v24  ;;  %2371 = vadd.xlane.f32.xlu1 %v4846_v50 }
 0x33c   : > { %2373 = vadd.xlane.f32.xlu0 %v4852_v54 }
 0x33d   : > { %v3723_v56 = vpop.f32.mrb[12].mxu0 }
 0x33e   : > { %v1281_v41 = vadd.f32 %v3723_v56, %v4677_v42  ;;  %v1272_v58 = vpop.f32.mrb[13].mxu0 }
 0x33f   : > { %v1273_v63 = vadd.f32 %v1272_v58, %v4679_v60  ;;  %v3724_v1 = vpop.f32.mrb[14].mxu0 }
 0x340   : > { %v1313_v2 = vmul.f32 0.70710677, %v1281_v41  ;;  %v1284_v35 = vadd.f32 %v3724_v1, %v4682_v43  ;;  %v1275_v7 = vpop.f32.mrb[15].mxu0  ;;  %v1305_v52 = vmul.f32 0.5, %v1281_v41 }
 0x341   : > { %v1311_v9 = vmul.f32 0.70710677, %v1273_v63  ;;  %v1276_v19 = vadd.f32 %v1275_v7, %v4675_v59  ;;  %v1303_v8 = vmul.f32 0.5, %v1273_v63 }
 0x342   : > { %3989 = verf.f32 %v1313_v2  ;;  %v1314_v55 = vmul.f32 0.70710677, %v1284_v35  ;;  %v1306_v46 = vmul.f32 0.5, %v1284_v35 }
 0x343   : > { %3991 = verf.f32 %v1311_v9  ;;  %v1312_v13 = vmul.f32 0.70710677, %v1276_v19  ;;  %v1304_v15 = vmul.f32 0.5, %v1276_v19 }
 0x344   : > { %3993 = verf.f32 %v1314_v55 }
 0x345   : > { %3995 = verf.f32 %v1312_v13  ;;  %v3727_v25 = vpop.f32.mrb[16].mxu0 }
 0x346   : > { %v1297_v31 = vadd.f32 %v3727_v25, %v4713_v62  ;;  %v1288_v4 = vpop.f32.mrb[17].mxu0 }
 0x347   : > { %v1289_v27 = vadd.f32 %v1288_v4, %v4684_v0  ;;  %v3728_v12 = vpop.f32.mrb[18].mxu0 }
 0x348   : > { %v1317_v14 = vmul.f32 0.70710677, %v1297_v31  ;;  %v1300_v57 = vadd.f32 %v3728_v12, %v4690_v5  ;;  %v1291_v29 = vpop.f32.mrb[19].mxu0  ;;  %v1309_v12 = vmul.f32 0.5, %v1297_v31 }
 0x349   : > { %v1315_v11 = vmul.f32 0.70710677, %v1289_v27  ;;  %v1292_v16 = vadd.f32 %v1291_v29, %v4686_v3 }
 0x34a   : > { %3997 = verf.f32 %v1317_v14  ;;  %v1318_v22 = vmul.f32 0.70710677, %v1300_v57  ;;  %v1310_v14 = vmul.f32 0.5, %v1300_v57 }
 0x34b   : > { %3999 = verf.f32 %v1315_v11  ;;  %v1316_v49 = vmul.f32 0.70710677, %v1292_v16 }
 0x34c   : > { %v3990_v26 = vpop.eup %3989  ;;  %4001 = verf.f32 %v1318_v22 }
 0x34d   : > { %v3992_v28 = vpop.eup %3991  ;;  %v1329_v23 = vadd.f32 1.0, %v3990_v26  ;;  %4003 = verf.f32 %v1316_v49  ;;  %v3745_v33 = vpop.f32.mrb[20].mxu0  ;;  %v1307_v49 = vmul.f32 0.5, %v1289_v27  ;;  %v1308_v26 = vmul.f32 0.5, %v1292_v16 }
 0x34e   : > { %v3994_v34 = vpop.eup %3993  ;;  %v1327_v45 = vadd.f32 1.0, %v3992_v28  ;;  %v4865_v38 = vadd.f32 %v3745_v33, %v4677_v42  ;;  %v1454_v37 = vpop.f32.mrb[21].mxu0 }
 0x34f   : > { %v3996_v44 = vpop.eup %3995  ;;  %v1330_v18 = vadd.f32 1.0, %v3994_v34  ;;  %v4868_v39 = vadd.f32 %v1454_v37, %v4679_v60  ;;  %v3746_v48 = vpop.f32.mrb[22].mxu0  ;;  %v1337_v32 = vmul.f32 %v1329_v23, %v1305_v52 }
 0x350   : > { %v1328_v47 = vadd.f32 1.0, %v3996_v44  ;;  %v1495_v30 = vmul.f32 0.70710677, %v4865_v38  ;;  %v1457_v40 = vpop.f32.mrb[23].mxu0  ;;  %v4873_v24 = vadd.f32 %v3746_v48, %v4682_v43  ;;  %v1335_v51 = vmul.f32 %v1327_v45, %v1303_v8 }
 0x351   : > { %v1338_v20 = vmul.f32 %v1330_v18, %v1306_v46  ;;  %v1493_v10 = vmul.f32 0.70710677, %v4868_v39  ;;  %v4876_v56 = vadd.f32 %v1457_v40, %v4675_v59 }
 0x352   : > { %v1336_v53 = vmul.f32 %v1328_v47, %v1304_v15  ;;  %4005 = verf.f32 %v1495_v30  ;;  %v1496_v58 = vmul.f32 0.70710677, %v4873_v24 }
 0x353   : > { %v1344_v41 = vpack.c.bf16 %v1338_v20, %v1337_v32  ;;  %4007 = verf.f32 %v1493_v10  ;;  %v1494_v2 = vmul.f32 0.70710677, %v4876_v56  ;;  %v1487_v20 = vmul.f32 0.5, %v4865_v38 }
 0x354   : > { %v3998_v63 = vpop.eup %3997  ;;  %v1343_v1 = vpack.c.bf16 %v1336_v53, %v1335_v51  ;;  %4009 = verf.f32 %v1496_v58  ;;  %v1485_v58 = vmul.f32 0.5, %v4868_v39 }
 0x355   : > { %v4000_v35 = vpop.eup %3999  ;;  %v1333_v7 = vadd.f32 1.0, %v3998_v63  ;;  %v3749_v9 = vpop.f32.mrb[24].mxu0  ;;  %4011 = verf.f32 %v1494_v2  ;;  %v1488_v63 = vmul.f32 0.5, %v4873_v24 }
 0x356   : > { %v4002_v19 = vpop.eup %4001  ;;  %v1331_v55 = vadd.f32 1.0, %v4000_v35  ;;  %v4881_v13 = vadd.f32 %v3749_v9, %v4713_v62  ;;  %3730 = vmatpush3.bf16.msra.mxu1 %v1343_v1  ;;  %v1470_v25 = vpop.f32.mrb[25].mxu0 }
 0x357   : > { %v4004_v4 = vpop.eup %4003  ;;  %v1334_v29 = vadd.f32 1.0, %v4002_v19  ;;  %v4884_v11 = vadd.f32 %v1470_v25, %v4684_v0  ;;  %v3750_v22 = vpop.f32.mrb[26].mxu0  ;;  %3731 = vmatprep.subr.bf16.mxu1 %v4223_v61  ;;  %v1341_v34 = vmul.f32 %v1333_v7, %v1309_v12  ;;  %v1486_v7 = vmul.f32 0.5, %v4876_v56 }
 0x358   : > { %v1332_v28 = vadd.f32 1.0, %v4004_v4  ;;  %v1499_v23 = vmul.f32 0.70710677, %v4881_v13  ;;  %v1473_v33 = vpop.f32.mrb[27].mxu0  ;;  %v4890_v31 = vadd.f32 %v3750_v22, %v4690_v5  ;;  %v1339_v57 = vmul.f32 %v1331_v55, %v1307_v49 }
 0x359   : > { %v1342_v45 = vmul.f32 %v1334_v29, %v1310_v14  ;;  %v1497_v37 = vmul.f32 0.70710677, %v4884_v11  ;;  %v4893_v52 = vadd.f32 %v1473_v33, %v4686_v3 }
 0x35a   : > { %v1340_v44 = vmul.f32 %v1332_v28, %v1308_v26  ;;  %4013 = verf.f32 %v1499_v23  ;;  %3732 = vmatpush3.bf16.msra.mxu1 %v1344_v41  ;;  %v1500_v16 = vmul.f32 0.70710677, %v4890_v31 }
 0x35b   : > { %v1346_v27 = vpack.c.bf16 %v1342_v45, %v1341_v34  ;;  %4015 = verf.f32 %v1497_v37  ;;  %3733 = vmatprep.subr.bf16.mxu1 %v4223_v61  ;;  %v1498_v48 = vmul.f32 0.70710677, %v4893_v52  ;;  %v1491_v45 = vmul.f32 0.5, %v4881_v13 }
 0x35c   : > { %v4006_v46 = vpop.eup %4005  ;;  %v1345_v18 = vpack.c.bf16 %v1340_v44, %v1339_v57  ;;  %4017 = verf.f32 %v1500_v16  ;;  %v1489_v16 = vmul.f32 0.5, %v4884_v11 }
 0x35d   : > { %v4008_v8 = vpop.eup %4007  ;;  %v3767_v15 = vpop.f32.mrb[28].mxu0  ;;  %v1511_v47 = vadd.f32 1.0, %v4006_v46  ;;  %4019 = verf.f32 %v1498_v48  ;;  %v1492_v46 = vmul.f32 0.5, %v4890_v31 }
 0x35e   : > { %v4899_v30 = vadd.f32 %v3767_v15, %v4677_v42  ;;  %3734 = vmatpush3.bf16.msra.mxu1 %v1345_v18  ;;  %v1636_v40 = vpop.f32.mrb[29].mxu0  ;;  %v4010_v32 = vpop.eup %4009  ;;  %v1509_v10 = vadd.f32 1.0, %v4008_v8  ;;  %v1490_v15 = vmul.f32 0.5, %v4893_v52 }
 0x35f   : > { %v4903_v51 = vadd.f32 %v1636_v40, %v4679_v60  ;;  %v3768_v53 = vpop.f32.mrb[30].mxu0  ;;  %3735 = vmatprep.subr.bf16.mxu1 %v4223_v61  ;;  %v4012_v41 = vpop.eup %4011  ;;  %v1512_v1 = vadd.f32 1.0, %v4010_v32  ;;  %v1519_v55 = vmul.f32 %v1511_v47, %v1487_v20 }
 0x360   : > { %v1677_v2 = vmul.f32 0.70710677, %v4899_v30  ;;  %v1639_v35 = vpop.f32.mrb[31].mxu0  ;;  %v1510_v9 = vadd.f32 1.0, %v4012_v41  ;;  %v4912_v19 = vadd.f32 %v3768_v53, %v4682_v43  ;;  %v1517_v39 = vmul.f32 %v1509_v10, %v1485_v58 }
 0x361   : > { %v1675_v38 = vmul.f32 0.70710677, %v4903_v51  ;;  %v1520_v25 = vmul.f32 %v1512_v1, %v1488_v63  ;;  %v4915_v4 = vadd.f32 %v1639_v35, %v4675_v59 }
 0x362   : > { %4021 = verf.f32 %v1677_v2  ;;  %3736 = vmatpush3.bf16.msra.mxu1 %v1346_v27  ;;  %v1518_v24 = vmul.f32 %v1510_v9, %v1486_v7  ;;  %v1678_v12 = vmul.f32 0.70710677, %v4912_v19 }
 0x363   : > { %4023 = verf.f32 %v1675_v38  ;;  %3751 = vmatprep.subr.bf16.mxu1 %v4223_v61  ;;  %v1526_v14 = vpack.c.bf16 %v1520_v25, %v1519_v55  ;;  %v1676_v29 = vmul.f32 0.70710677, %v4915_v4  ;;  %v1669_v55 = vmul.f32 0.5, %v4899_v30 }
 0x364   : > { %v4014_v56 = vpop.eup %4013  ;;  %v1525_v49 = vpack.c.bf16 %v1518_v24, %v1517_v39  ;;  %4025 = verf.f32 %v1678_v12 }
 0x365   : > { %v4016_v22 = vpop.eup %4015  ;;  %3738 = vmatmul.mubr.msk.bf16.vlgmr.msra.gmra.mrb[12].mxu1 %vm980_vm2, %v4743_v36  ;;  %v3771_v26 = vpop.f32.mrb[32].mxu0  ;;  %v1515_v28 = vadd.f32 1.0, %v4014_v56  ;;  %4027 = verf.f32 %v1676_v29  ;;  %v1667_v56 = vmul.f32 0.5, %v4903_v51 }
 0x366   : > { %v4923_v23 = vadd.f32 %v3771_v26, %v4713_v62  ;;  %v1652_v33 = vpop.f32.mrb[33].mxu0  ;;  %3759 = vmatprep.mubr.msk.bf16.mxu1 %vm4224_vm1, %v4223_v61  ;;  %v4018_v34 = vpop.eup %4017  ;;  %v1513_v37 = vadd.f32 1.0, %v4016_v22  ;;  %3752 = vmatpush3.bf16.msra.mxu1 %v1525_v49  ;;  %v1668_v26 = vmul.f32 0.5, %v4915_v4 }
 0x367   : > { %v4929_v57 = vadd.f32 %v1652_v33, %v4684_v0  ;;  %v3772_v44 = vpop.f32.mrb[34].mxu0  ;;  %v4020_v27 = vpop.eup %4019  ;;  %v1516_v18 = vadd.f32 1.0, %v4018_v34  ;;  %3753 = vmatprep.subr.bf16.mxu1 %v4223_v61  ;;  %v1523_v32 = vmul.f32 %v1515_v28, %v1491_v45 }
 0x368   : > { %v1681_v48 = vmul.f32 0.70710677, %v4923_v23  ;;  %v1655_v8 = vpop.f32.mrb[35].mxu0  ;;  %v1514_v13 = vadd.f32 1.0, %v4020_v27  ;;  %v4938_v40 = vadd.f32 %v3772_v44, %v4690_v5  ;;  %v1521_v31 = vmul.f32 %v1513_v37, %v1489_v16 }
 0x369   : > { %v1679_v47 = vmul.f32 0.70710677, %v4929_v57  ;;  %v1524_v20 = vmul.f32 %v1516_v18, %v1492_v46  ;;  %v4941_v11 = vadd.f32 %v1655_v8, %v4686_v3 }
 0x36a   : > { %4029 = verf.f32 %v1681_v48  ;;  %v1522_v10 = vmul.f32 %v1514_v13, %v1490_v15  ;;  %v1682_v53 = vmul.f32 0.70710677, %v4938_v40  ;;  %3754 = vmatpush3.bf16.msra.mxu1 %v1526_v14  ;;  %v1670_v14 = vmul.f32 0.5, %v4912_v19 }
 0x36b   : > { %4031 = verf.f32 %v1679_v47  ;;  %v1528_v52 = vpack.c.bf16 %v1524_v20, %v1523_v32  ;;  %v1680_v58 = vmul.f32 0.70710677, %v4941_v11  ;;  %3755 = vmatprep.subr.bf16.mxu1 %v4223_v61  ;;  %v1673_v32 = vmul.f32 0.5, %v4923_v23 }
 0x36c   : > { %v4022_v41 = vpop.eup %4021  ;;  %v1527_v1 = vpack.c.bf16 %v1522_v10, %v1521_v31  ;;  %4033 = verf.f32 %v1682_v53  ;;  %v1672_v23 = vmul.f32 0.5, %v4941_v11 }
 0x36d   : > { %v4024_v63 = vpop.eup %4023  ;;  %v3789_v2 = vpop.f32.mrb[36].mxu0  ;;  %v1693_v35 = vadd.f32 1.0, %v4022_v41  ;;  %4035 = verf.f32 %v1680_v58  ;;  %v1671_v41 = vmul.f32 0.5, %v4929_v57 }
 0x36e   : > { %v4947_v7 = vadd.f32 %v3789_v2, %v4677_v42  ;;  %v1818_v9 = vpop.f32.mrb[37].mxu0  ;;  %v4026_v38 = vpop.eup %4025  ;;  %v1691_v25 = vadd.f32 1.0, %v4024_v63  ;;  %3756 = vmatpush3.bf16.msra.mxu1 %v1527_v1 }
 0x36f   : > { %v4951_v39 = vadd.f32 %v1818_v9, %v4679_v60  ;;  %v3790_v24 = vpop.f32.mrb[38].mxu0  ;;  %v4028_v12 = vpop.eup %4027  ;;  %v1694_v29 = vadd.f32 1.0, %v4026_v38  ;;  %3757 = vmatprep.subr.bf16.mxu1 %v4223_v61  ;;  %v1701_v34 = vmul.f32 %v1693_v35, %v1669_v55 }
 0x370   : > { %v1859_v22 = vmul.f32 0.70710677, %v4947_v7  ;;  %v1821_v49 = vpop.f32.mrb[39].mxu0  ;;  %v1692_v30 = vadd.f32 1.0, %v4028_v12  ;;  %v4960_v33 = vadd.f32 %v3790_v24, %v4682_v43  ;;  %v1699_v19 = vmul.f32 %v1691_v25, %v1667_v56 }
 0x371   : > { %v1857_v28 = vmul.f32 0.70710677, %v4951_v39  ;;  %v1702_v45 = vmul.f32 %v1694_v29, %v1670_v14  ;;  %v4963_v51 = vadd.f32 %v1821_v49, %v4675_v59 }
 0x372   : > { %4037 = verf.f32 %v1859_v22  ;;  %v1700_v37 = vmul.f32 %v1692_v30, %v1668_v26  ;;  %v1860_v44 = vmul.f32 0.70710677, %v4960_v33  ;;  %3758 = vmatpush3.bf16.msra.mxu1 %v1528_v52  ;;  %v1674_v52 = vmul.f32 0.5, %v4938_v40 }
 0x373   : > { %4039 = verf.f32 %v1857_v28  ;;  %v1708_v4 = vpack.c.bf16 %v1702_v45, %v1701_v34  ;;  %v1858_v16 = vmul.f32 0.70710677, %v4963_v51  ;;  %3773 = vmatprep.subr.bf16.mxu1 %v4223_v61  ;;  %v1851_v34 = vmul.f32 0.5, %v4947_v7 }
 0x374   : > { %v4030_v27 = vpop.eup %4029  ;;  %v1707_v18 = vpack.c.bf16 %v1700_v37, %v1699_v19  ;;  %4041 = verf.f32 %v1860_v44 }
 0x375   : > { %v4032_v46 = vpop.eup %4031  ;;  %v3793_v48 = vpop.f32.mrb[40].mxu0  ;;  %v1697_v8 = vadd.f32 1.0, %v4030_v27  ;;  %4043 = verf.f32 %v1858_v16  ;;  %3760 = vmatmul.mubr.msk.bf16.vlgmr.msra.gmra.mrb[16].mxu1 %vm980_vm2, %v4743_v36  ;;  %v1849_v27 = vmul.f32 0.5, %v4951_v39 }
 0x376   : > { %v4971_v15 = vadd.f32 %v3793_v48, %v4713_v62  ;;  %v1834_v13 = vpop.f32.mrb[41].mxu0  ;;  %v4034_v47 = vpop.eup %4033  ;;  %v1695_v20 = vadd.f32 1.0, %v4032_v46  ;;  %3774 = vmatpush3.bf16.msra.mxu1 %v1707_v18  ;;  %3781 = vmatprep.mubr.msk.bf16.mxu1 %vm4224_vm1, %v4223_v61  ;;  %v1850_v48 = vmul.f32 0.5, %v4963_v51 }
 0x377   : > { %v4975_v31 = vadd.f32 %v1834_v13, %v4684_v0  ;;  %v3794_v10 = vpop.f32.mrb[42].mxu0  ;;  %v4036_v53 = vpop.eup %4035  ;;  %v1698_v58 = vadd.f32 1.0, %v4034_v47  ;;  %3775 = vmatprep.subr.bf16.mxu1 %v4223_v61  ;;  %v1705_v38 = vmul.f32 %v1697_v8, %v1673_v32 }
 0x378   : > { %v1863_v63 = vmul.f32 0.70710677, %v4971_v15  ;;  %v1837_v1 = vpop.f32.mrb[43].mxu0  ;;  %v1696_v2 = vadd.f32 1.0, %v4036_v53  ;;  %v4986_v9 = vadd.f32 %v3794_v10, %v4690_v5  ;;  %v1703_v40 = vmul.f32 %v1695_v20, %v1671_v41 }
 0x379   : > { %v1861_v35 = vmul.f32 0.70710677, %v4975_v31  ;;  %v1706_v55 = vmul.f32 %v1698_v58, %v1674_v52  ;;  %v4989_v57 = vadd.f32 %v1837_v1, %v4686_v3 }
 0x37a   : > { %4045 = verf.f32 %v1863_v63  ;;  %v1704_v25 = vmul.f32 %v1696_v2, %v1672_v23  ;;  %v1864_v24 = vmul.f32 0.70710677, %v4986_v9  ;;  %3776 = vmatpush3.bf16.msra.mxu1 %v1708_v4  ;;  %v1852_v4 = vmul.f32 0.5, %v4960_v33 }
 0x37b   : > { %4047 = verf.f32 %v1861_v35  ;;  %v1710_v11 = vpack.c.bf16 %v1706_v55, %v1705_v38  ;;  %v1862_v56 = vmul.f32 0.70710677, %v4989_v57  ;;  %3777 = vmatprep.subr.bf16.mxu1 %v4223_v61  ;;  %v1855_v38 = vmul.f32 0.5, %v4971_v15 }
 0x37c   : > { %v4038_v12 = vpop.eup %4037  ;;  %v1709_v29 = vpack.c.bf16 %v1704_v25, %v1703_v40  ;;  %4049 = verf.f32 %v1864_v24  ;;  %v1854_v15 = vmul.f32 0.5, %v4989_v57 }
 0x37d   : > { %v4040_v14 = vpop.eup %4039  ;;  %v3811_v22 = vpop.f32.mrb[44].mxu0  ;;  %v1875_v49 = vadd.f32 1.0, %v4038_v12  ;;  %4051 = verf.f32 %v1862_v56  ;;  %v1853_v12 = vmul.f32 0.5, %v4975_v31 }
 0x37e   : > { %v4995_v26 = vadd.f32 %v3811_v22, %v4677_v42  ;;  %v2000_v30 = vpop.f32.mrb[45].mxu0  ;;  %v4042_v28 = vpop.eup %4041  ;;  %v1873_v45 = vadd.f32 1.0, %v4040_v14  ;;  %3778 = vmatpush3.bf16.msra.mxu1 %v1709_v29 }
 0x37f   : > { %v4999_v19 = vadd.f32 %v2000_v30, %v4679_v60  ;;  %v3812_v37 = vpop.f32.mrb[46].mxu0  ;;  %v4044_v44 = vpop.eup %4043  ;;  %v1876_v16 = vadd.f32 1.0, %v4042_v28  ;;  %3779 = vmatprep.subr.bf16.mxu1 %v4223_v61  ;;  %v1883_v47 = vmul.f32 %v1875_v49, %v1851_v34 }
 0x380   : > { %v2041_v46 = vmul.f32 0.70710677, %v4995_v26  ;;  %v2003_v18 = vpop.f32.mrb[47].mxu0  ;;  %v1874_v7 = vadd.f32 1.0, %v4044_v44  ;;  %v5008_v13 = vadd.f32 %v3812_v37, %v4682_v43  ;;  %v1881_v33 = vmul.f32 %v1873_v45, %v1849_v27 }
 0x381   : > { %v2039_v8 = vmul.f32 0.70710677, %v4999_v19  ;;  %v1884_v32 = vmul.f32 %v1876_v16, %v1852_v4  ;;  %v5011_v39 = vadd.f32 %v2003_v18, %v4675_v59 }
 0x382   : > { %4053 = verf.f32 %v2041_v46  ;;  %v1882_v20 = vmul.f32 %v1874_v7, %v1850_v48  ;;  %v2042_v10 = vmul.f32 0.70710677, %v5008_v13  ;;  %3780 = vmatpush3.bf16.msra.mxu1 %v1710_v11  ;;  %v2033_v7 = vmul.f32 0.5, %v4995_v26 }
 0x383   : > { %4055 = verf.f32 %v2039_v8  ;;  %v1890_v51 = vpack.c.bf16 %v1884_v32, %v1883_v47  ;;  %v2040_v41 = vmul.f32 0.70710677, %v5011_v39  ;;  %3795 = vmatprep.subr.bf16.mxu1 %v4223_v61  ;;  %v2034_v8 = vmul.f32 0.5, %v5008_v13 }
 0x384   : > { %v4046_v53 = vpop.eup %4045  ;;  %v1889_v58 = vpack.c.bf16 %v1882_v20, %v1881_v33  ;;  %4057 = verf.f32 %v2042_v10  ;;  %v2031_v32 = vmul.f32 0.5, %v4999_v19  ;;  %v2032_v33 = vmul.f32 0.5, %v5011_v39 }
 0x385   : > { %v4048_v52 = vpop.eup %4047  ;;  %v3815_v63 = vpop.f32.mrb[48].mxu0  ;;  %v1879_v1 = vadd.f32 1.0, %v4046_v53  ;;  %4059 = verf.f32 %v2040_v41  ;;  %3782 = vmatmul.mubr.msk.bf16.vlgmr.msra.gmra.mrb[20].mxu1 %vm980_vm2, %v4743_v36  ;;  %v1856_v36 = vmul.f32 0.5, %v4986_v9 }
 0x386   : > { %v5019_v23 = vadd.f32 %v3815_v63, %v4713_v62  ;;  %v2016_v2 = vpop.f32.mrb[49].mxu0  ;;  %v4050_v35 = vpop.eup %4049  ;;  %v1877_v55 = vadd.f32 1.0, %v4048_v52  ;;  %3796 = vmatpush3.bf16.msra.mxu1 %v1889_v58  ;;  %3803 = vmatprep.mubr.msk.bf16.mxu1 %vm4224_vm1, %v4223_v61 }
 0x387   : > { %v5023_v40 = vadd.f32 %v2016_v2, %v4684_v0  ;;  %v3816_v25 = vpop.f32.mrb[50].mxu0  ;;  %v4052_v24 = vpop.eup %4051  ;;  %v1880_v11 = vadd.f32 1.0, %v4050_v35  ;;  %3797 = vmatprep.subr.bf16.mxu1 %v4223_v61  ;;  %v1887_v30 = vmul.f32 %v1879_v1, %v1855_v38  ;;  %v5043_v1 = vld [vmem:[%s4344_s16] sm:$0xff]  }
 0x388   : > { %v2045_v56 = vmul.f32 0.70710677, %v5019_v23  ;;  %v2019_v14 = vpop.f32.mrb[51].mxu0  ;;  %v1878_v29 = vadd.f32 1.0, %v4052_v24  ;;  %v2028_v49 = vadd.f32 %v3816_v25, %v4690_v5  ;;  %v1885_v34 = vmul.f32 %v1877_v55, %v1853_v12 }
 0x389   : > { %v2043_v22 = vmul.f32 0.70710677, %v5023_v40  ;;  %v1888_v28 = vmul.f32 %v1880_v11, %v1856_v36  ;;  %v2020_v31 = vadd.f32 %v2019_v14, %v4686_v3  ;;  %v2037_v35 = vmul.f32 0.5, %v5019_v23 }
 0x38a   : > { %4061 = verf.f32 %v2045_v56  ;;  %v1886_v9 = vmul.f32 %v1878_v29, %v1854_v15  ;;  %v2046_v45 = vmul.f32 0.70710677, %v2028_v49  ;;  %3798 = vmatpush3.bf16.msra.mxu1 %v1890_v51  ;;  %v2038_v38 = vmul.f32 0.5, %v2028_v49 }
 0x38b   : > { %4063 = verf.f32 %v2043_v22  ;;  %v1892_v44 = vpack.c.bf16 %v1888_v28, %v1887_v30  ;;  %v2044_v27 = vmul.f32 0.70710677, %v2020_v31  ;;  %3799 = vmatprep.subr.bf16.mxu1 %v4223_v61  ;;  %v2035_v25 = vmul.f32 0.5, %v5023_v40 }
 0x38c   : > { %v4054_v37 = vpop.eup %4053  ;;  %v1891_v4 = vpack.c.bf16 %v1886_v9, %v1885_v34  ;;  %4065 = verf.f32 %v2046_v45  ;;  %v2036_v24 = vmul.f32 0.5, %v2020_v31 }
 0x38d   : > { %v4056_v57 = vpop.eup %4055  ;;  %v2057_v16 = vadd.f32 1.0, %v4054_v37  ;;  %4067 = verf.f32 %v2044_v27 }
 0x38e   : > { %v4058_v46 = vpop.eup %4057  ;;  %v2055_v18 = vadd.f32 1.0, %v4056_v57  ;;  %3800 = vmatpush3.bf16.msra.mxu1 %v1891_v4 }
 0x38f   : > { %v4060_v48 = vpop.eup %4059  ;;  %v2058_v47 = vadd.f32 1.0, %v4058_v46  ;;  %3801 = vmatprep.subr.bf16.mxu1 %v4223_v61  ;;  %v2065_v10 = vmul.f32 %v2057_v16, %v2033_v7 }
 0x390   : > { %v2056_v20 = vadd.f32 1.0, %v4060_v48  ;;  %v2063_v51 = vmul.f32 %v2055_v18, %v2031_v32 }
 0x391   : > { %v2066_v53 = vmul.f32 %v2058_v47, %v2034_v8 }
 0x392   : > { %v2064_v41 = vmul.f32 %v2056_v20, %v2032_v33  ;;  %3802 = vmatpush3.bf16.msra.mxu1 %v1892_v44 }
 0x393   : > { %v2072_v58 = vpack.c.bf16 %v2066_v53, %v2065_v10  ;;  %3817 = vmatprep.subr.bf16.mxu1 %v4223_v61 }
 0x394   : > { %v4062_v52 = vpop.eup %4061  ;;  %v2071_v13 = vpack.c.bf16 %v2064_v41, %v2063_v51 }
 0x395   : > { %v4064_v26 = vpop.eup %4063  ;;  %v2061_v63 = vadd.f32 1.0, %v4062_v52  ;;  %3804 = vmatmul.mubr.msk.bf16.vlgmr.msra.gmra.mrb[24].mxu1 %vm980_vm2, %v5043_v1 }
 0x396   : > { %v4066_v19 = vpop.eup %4065  ;;  %v2059_v39 = vadd.f32 1.0, %v4064_v26  ;;  %3818 = vmatpush3.bf16.msra.mxu1 %v2071_v13  ;;  %3825 = vmatprep.mubr.msk.bf16.mxu1 %vm4224_vm1, %v4223_v61 }
 0x397   : > { %v4068_v2 = vpop.eup %4067  ;;  %v2062_v55 = vadd.f32 1.0, %v4066_v19  ;;  %3819 = vmatprep.subr.bf16.mxu1 %v4223_v61  ;;  %v2069_v36 = vmul.f32 %v2061_v63, %v2037_v35 }
 0x398   : > { %v2060_v12 = vadd.f32 1.0, %v4068_v2  ;;  %v2067_v56 = vmul.f32 %v2059_v39, %v2035_v25 }
 0x399   : > { %v2070_v11 = vmul.f32 %v2062_v55, %v2038_v38 }
 0x39a   : > { %v2068_v14 = vmul.f32 %v2060_v12, %v2036_v24  ;;  %3820 = vmatpush3.bf16.msra.mxu1 %v2072_v58 }
 0x39b   : > { %v2074_v15 = vpack.c.bf16 %v2070_v11, %v2069_v36  ;;  %3821 = vmatprep.subr.bf16.mxu1 %v4223_v61 }
 0x39c   : > { %v2073_v29 = vpack.c.bf16 %v2068_v14, %v2067_v56 }
 0x39e   : > { %3822 = vmatpush3.bf16.msra.mxu1 %v2073_v29 }
 0x39f   : > { %v3833_v22 = vpop.f32.mrb[52].mxu0  ;;  %3823 = vmatprep.subr.bf16.mxu1 %v4223_v61 }
 0x3a0   : > { %v2191_v23 = vadd.f32 %v3833_v22, %v4677_v42  ;;  %v2182_v49 = vpop.f32.mrb[53].mxu0 }
 0x3a1   : > { %v2183_v40 = vadd.f32 %v2182_v49, %v4679_v60  ;;  %v3834_v30 = vpop.f32.mrb[54].mxu0 }
 0x3a2   : > { %v2223_v28 = vmul.f32 0.70710677, %v2191_v23  ;;  %v2194_v31 = vadd.f32 %v3834_v30, %v4682_v43  ;;  %v2185_v34 = vpop.f32.mrb[55].mxu0  ;;  %3824 = vmatpush3.bf16.msra.mxu1 %v2074_v15  ;;  %v2215_v20 = vmul.f32 0.5, %v2191_v23 }
 0x3a3   : > { %v2221_v9 = vmul.f32 0.70710677, %v2183_v40  ;;  %v2186_v45 = vadd.f32 %v2185_v34, %v4675_v59  ;;  %3839 = vmatprep.subr.bf16.mxu1 %v4223_v61  ;;  %v4184_v34 = vld [vmem:[%s5497_s13 + $0x10] sm:$0xff] }
 0x3a4   : > { %4069 = verf.f32 %v2223_v28  ;;  %v2224_v37 = vmul.f32 0.70710677, %v2194_v31  ;;  %v2216_v10 = vmul.f32 0.5, %v2194_v31 }
 0x3a5   : > { %4071 = verf.f32 %v2221_v9  ;;  %v2222_v42 = vmul.f32 0.70710677, %v2186_v45  ;;  %3826 = vmatmul.mubr.msk.bf16.vlgmr.msra.gmra.mrb[28].mxu1 %vm980_vm2, %v5043_v1  ;;  %v2214_v51 = vmul.f32 0.5, %v2186_v45 }
 0x3a6   : > { %4073 = verf.f32 %v2224_v37  ;;  %3847 = vmatprep.mubr.msk.bf16.mxu1 %vm4224_vm1, %v4223_v61 }
 0x3a7   : > { %4075 = verf.f32 %v2222_v42  ;;  %v3837_v60 = vpop.f32.mrb[56].mxu0 }
 0x3a8   : > { %v2207_v43 = vadd.f32 %v3837_v60, %v4713_v62  ;;  %v2198_v44 = vpop.f32.mrb[57].mxu0 }
 0x3a9   : > { %v2199_v59 = vadd.f32 %v2198_v44, %v4684_v0  ;;  %v3838_v27 = vpop.f32.mrb[58].mxu0 }
 0x3aa   : > { %v2227_v57 = vmul.f32 0.70710677, %v2207_v43  ;;  %v2210_v4 = vadd.f32 %v3838_v27, %v4690_v5  ;;  %v2201_v16 = vpop.f32.mrb[59].mxu0  ;;  %v2213_v5 = vmul.f32 0.5, %v2183_v40  ;;  %v2219_v25 = vmul.f32 0.5, %v2207_v43 }
 0x3ab   : > { %v2225_v46 = vmul.f32 0.70710677, %v2199_v59  ;;  %v2202_v18 = vadd.f32 %v2201_v16, %v4686_v3  ;;  %v2217_v36 = vmul.f32 0.5, %v2199_v59  ;;  %v4186_v59 = vld [vmem:[%s5497_s13 + $0x20] sm:$0xff]  ;;  %v4187_v16 = vld [vmem:[%s5497_s13 + $0x28] sm:$0xff] }
 0x3ac   : > { %4077 = verf.f32 %v2227_v57  ;;  %v2228_v48 = vmul.f32 0.70710677, %v2210_v4  ;;  %v2220_v24 = vmul.f32 0.5, %v2210_v4 }
 0x3ad   : > { %4079 = verf.f32 %v2225_v46  ;;  %v2226_v7 = vmul.f32 0.70710677, %v2202_v18  ;;  %v2218_v11 = vmul.f32 0.5, %v2202_v18 }
 0x3ae   : > { %v4070_v8 = vpop.eup %4069  ;;  %4081 = verf.f32 %v2228_v48 }
 0x3af   : > { %v4072_v47 = vpop.eup %4071  ;;  %v2239_v32 = vadd.f32 1.0, %v4070_v8  ;;  %4083 = verf.f32 %v2226_v7 }
 0x3b0   : > { %v4074_v62 = vpop.eup %4073  ;;  %v2237_v33 = vadd.f32 1.0, %v4072_v47  ;;  %v4188_v47 = vld [vmem:[%s5497_s13 + $0x30] sm:$0xff] }
 0x3b1   : > { %v4076_v0 = vpop.eup %4075  ;;  %v2240_v53 = vadd.f32 1.0, %v4074_v62  ;;  %v2247_v52 = vmul.f32 %v2239_v32, %v2215_v20 }
 0x3b2   : > { %v2238_v41 = vadd.f32 1.0, %v4076_v0  ;;  %v2245_v58 = vmul.f32 %v2237_v33, %v2213_v5  ;;  %v4189_v0 = vld [vmem:[%s5497_s13 + $0x38] sm:$0xff] }
 0x3b3   : > { %v2248_v3 = vmul.f32 %v2240_v53, %v2216_v10 }
 0x3b4   : > { %v2246_v26 = vmul.f32 %v2238_v41, %v2214_v51  ;;  %v4190_v41 = vld [vmem:[%s5497_s13 + $0x40] sm:$0xff] }
 0x3b5   : > { %v2254_v13 = vpack.c.bf16 %v2248_v3, %v2247_v52 }
 0x3b6   : > { %v4078_v63 = vpop.eup %4077  ;;  %v2253_v19 = vpack.c.bf16 %v2246_v26, %v2245_v58  ;;  %v4191_v26 = vld [vmem:[%s5497_s13 + $0x48] sm:$0xff] }
 0x3b7   : > { %v4080_v39 = vpop.eup %4079  ;;  %v2243_v2 = vadd.f32 1.0, %v4078_v63 }
 0x3b8   : > { %v4082_v35 = vpop.eup %4081  ;;  %v2241_v38 = vadd.f32 1.0, %v4080_v39  ;;  %3840 = vmatpush3.bf16.msra.mxu1 %v2253_v19 }
 0x3b9   : > { %v4084_v55 = vpop.eup %4083  ;;  %v2244_v12 = vadd.f32 1.0, %v4082_v35  ;;  %3841 = vmatprep.subr.bf16.mxu1 %v4223_v61  ;;  %v2251_v14 = vmul.f32 %v2243_v2, %v2219_v25  ;;  %v4192_v35 = vld [vmem:[%s5497_s13 + $0x50] sm:$0xff] }
 0x3ba   : > { %v2242_v56 = vadd.f32 1.0, %v4084_v55  ;;  %v2249_v29 = vmul.f32 %v2241_v38, %v2217_v36 }
 0x3bb   : > { %v2252_v15 = vmul.f32 %v2244_v12, %v2220_v24  ;;  %v4193_v24 = vld [vmem:[%s5497_s13 + $0x58] sm:$0xff] }
 0x3bc   : > { %v2250_v22 = vmul.f32 %v2242_v56, %v2218_v11  ;;  %3842 = vmatpush3.bf16.msra.mxu1 %v2254_v13 }
 0x3bd   : > { %v2256_v23 = vpack.c.bf16 %v2252_v15, %v2251_v14  ;;  %3843 = vmatprep.subr.bf16.mxu1 %v4223_v61  ;;  %v4194_v15 = vld [vmem:[%s5497_s13 + $0x60] sm:$0xff] }
 0x3be   : > { %v2255_v49 = vpack.c.bf16 %v2250_v22, %v2249_v29 }
 0x3c0   : > { %3844 = vmatpush3.bf16.msra.mxu1 %v2255_v49  ;;  %v4195_v49 = vld [vmem:[%s5497_s13 + $0x68] sm:$0xff] }
 0x3c1   : > { %3845 = vmatprep.subr.bf16.mxu1 %v4223_v61  ;;  %v4185_v61 = vld [vmem:[%s5497_s13 + $0x18] sm:$0xff] }
 0x3c4   : > { %3846 = vmatpush3.bf16.msra.mxu1 %v2256_v23 }
 0x3c7   : > { %3848 = vmatmul.mubr.msk.bf16.vlgmr.msra.gmra.mrb[32].mxu1 %vm980_vm2, %v5043_v1 }
 0x3cd   : > { %v1199_v40 = vpop.f32.mrb[8].mxu1 }
 0x3ce   : > { %v1200_v30 = vadd.f32 %v1199_v40, %v4838_v21  ;;  %v3717_v28 = vpop.f32.mrb[9].mxu1 }
 0x3cf   : > { %v1202_v31 = vpop.f32.mrb[10].mxu1  ;;  %v3887_v28 = vld [vmem:[%s4364_s27 + $0x4] ss:$8 sps:$4 sm:$0xff]  }
 0x3d0   : > { %v5076_v9 = vadd.f32 %v4184_v34, %v1200_v30  ;;  %v1203_v45 = vadd.f32 %v1202_v31, %v4841_v6  ;;  %v3718_v37 = vpop.f32.mrb[11].mxu1  ;;  %v3885_v30 = vld [vmem:[%s4364_s27] ss:$8 sps:$4 sm:$0xff]   ;;  %v2372_v31 = vpop.xlane.xlu1 %2371  ;;  %2690 = vmatprep.subr.bf16.mxu0 %v3887_v28 }
 0x3d1   : > { %v2374_v34 = vpop.xlane.xlu0 %2373  ;;  %2691 = vmatpush1.bf16.msra.mxu0 %v3885_v30 }
 0x3d2   : > { %v5082_v42 = vadd.f32 %v4185_v61, %v1203_v45  ;;  %2375 = vadd.xlane.f32.xlu0 %v5076_v9  ;;  %v2403_v45 = vmul.f32 0.0078125, %v2372_v31 }
 0x3d4   : > { %2377 = vadd.xlane.f32.xlu1 %v5082_v42 }
 0x438   : > { %v1381_v1 = vpop.f32.mrb[12].mxu1 }
 0x439   : > { %v1382_v60 = vadd.f32 %v1381_v1, %v4838_v21  ;;  %v3739_v43 = vpop.f32.mrb[13].mxu1  ;;  %v2404_v1 = vmul.f32 0.0078125, %v2374_v34 }
 0x43a   : > { %v1384_v44 = vpop.f32.mrb[14].mxu1 }
 0x43b   : > { %v5090_v27 = vadd.f32 %v4186_v59, %v1382_v60  ;;  %v1385_v57 = vadd.f32 %v1384_v44, %v4841_v6  ;;  %v3740_v4 = vpop.f32.mrb[15].mxu1 }
 0x43d   : > { %v5096_v46 = vadd.f32 %v4187_v16, %v1385_v57  ;;  %2379 = vadd.xlane.f32.xlu0 %v5090_v27  ;;  %v5160_v57 = vsub.f32 %v4846_v50, %v2403_v45  ;;  %v4196_v16 = vld [vmem:[%s5497_s13 + $0x70] sm:$0xff] }
 0x43f   : > { %2381 = vadd.xlane.f32.xlu1 %v5096_v46 }
 0x448   : > { %v1563_v18 = vpop.f32.mrb[16].mxu1 }
 0x449   : > { %v1564_v48 = vadd.f32 %v1563_v18, %v4838_v21  ;;  %v3761_v7 = vpop.f32.mrb[17].mxu1 }
 0x44a   : > { %v1566_v8 = vpop.f32.mrb[18].mxu1 }
 0x44b   : > { %v5104_v32 = vadd.f32 %v4188_v47, %v1564_v48  ;;  %v1567_v62 = vadd.f32 %v1566_v8, %v4841_v6  ;;  %v3762_v33 = vpop.f32.mrb[19].mxu1  ;;  %v5169_v8 = vsub.f32 %v4852_v54, %v2404_v1  ;;  %v4197_v47 = vld [vmem:[%s5497_s13 + $0x78] sm:$0xff] }
 0x44d   : > { %v5110_v20 = vadd.f32 %v4189_v0, %v1567_v62  ;;  %2383 = vadd.xlane.f32.xlu0 %v5104_v32 }
 0x44f   : > { %2385 = vadd.xlane.f32.xlu1 %v5110_v20 }
 0x458   : > { %v1745_v10 = vpop.f32.mrb[20].mxu1 }
 0x459   : > { %v1746_v53 = vadd.f32 %v1745_v10, %v4838_v21  ;;  %v3783_v5 = vpop.f32.mrb[21].mxu1  ;;  %v2436_v10 = vmul.f32 %v5169_v8, %v5169_v8 }
 0x45a   : > { %v1748_v51 = vpop.f32.mrb[22].mxu1 }
 0x45b   : > { %v5118_v52 = vadd.f32 %v4190_v41, %v1746_v53  ;;  %v1749_v3 = vadd.f32 %v1748_v51, %v4841_v6  ;;  %v3784_v58 = vpop.f32.mrb[23].mxu1  ;;  %v3890_v51 = vld [vmem:[%s4364_s27 + $0x14] ss:$8 sps:$4 sm:$0xff]   ;;  %v3888_v41 = vld [vmem:[%s4364_s27 + $0x10] ss:$8 sps:$4 sm:$0xff]  }
 0x45c   : > { %2692 = vmatprep.subr.bf16.mxu0 %v3890_v51  ;;  %v3891_v58 = vld [vmem:[%s4364_s27 + $0x20] ss:$8 sps:$4 sm:$0xff]  }
 0x45d   : > { %v5124_v13 = vadd.f32 %v4191_v26, %v1749_v3  ;;  %2387 = vadd.xlane.f32.xlu0 %v5118_v52  ;;  %2693 = vmatpush1.bf16.msra.mxu0 %v3888_v41  ;;  %v3893_v3 = vld [vmem:[%s4364_s27 + $0x24] ss:$8 sps:$4 sm:$0xff]   ;;  %v3896_v26 = vld [vmem:[%s4364_s27 + $0x34] ss:$8 sps:$4 sm:$0xff]  }
 0x45e   : > { %2694 = vmatprep.subr.bf16.mxu0 %v3893_v3 }
 0x45f   : > { %2389 = vadd.xlane.f32.xlu1 %v5124_v13  ;;  %v2376_v37 = vpop.xlane.xlu0 %2375 }
 0x460   : > { %v2405_v4 = vmul.f32 0.0078125, %v2376_v37 }
 0x461   : > { %v2378_v44 = vpop.xlane.xlu1 %2377  ;;  %2695 = vmatpush1.bf16.msra.mxu0 %v3891_v58 }
 0x462   : > { %v5178_v33 = vsub.f32 %v5076_v9, %v2405_v4  ;;  %2696 = vmatprep.subr.bf16.mxu0 %v3896_v26 }
 0x464   : > { %v2437_v53 = vmul.f32 %v5178_v33, %v5178_v33 }
 0x468   : > { %v1927_v63 = vpop.f32.mrb[24].mxu1 }
 0x469   : > { %v1928_v19 = vadd.f32 %v1927_v63, %v4838_v21  ;;  %v3805_v39 = vpop.f32.mrb[25].mxu1  ;;  %v3894_v63 = vld [vmem:[%s4364_s27 + $0x30] ss:$8 sps:$4 sm:$0xff]  }
 0x46a   : > { %v1930_v2 = vpop.f32.mrb[26].mxu1  ;;  %2697 = vmatpush1.bf16.msra.mxu0 %v3894_v63  ;;  %v3897_v39 = vld [vmem:[%s4364_s27 + $0x40] ss:$8 sps:$4 sm:$0xff]  }
 0x46b   : > { %v5132_v38 = vadd.f32 %v4192_v35, %v1928_v19  ;;  %v1931_v55 = vadd.f32 %v1930_v2, %v4841_v6  ;;  %v3806_v25 = vpop.f32.mrb[27].mxu1  ;;  %v3899_v19 = vld [vmem:[%s4364_s27 + $0x44] ss:$8 sps:$4 sm:$0xff]   ;;  %v3902_v2 = vld [vmem:[%s4364_s27 + $0x54] ss:$8 sps:$4 sm:$0xff]  }
 0x46c   : > { %2698 = vmatprep.subr.bf16.mxu0 %v3899_v19  ;;  %v3900_v35 = vld [vmem:[%s4364_s27 + $0x50] ss:$8 sps:$4 sm:$0xff]   ;;  %v3903_v25 = vld [vmem:[%s4364_s27 + $0x60] ss:$8 sps:$4 sm:$0xff]  }
 0x46d   : > { %v5138_v12 = vadd.f32 %v4193_v24, %v1931_v55  ;;  %2391 = vadd.xlane.f32.xlu0 %v5132_v38  ;;  %v3905_v55 = vld [vmem:[%s4364_s27 + $0x64] ss:$8 sps:$4 sm:$0xff]   ;;  %v3906_v24 = vld [vmem:[%s4364_s27 + $0x70] ss:$8 sps:$4 sm:$0xff]  }
 0x46e   : > { %2699 = vmatpush1.bf16.msra.mxu0 %v3897_v39 }
 0x46f   : > { %2393 = vadd.xlane.f32.xlu1 %v5138_v12  ;;  %2700 = vmatprep.subr.bf16.mxu0 %v3902_v2 }
 0x472   : > { %2701 = vmatpush1.bf16.msra.mxu0 %v3900_v35 }
 0x473   : > { %2702 = vmatprep.subr.bf16.mxu0 %v3905_v55 }
 0x476   : > { %2703 = vmatpush1.bf16.msra.mxu0 %v3903_v25 }
 0x478   : > { %v2109_v36 = vpop.f32.mrb[28].mxu1 }
 0x479   : > { %v2110_v11 = vadd.f32 %v2109_v36, %v4838_v21  ;;  %v3827_v56 = vpop.f32.mrb[29].mxu1  ;;  %v3908_v36 = vld [vmem:[%s4364_s27 + $0x74] ss:$8 sps:$4 sm:$0xff]  }
 0x47a   : > { %v2112_v14 = vpop.f32.mrb[30].mxu1  ;;  %2704 = vmatprep.subr.bf16.mxu0 %v3908_v36 }
 0x47b   : > { %v5146_v29 = vadd.f32 %v4194_v15, %v2110_v11  ;;  %v2113_v22 = vadd.f32 %v2112_v14, %v4841_v6  ;;  %v3828_v23 = vpop.f32.mrb[31].mxu1  ;;  %2705 = vmatpush1.bf16.msra.mxu0 %v3906_v24 }
 0x47d   : > { %v5152_v40 = vadd.f32 %v4195_v49, %v2113_v22  ;;  %2395 = vadd.xlane.f32.xlu0 %v5146_v29 }
 0x47f   : > { %2397 = vadd.xlane.f32.xlu1 %v5152_v40 }
 0x49a   : > { %v2291_v61 = vpop.f32.mrb[32].mxu1 }
 0x49b   : > { %v2292_v60 = vadd.f32 %v2291_v61, %v4838_v21  ;;  %v3849_v43 = vpop.f32.mrb[33].mxu1  ;;  %v2406_v21 = vmul.f32 0.0078125, %v2378_v44 }
 0x49c   : > { %v2294_v59 = vpop.f32.mrb[34].mxu1 }
 0x49d   : > { %v5165_v18 = vadd.f32 %v4196_v16, %v2292_v60  ;;  %v2295_v48 = vadd.f32 %v2294_v59, %v4841_v6  ;;  %v3850_v7 = vpop.f32.mrb[35].mxu1  ;;  %v2435_v6 = vmul.f32 %v5160_v57, %v5160_v57  ;;  %v5184_v0 = vsub.f32 %v5082_v42, %v2406_v21 }
 0x49f   : > { %v5174_v62 = vadd.f32 %v4197_v47, %v2295_v48  ;;  %2399 = vadd.xlane.f32.xlu0 %v5165_v18  ;;  %v2438_v5 = vmul.f32 %v5184_v0, %v5184_v0 }
 0x4a1   : > { %2401 = vadd.xlane.f32.xlu1 %v5174_v62 }
 0x4a3   : > { %2451 = vadd.xlane.f32.xlu0 %v2435_v6 }
 0x4a5   : > { %2453 = vadd.xlane.f32.xlu1 %v2436_v10 }
 0x4a7   : > { %2455 = vadd.xlane.f32.xlu0 %v2437_v53 }
 0x4a9   : > { %2457 = vadd.xlane.f32.xlu1 %v2438_v5 }
 0x4ca   : > { %v2380_v11 = vpop.xlane.xlu0 %2379 }
 0x4cb   : > { %v2407_v56 = vmul.f32 0.0078125, %v2380_v11 }
 0x4cc   : > { %v2382_v14 = vpop.xlane.xlu1 %2381 }
 0x4cd   : > { %v5207_v15 = vsub.f32 %v5090_v27, %v2407_v56  ;;  %v2408_v22 = vmul.f32 0.0078125, %v2382_v14 }
 0x4cf   : > { %v5210_v23 = vsub.f32 %v5096_v46, %v2408_v22  ;;  %v2439_v49 = vmul.f32 %v5207_v15, %v5207_v15 }
 0x4d1   : > { %2459 = vadd.xlane.f32.xlu0 %v2439_v49  ;;  %v2440_v30 = vmul.f32 %v5210_v23, %v5210_v23 }
 0x4d3   : > { %2461 = vadd.xlane.f32.xlu1 %v2440_v30 }
 0x4da   : > { %v2384_v28 = vpop.xlane.xlu0 %2383 }
 0x4db   : > { %v2409_v31 = vmul.f32 0.0078125, %v2384_v28 }
 0x4dc   : > { %v2386_v34 = vpop.xlane.xlu1 %2385 }
 0x4dd   : > { %v5217_v45 = vsub.f32 %v5104_v32, %v2409_v31  ;;  %v2410_v37 = vmul.f32 0.0078125, %v2386_v34 }
 0x4df   : > { %v5220_v61 = vsub.f32 %v5110_v20, %v2410_v37  ;;  %v2441_v1 = vmul.f32 %v5217_v45, %v5217_v45 }
 0x4e1   : > { %2463 = vadd.xlane.f32.xlu0 %v2441_v1  ;;  %v2442_v60 = vmul.f32 %v5220_v61, %v5220_v61 }
 0x4e3   : > { %2465 = vadd.xlane.f32.xlu1 %v2442_v60 }
 0x4ea   : > { %v2388_v43 = vpop.xlane.xlu0 %2387 }
 0x4eb   : > { %v2411_v44 = vmul.f32 0.0078125, %v2388_v43 }
 0x4ec   : > { %v2390_v59 = vpop.xlane.xlu1 %2389 }
 0x4ed   : > { %v5227_v4 = vsub.f32 %v5118_v52, %v2411_v44  ;;  %v2412_v16 = vmul.f32 0.0078125, %v2390_v59 }
 0x4ef   : > { %v5230_v48 = vsub.f32 %v5124_v13, %v2412_v16  ;;  %v2443_v7 = vmul.f32 %v5227_v4, %v5227_v4 }
 0x4f1   : > { %2467 = vadd.xlane.f32.xlu0 %v2443_v7  ;;  %v2444_v21 = vmul.f32 %v5230_v48, %v5230_v48 }
 0x4f3   : > { %2469 = vadd.xlane.f32.xlu1 %v2444_v21 }
 0x4fa   : > { %v2392_v47 = vpop.xlane.xlu0 %2391 }
 0x4fb   : > { %v2413_v6 = vmul.f32 0.0078125, %v2392_v47  ;;  %v5271_v47 = vld [vmem:[%s640_s22] ss:$0 sm:$0xff] }
 0x4fc   : > { %v2394_v10 = vpop.xlane.xlu1 %2393 }
 0x4fd   : > { %v5237_v53 = vsub.f32 %v5132_v38, %v2413_v6  ;;  %v2414_v5 = vmul.f32 0.0078125, %v2394_v10 }
 0x4ff   : > { %v5240_v51 = vsub.f32 %v5138_v12, %v2414_v5  ;;  %v2445_v41 = vmul.f32 %v5237_v53, %v5237_v53 }
 0x501   : > { %2471 = vadd.xlane.f32.xlu0 %v2445_v41  ;;  %v2446_v3 = vmul.f32 %v5240_v51, %v5240_v51 }
 0x503   : > { %2473 = vadd.xlane.f32.xlu1 %v2446_v3 }
 0x50a   : > { %v2396_v58 = vpop.xlane.xlu0 %2395 }
 0x50b   : > { %v2415_v26 = vmul.f32 0.0078125, %v2396_v58  ;;  %v5281_v58 = vld [vmem:[%s5518_s1] ss:$0 sm:$0xff] }
 0x50c   : > { %v2398_v63 = vpop.xlane.xlu1 %2397 }
 0x50d   : > { %v5247_v19 = vsub.f32 %v5146_v29, %v2415_v26  ;;  %v2416_v39 = vmul.f32 0.0078125, %v2398_v63 }
 0x50f   : > { %v5250_v2 = vsub.f32 %v5152_v40, %v2416_v39  ;;  %v2447_v35 = vmul.f32 %v5247_v19, %v5247_v19 }
 0x511   : > { %2475 = vadd.xlane.f32.xlu0 %v2447_v35  ;;  %v2448_v55 = vmul.f32 %v5250_v2, %v5250_v2 }
 0x513   : > { %2477 = vadd.xlane.f32.xlu1 %v2448_v55 }
 0x52c   : > { %v2400_v25 = vpop.xlane.xlu0 %2399 }
 0x52d   : > { %v2417_v24 = vmul.f32 0.0078125, %v2400_v25 }
 0x52e   : > { %v2402_v36 = vpop.xlane.xlu1 %2401 }
 0x52f   : > { %v5257_v11 = vsub.f32 %v5165_v18, %v2417_v24  ;;  %v2418_v56 = vmul.f32 0.0078125, %v2402_v36 }
 0x530   : > { %v2452_v14 = vpop.xlane.xlu0 %2451 }
 0x531   : > { %v5260_v22 = vsub.f32 %v5174_v62, %v2418_v56  ;;  %v2483_v49 = vmul.f32 0.0078125, %v2452_v14  ;;  %v2449_v30 = vmul.f32 %v5257_v11, %v5257_v11 }
 0x532   : > { %v2454_v28 = vpop.xlane.xlu1 %2453 }
 0x533   : > { %v2499_v31 = vadd.f32 1e-05, %v2483_v49  ;;  %v2484_v34 = vmul.f32 0.0078125, %v2454_v28  ;;  %2479 = vadd.xlane.f32.xlu0 %v2449_v30  ;;  %v2450_v37 = vmul.f32 %v5260_v22, %v5260_v22  ;;  %v3910_v49 = vld [vmem:[%s4374_s21] sm:$0xff]   ;;  %v3912_v30 = vld [vmem:[%s4374_s21 + $0x8] sm:$0xff]  }
 0x534   : > { %v2456_v1 = vpop.xlane.xlu0 %2455 }
 0x535   : > { %4085 = vrsqrt.f32 %v2499_v31  ;;  %v2500_v60 = vadd.f32 1e-05, %v2484_v34  ;;  %v2485_v43 = vmul.f32 0.0078125, %v2456_v1  ;;  %2481 = vadd.xlane.f32.xlu1 %v2450_v37 }
 0x536   : > { %v2458_v44 = vpop.xlane.xlu1 %2457 }
 0x537   : > { %4087 = vrsqrt.f32 %v2500_v60  ;;  %v2501_v59 = vadd.f32 1e-05, %v2485_v43  ;;  %v2486_v16 = vmul.f32 0.0078125, %v2458_v44 }
 0x539   : > { %4089 = vrsqrt.f32 %v2501_v59  ;;  %v2502_v7 = vadd.f32 1e-05, %v2486_v16 }
 0x53b   : > { %4091 = vrsqrt.f32 %v2502_v7 }
 0x53f   : > { %v4086_v21 = vpop.eup %4085 }
 0x540   : > { %v2531_v6 = vmul.f32 %v4086_v21, %v5160_v57 }
 0x541   : > { %v4088_v10 = vpop.eup %4087 }
 0x542   : > { %v2553_v5 = vmul.f32 %v5271_v47, %v2531_v6  ;;  %v2532_v41 = vmul.f32 %v4088_v10, %v5169_v8 }
 0x543   : > { %v4090_v3 = vpop.eup %4089 }
 0x544   : > { %v2554_v26 = vmul.f32 %v5271_v47, %v2532_v41  ;;  %v2575_v39 = vadd.f32 %v5281_v58, %v2553_v5  ;;  %v2533_v35 = vmul.f32 %v4090_v3, %v5178_v33  ;;  %v3909_v33 = vld [vmem:[%s4374_s21 + $0x40] sm:$0xff]  }
 0x545   : > { %v4092_v63 = vpop.eup %4091  ;;  %3611 = vmatprep.subr.bf16.mxu1 %v3909_v33 }
 0x546   : > { %v2576_v57 = vadd.f32 %v5281_v58, %v2554_v26  ;;  %v2534_v8 = vmul.f32 %v4092_v63, %v5184_v0  ;;  %v2555_v24 = vmul.f32 %v5271_v47, %v2533_v35  ;;  %v3911_v0 = vld [vmem:[%s4374_s21 + $0x48] sm:$0xff]   ;;  %3612 = vmatpush3.bf16.msra.mxu1 %v3910_v49 }
 0x547   : > { %3613 = vmatprep.subr.bf16.mxu1 %v3911_v0 }
 0x548   : > { %v2591_v55 = vpack.c.bf16 %v2576_v57, %v2575_v39  ;;  %v2556_v25 = vmul.f32 %v5271_v47, %v2534_v8  ;;  %v2577_v56 = vadd.f32 %v5281_v58, %v2555_v24 }
 0x54a   : > { %2723 = vmatmul.mubr.bf16.vlgmr.msra.gmra.mrb[60].mxu0 %v2591_v55  ;;  %v2578_v36 = vadd.f32 %v5281_v58, %v2556_v25  ;;  %3614 = vmatpush3.bf16.msra.mxu1 %v3912_v30 }
 0x54b   : > { %2732 = vmatprep.mubr.bf16.mxu0 %v4222_v17 }
 0x54c   : > { %v2592_v14 = vpack.c.bf16 %v2578_v36, %v2577_v56 }
 0x552   : > { %2733 = vmatmul.mubr.bf16.gmra.mrb[64].mxu0 %v2592_v14 }
 0x553   : > { %2742 = vmatprep.mubr.bf16.mxu0 %v4222_v17 }
 0x55e   : > { %v2460_v28 = vpop.xlane.xlu0 %2459 }
 0x55f   : > { %v2487_v31 = vmul.f32 0.0078125, %v2460_v28 }
 0x560   : > { %v2462_v34 = vpop.xlane.xlu1 %2461 }
 0x561   : > { %v2503_v37 = vadd.f32 1e-05, %v2487_v31  ;;  %v2488_v1 = vmul.f32 0.0078125, %v2462_v34 }
 0x563   : > { %4093 = vrsqrt.f32 %v2503_v37  ;;  %v2504_v60 = vadd.f32 1e-05, %v2488_v1 }
 0x565   : > { %4095 = vrsqrt.f32 %v2504_v60 }
 0x56d   : > { %v4094_v43 = vpop.eup %4093 }
 0x56e   : > { %v2535_v44 = vmul.f32 %v4094_v43, %v5207_v15  ;;  %v2464_v16 = vpop.xlane.xlu0 %2463 }
 0x56f   : > { %v4096_v59 = vpop.eup %4095  ;;  %v2489_v7 = vmul.f32 0.0078125, %v2464_v16 }
 0x570   : > { %v2536_v21 = vmul.f32 %v4096_v59, %v5210_v23  ;;  %v2557_v6 = vmul.f32 %v5271_v47, %v2535_v44  ;;  %v2466_v10 = vpop.xlane.xlu1 %2465 }
 0x571   : > { %v2505_v5 = vadd.f32 1e-05, %v2489_v7  ;;  %v2490_v41 = vmul.f32 0.0078125, %v2466_v10  ;;  %v3913_v10 = vld [vmem:[%s4374_s21 + $0x50] sm:$0xff]  }
 0x572   : > { %v2558_v3 = vmul.f32 %v5271_v47, %v2536_v21  ;;  %v2579_v63 = vadd.f32 %v5281_v58, %v2557_v6  ;;  %3615 = vmatprep.subr.bf16.mxu1 %v3913_v10 }
 0x573   : > { %4097 = vrsqrt.f32 %v2505_v5  ;;  %v2506_v26 = vadd.f32 1e-05, %v2490_v41 }
 0x574   : > { %v2580_v39 = vadd.f32 %v5281_v58, %v2558_v3  ;;  %v3914_v3 = vld [vmem:[%s4374_s21 + $0x10] sm:$0xff]  }
 0x575   : > { %4099 = vrsqrt.f32 %v2506_v26  ;;  %3616 = vmatpush3.bf16.msra.mxu1 %v3914_v3 }
 0x576   : > { %v2593_v15 = vpack.c.bf16 %v2580_v39, %v2579_v63 }
 0x578   : > { %2743 = vmatmul.mubr.bf16.gmra.mrb[68].mxu0 %v2593_v15 }
 0x579   : > { %2752 = vmatprep.mubr.bf16.mxu0 %v4222_v17 }
 0x57d   : > { %v4098_v57 = vpop.eup %4097 }
 0x57e   : > { %v2468_v23 = vpop.xlane.xlu0 %2467  ;;  %v2537_v35 = vmul.f32 %v4098_v57, %v5217_v45 }
 0x57f   : > { %v4100_v8 = vpop.eup %4099  ;;  %v2491_v55 = vmul.f32 0.0078125, %v2468_v23 }
 0x580   : > { %v2470_v25 = vpop.xlane.xlu1 %2469  ;;  %v2538_v24 = vmul.f32 %v4100_v8, %v5220_v61  ;;  %v2559_v36 = vmul.f32 %v5271_v47, %v2537_v35  ;;  %v3915_v8 = vld [vmem:[%s4374_s21 + $0x58] sm:$0xff]  }
 0x581   : > { %v2507_v56 = vadd.f32 1e-05, %v2491_v55  ;;  %v2492_v14 = vmul.f32 0.0078125, %v2470_v25  ;;  %v3916_v25 = vld [vmem:[%s4374_s21 + $0x18] sm:$0xff]   ;;  %3617 = vmatprep.subr.bf16.mxu1 %v3915_v8 }
 0x582   : > { %v2560_v33 = vmul.f32 %v5271_v47, %v2538_v24  ;;  %v2581_v0 = vadd.f32 %v5281_v58, %v2559_v36  ;;  %3618 = vmatpush3.bf16.msra.mxu1 %v3916_v25  ;;  %v3917_v36 = vld [vmem:[%s4374_s21 + $0x60] sm:$0xff]  }
 0x583   : > { %4101 = vrsqrt.f32 %v2507_v56  ;;  %v2508_v49 = vadd.f32 1e-05, %v2492_v14  ;;  %v3918_v14 = vld [vmem:[%s4374_s21 + $0x20] sm:$0xff]   ;;  %3619 = vmatprep.subr.bf16.mxu1 %v3917_v36 }
 0x584   : > { %v2582_v30 = vadd.f32 %v5281_v58, %v2560_v33  ;;  %v3919_v33 = vld [vmem:[%s4374_s21 + $0x68] sm:$0xff]  }
 0x585   : > { %4103 = vrsqrt.f32 %v2508_v49  ;;  %v3920_v49 = vld [vmem:[%s4374_s21 + $0x28] sm:$0xff]  }
 0x586   : > { %v2594_v28 = vpack.c.bf16 %v2582_v30, %v2581_v0  ;;  %3620 = vmatpush3.bf16.msra.mxu1 %v3918_v14  ;;  %v3921_v30 = vld [vmem:[%s4374_s21 + $0x70] sm:$0xff]  }
 0x587   : > { %3621 = vmatprep.subr.bf16.mxu1 %v3919_v33 }
 0x588   : > { %2753 = vmatmul.mubr.bf16.gmra.mrb[72].mxu0 %v2594_v28 }
 0x589   : > { %2762 = vmatprep.mubr.bf16.mxu0 %v4222_v17 }
 0x58a   : > { %3622 = vmatpush3.bf16.msra.mxu1 %v3920_v49 }
 0x58b   : > { %3623 = vmatprep.subr.bf16.mxu1 %v3921_v30 }
 0x58d   : > { %v4102_v45 = vpop.eup %4101 }
 0x58e   : > { %v2472_v31 = vpop.xlane.xlu0 %2471  ;;  %v2539_v61 = vmul.f32 %v4102_v45, %v5227_v4  ;;  %v3922_v45 = vld [vmem:[%s4374_s21 + $0x30] sm:$0xff]  }
 0x58f   : > { %v4104_v34 = vpop.eup %4103  ;;  %v2493_v37 = vmul.f32 0.0078125, %v2472_v31  ;;  %3624 = vmatpush3.bf16.msra.mxu1 %v3922_v45 }
 0x590   : > { %v2474_v1 = vpop.xlane.xlu1 %2473  ;;  %v2540_v60 = vmul.f32 %v4104_v34, %v5230_v48  ;;  %v2561_v43 = vmul.f32 %v5271_v47, %v2539_v61 }
 0x591   : > { %v2509_v44 = vadd.f32 1e-05, %v2493_v37  ;;  %v2494_v59 = vmul.f32 0.0078125, %v2474_v1  ;;  %v3923_v37 = vld [vmem:[%s4374_s21 + $0x78] sm:$0xff]  }
 0x592   : > { %v2562_v16 = vmul.f32 %v5271_v47, %v2540_v60  ;;  %v2583_v21 = vadd.f32 %v5281_v58, %v2561_v43  ;;  %v3924_v60 = vld [vmem:[%s4374_s21 + $0x38] sm:$0xff]   ;;  %3625 = vmatprep.subr.bf16.mxu1 %v3923_v37 }
 0x593   : > { %4105 = vrsqrt.f32 %v2509_v44  ;;  %v2510_v7 = vadd.f32 1e-05, %v2494_v59  ;;  %3626 = vmatpush3.bf16.msra.mxu1 %v3924_v60 }
 0x594   : > { %v2584_v6 = vadd.f32 %v5281_v58, %v2562_v16 }
 0x595   : > { %4107 = vrsqrt.f32 %v2510_v7 }
 0x596   : > { %v2595_v4 = vpack.c.bf16 %v2584_v6, %v2583_v21 }
 0x598   : > { %2763 = vmatmul.mubr.bf16.gmra.mrb[76].mxu0 %v2595_v4 }
 0x599   : > { %2772 = vmatprep.mubr.bf16.mxu0 %v4222_v17 }
 0x59d   : > { %v4106_v48 = vpop.eup %4105 }
 0x59e   : > { %v2476_v5 = vpop.xlane.xlu0 %2475  ;;  %v2541_v41 = vmul.f32 %v4106_v48, %v5237_v53 }
 0x59f   : > { %v4108_v26 = vpop.eup %4107  ;;  %v2495_v63 = vmul.f32 0.0078125, %v2476_v5 }
 0x5a0   : > { %v2478_v39 = vpop.xlane.xlu1 %2477  ;;  %v2542_v15 = vmul.f32 %v4108_v26, %v5240_v51  ;;  %v2563_v57 = vmul.f32 %v5271_v47, %v2541_v41 }
 0x5a1   : > { %v2511_v23 = vadd.f32 1e-05, %v2495_v63  ;;  %v2496_v35 = vmul.f32 0.0078125, %v2478_v39  ;;  %v2600_v39 = vlaneseq }
 0x5a2   : > { %v2564_v55 = vmul.f32 %v5271_v47, %v2542_v15  ;;  %v2585_v24 = vadd.f32 %v5281_v58, %v2563_v57 }
 0x5a3   : > { %4109 = vrsqrt.f32 %v2511_v23  ;;  %v2512_v53 = vadd.f32 1e-05, %v2496_v35  ;;  %v2601_v15 = vshrl.u32 %v2600_v39, 7  ;;  %v2337_v23 = vld [vmem:[%s4369_s26] sm:$0x3] }
 0x5a4   : > { %v2586_v51 = vadd.f32 %v5281_v58, %v2564_v55 }
 0x5a5   : > { %4111 = vrsqrt.f32 %v2512_v53  ;;  %v2602_v57 = vsub.s32 0, %v2601_v15  ;;  %v2606_v35 = vsub.s32 1, %v2601_v15 }
 0x5a6   : > { %v2596_v56 = vpack.c.bf16 %v2586_v51, %v2585_v24 }
 0x5a7   : > { %v5352_v8 = vrot.slane %v2337_v23, %v2602_v57 }
 0x5a8   : > { %2773 = vmatmul.mubr.bf16.gmra.mrb[80].mxu0 %v2596_v56 }
 0x5a9   : > { %2782 = vmatprep.mubr.bf16.mxu0 %v4222_v17 }
 0x5ad   : > { %v4110_v0 = vpop.eup %4109 }
 0x5ae   : > { %v2543_v28 = vmul.f32 %v4110_v0, %v5247_v19 }
 0x5af   : > { %v4112_v31 = vpop.eup %4111 }
 0x5b0   : > { %v2544_v61 = vmul.f32 %v4112_v31, %v5250_v2  ;;  %v2565_v34 = vmul.f32 %v5271_v47, %v2543_v28 }
 0x5b2   : > { %v2566_v1 = vmul.f32 %v5271_v47, %v2544_v61  ;;  %v2587_v43 = vadd.f32 %v5281_v58, %v2565_v34 }
 0x5b4   : > { %v2588_v44 = vadd.f32 %v5281_v58, %v2566_v1 }
 0x5b6   : > { %v2597_v59 = vpack.c.bf16 %v2588_v44, %v2587_v43 }
 0x5b8   : > { %2783 = vmatmul.mubr.bf16.gmra.mrb[84].mxu0 %v2597_v59 }
 0x5b9   : > { %2792 = vmatprep.mubr.bf16.mxu0 %v4222_v17 }
 0x5c0   : > { %v2480_v19 = vpop.xlane.xlu0 %2479 }
 0x5c1   : > { %v2497_v16 = vmul.f32 0.0078125, %v2480_v19 }
 0x5c2   : > { %v2482_v2 = vpop.xlane.xlu1 %2481 }
 0x5c3   : > { %v2513_v7 = vadd.f32 1e-05, %v2497_v16  ;;  %v2498_v21 = vmul.f32 0.0078125, %v2482_v2 }
 0x5c5   : > { %4113 = vrsqrt.f32 %v2513_v7  ;;  %v2514_v6 = vadd.f32 1e-05, %v2498_v21 }
 0x5c7   : > { %4115 = vrsqrt.f32 %v2514_v6 }
 0x5cf   : > { %v4114_v4 = vpop.eup %4113 }
 0x5d0   : > { %v2545_v48 = vmul.f32 %v4114_v4, %v5257_v11  ;;  %v5354_v11 = vrot.slane %v2337_v23, %v2606_v35 }
 0x5d1   : > { %v4116_v10 = vpop.eup %4115 }
 0x5d2   : > { %v2546_v5 = vmul.f32 %v4116_v10, %v5260_v22  ;;  %v2567_v41 = vmul.f32 %v5271_v47, %v2545_v48 }
 0x5d4   : > { %v2568_v3 = vmul.f32 %v5271_v47, %v2546_v5  ;;  %v2589_v17 = vadd.f32 %v5281_v58, %v2567_v41 }
 0x5d6   : > { %v2590_v26 = vadd.f32 %v5281_v58, %v2568_v3 }
 0x5d8   : > { %v2598_v63 = vpack.c.bf16 %v2590_v26, %v2589_v17 }
 0x5da   : > { %2793 = vmatmul.mubr.bf16.gmra.mrb[88].mxu0 %v2598_v63 }
 0x61d   : > { %v2724_v22 = vpop.f32.mrb[60].mxu0 }
 0x61e   : > { %v2725_v55 = vadd.f32 %v2724_v22, %v5352_v8  ;;  %v2726_v25 = vpop.f32.mrb[61].mxu0 }
 0x61f   : > { %v2727_v47 = vadd.f32 %v2726_v25, %v5354_v11  ;;  %v2728_v53 = vpop.f32.mrb[62].mxu0 }
 0x620   : > { %v2835_v24 = vmul.f32 0.70710677, %v2725_v55  ;;  %v2729_v58 = vadd.f32 %v2728_v53, %v5352_v8  ;;  %v2730_v51 = vpop.f32.mrb[63].mxu0  ;;  %v2803_v21 = vmul.f32 0.5, %v2725_v55 }
 0x621   : > { %v2836_v36 = vmul.f32 0.70710677, %v2727_v47  ;;  %v2731_v56 = vadd.f32 %v2730_v51, %v5354_v11  ;;  %v2804_v48 = vmul.f32 0.5, %v2727_v47 }
 0x622   : > { %4117 = verf.f32 %v2835_v24  ;;  %v2837_v14 = vmul.f32 0.70710677, %v2729_v58  ;;  %v2805_v6 = vmul.f32 0.5, %v2729_v58 }
 0x623   : > { %4119 = verf.f32 %v2836_v36  ;;  %v2838_v33 = vmul.f32 0.70710677, %v2731_v56  ;;  %v2806_v10 = vmul.f32 0.5, %v2731_v56 }
 0x624   : > { %4121 = verf.f32 %v2837_v14 }
 0x625   : > { %4123 = verf.f32 %v2838_v33  ;;  %v2734_v49 = vpop.f32.mrb[64].mxu0 }
 0x626   : > { %v2735_v0 = vadd.f32 %v2734_v49, %v5352_v8  ;;  %v2736_v30 = vpop.f32.mrb[65].mxu0 }
 0x627   : > { %v2737_v28 = vadd.f32 %v2736_v30, %v5354_v11  ;;  %v2738_v45 = vpop.f32.mrb[66].mxu0 }
 0x628   : > { %v2839_v31 = vmul.f32 0.70710677, %v2735_v0  ;;  %v2739_v61 = vadd.f32 %v2738_v45, %v5352_v8  ;;  %v2740_v34 = vpop.f32.mrb[67].mxu0  ;;  %v2807_v53 = vmul.f32 0.5, %v2735_v0 }
 0x629   : > { %v2840_v37 = vmul.f32 0.70710677, %v2737_v28  ;;  %v2741_v1 = vadd.f32 %v2740_v34, %v5354_v11  ;;  %v2808_v47 = vmul.f32 0.5, %v2737_v28 }
 0x62a   : > { %4125 = verf.f32 %v2839_v31  ;;  %v2841_v60 = vmul.f32 0.70710677, %v2739_v61  ;;  %v2809_v55 = vmul.f32 0.5, %v2739_v61 }
 0x62b   : > { %4127 = verf.f32 %v2840_v37  ;;  %v2842_v43 = vmul.f32 0.70710677, %v2741_v1  ;;  %v2810_v58 = vmul.f32 0.5, %v2741_v1 }
 0x62c   : > { %v4118_v44 = vpop.eup %4117  ;;  %4129 = verf.f32 %v2841_v60 }
 0x62d   : > { %v4120_v59 = vpop.eup %4119  ;;  %v2899_v19 = vadd.f32 1.0, %v4118_v44  ;;  %4131 = verf.f32 %v2842_v43 }
 0x62e   : > { %v4122_v16 = vpop.eup %4121  ;;  %v2900_v2 = vadd.f32 1.0, %v4120_v59 }
 0x62f   : > { %v4124_v7 = vpop.eup %4123  ;;  %v2901_v4 = vadd.f32 1.0, %v4122_v16  ;;  %v2931_v41 = vmul.f32 %v2899_v19, %v2803_v21 }
 0x630   : > { %v2902_v5 = vadd.f32 1.0, %v4124_v7  ;;  %v2932_v17 = vmul.f32 %v2900_v2, %v2804_v48 }
 0x631   : > { %v2933_v3 = vmul.f32 %v2901_v4, %v2805_v6 }
 0x632   : > { %v2934_v26 = vmul.f32 %v2902_v5, %v2806_v10 }
 0x633   : > { %v2963_v63 = vpack.c.bf16 %v2933_v3, %v2931_v41 }
 0x634   : > { %v4126_v39 = vpop.eup %4125  ;;  %v2964_v15 = vpack.c.bf16 %v2934_v26, %v2932_v17 }
 0x635   : > { %v4128_v57 = vpop.eup %4127  ;;  %v2903_v23 = vadd.f32 1.0, %v4126_v39 }
 0x636   : > { %v4130_v35 = vpop.eup %4129  ;;  %v2904_v22 = vadd.f32 1.0, %v4128_v57  ;;  %3113 = vmatprep.mubr.bf16.mxu1 %v2964_v15 }
 0x637   : > { %v4132_v25 = vpop.eup %4131  ;;  %v2905_v24 = vadd.f32 1.0, %v4130_v35  ;;  %3114 = vmatmul.mubr.bf16.vlgmr.msra.gmra.mrb[36].mxu1 %v2963_v63  ;;  %v2935_v36 = vmul.f32 %v2903_v23, %v2807_v53 }
 0x638   : > { %v2906_v51 = vadd.f32 1.0, %v4132_v25  ;;  %v2936_v14 = vmul.f32 %v2904_v22, %v2808_v47 }
 0x639   : > { %v2937_v56 = vmul.f32 %v2905_v24, %v2809_v55 }
 0x63a   : > { %v2938_v33 = vmul.f32 %v2906_v51, %v2810_v58 }
 0x63b   : > { %v2965_v49 = vpack.c.bf16 %v2937_v56, %v2935_v36 }
 0x63c   : > { %v2966_v30 = vpack.c.bf16 %v2938_v33, %v2936_v14 }
 0x63e   : > { %3121 = vmatprep.mubr.bf16.mxu1 %v2966_v30 }
 0x63f   : > { %3122 = vmatmul.mubr.bf16.gmra.mrb[40].mxu1 %v2965_v49 }
 0x64b   : > { %v2744_v45 = vpop.f32.mrb[68].mxu0 }
 0x64c   : > { %v2745_v31 = vadd.f32 %v2744_v45, %v5352_v8  ;;  %v2746_v34 = vpop.f32.mrb[69].mxu0 }
 0x64d   : > { %v2747_v0 = vadd.f32 %v2746_v34, %v5354_v11  ;;  %v2748_v61 = vpop.f32.mrb[70].mxu0 }
 0x64e   : > { %v2843_v37 = vmul.f32 0.70710677, %v2745_v31  ;;  %v2749_v28 = vadd.f32 %v2748_v61, %v5352_v8  ;;  %v2750_v1 = vpop.f32.mrb[71].mxu0  ;;  %v2811_v48 = vmul.f32 0.5, %v2745_v31 }
 0x64f   : > { %v2844_v60 = vmul.f32 0.70710677, %v2747_v0  ;;  %v2751_v43 = vadd.f32 %v2750_v1, %v5354_v11  ;;  %v2812_v17 = vmul.f32 0.5, %v2747_v0 }
 0x650   : > { %4133 = verf.f32 %v2843_v37  ;;  %v2845_v44 = vmul.f32 0.70710677, %v2749_v28  ;;  %v2813_v10 = vmul.f32 0.5, %v2749_v28 }
 0x651   : > { %4135 = verf.f32 %v2844_v60  ;;  %v2846_v59 = vmul.f32 0.70710677, %v2751_v43  ;;  %v2814_v26 = vmul.f32 0.5, %v2751_v43 }
 0x652   : > { %4137 = verf.f32 %v2845_v44 }
 0x653   : > { %4139 = verf.f32 %v2846_v59 }
 0x65a   : > { %v4134_v19 = vpop.eup %4133 }
 0x65b   : > { %v4136_v16 = vpop.eup %4135  ;;  %v2907_v2 = vadd.f32 1.0, %v4134_v19  ;;  %v2754_v6 = vpop.f32.mrb[72].mxu0 }
 0x65c   : > { %v4138_v7 = vpop.eup %4137  ;;  %v2908_v21 = vadd.f32 1.0, %v4136_v16  ;;  %v2755_v41 = vadd.f32 %v2754_v6, %v5352_v8  ;;  %v2756_v3 = vpop.f32.mrb[73].mxu0 }
 0x65d   : > { %v4140_v4 = vpop.eup %4139  ;;  %v2909_v5 = vadd.f32 1.0, %v4138_v7  ;;  %v2757_v39 = vadd.f32 %v2756_v3, %v5354_v11  ;;  %v2758_v15 = vpop.f32.mrb[74].mxu0  ;;  %v2939_v57 = vmul.f32 %v2907_v2, %v2811_v48 }
 0x65e   : > { %v2910_v63 = vadd.f32 1.0, %v4140_v4  ;;  %v2847_v35 = vmul.f32 0.70710677, %v2755_v41  ;;  %v2759_v22 = vadd.f32 %v2758_v15, %v5352_v8  ;;  %v2760_v25 = vpop.f32.mrb[75].mxu0  ;;  %v2940_v53 = vmul.f32 %v2908_v21, %v2812_v17 }
 0x65f   : > { %v2941_v23 = vmul.f32 %v2909_v5, %v2813_v10  ;;  %v2848_v24 = vmul.f32 0.70710677, %v2757_v39  ;;  %v2761_v47 = vadd.f32 %v2760_v25, %v5354_v11  ;;  %v2815_v37 = vmul.f32 0.5, %v2755_v41 }
 0x660   : > { %v2942_v55 = vmul.f32 %v2910_v63, %v2814_v26  ;;  %4141 = verf.f32 %v2847_v35  ;;  %v2849_v58 = vmul.f32 0.70710677, %v2759_v22  ;;  %v2817_v28 = vmul.f32 0.5, %v2759_v22 }
 0x661   : > { %v2967_v51 = vpack.c.bf16 %v2941_v23, %v2939_v57  ;;  %4143 = verf.f32 %v2848_v24  ;;  %v2850_v36 = vmul.f32 0.70710677, %v2761_v47  ;;  %v2816_v44 = vmul.f32 0.5, %v2757_v39 }
 0x662   : > { %v2968_v56 = vpack.c.bf16 %v2942_v55, %v2940_v53  ;;  %4145 = verf.f32 %v2849_v58  ;;  %v2818_v59 = vmul.f32 0.5, %v2761_v47 }
 0x663   : > { %4147 = verf.f32 %v2850_v36 }
 0x664   : > { %3129 = vmatprep.mubr.bf16.mxu1 %v2968_v56 }
 0x665   : > { %3130 = vmatmul.mubr.bf16.gmra.mrb[44].mxu1 %v2967_v51 }
 0x66a   : > { %v4142_v14 = vpop.eup %4141 }
 0x66b   : > { %v4144_v33 = vpop.eup %4143  ;;  %v2911_v49 = vadd.f32 1.0, %v4142_v14  ;;  %v2764_v30 = vpop.f32.mrb[76].mxu0 }
 0x66c   : > { %v4146_v45 = vpop.eup %4145  ;;  %v2912_v31 = vadd.f32 1.0, %v4144_v33  ;;  %v2765_v34 = vadd.f32 %v2764_v30, %v5352_v8  ;;  %v2766_v0 = vpop.f32.mrb[77].mxu0 }
 0x66d   : > { %v4148_v61 = vpop.eup %4147  ;;  %v2913_v1 = vadd.f32 1.0, %v4146_v45  ;;  %v2767_v60 = vadd.f32 %v2766_v0, %v5354_v11  ;;  %v2768_v43 = vpop.f32.mrb[78].mxu0  ;;  %v2943_v7 = vmul.f32 %v2911_v49, %v2815_v37 }
 0x66e   : > { %v2914_v19 = vadd.f32 1.0, %v4148_v61  ;;  %v2851_v16 = vmul.f32 0.70710677, %v2765_v34  ;;  %v2770_v2 = vpop.f32.mrb[79].mxu0  ;;  %v2769_v4 = vadd.f32 %v2768_v43, %v5352_v8  ;;  %v2944_v48 = vmul.f32 %v2912_v31, %v2816_v44 }
 0x66f   : > { %v2945_v21 = vmul.f32 %v2913_v1, %v2817_v28  ;;  %v2852_v6 = vmul.f32 0.70710677, %v2767_v60  ;;  %v2771_v5 = vadd.f32 %v2770_v2, %v5354_v11  ;;  %v2819_v25 = vmul.f32 0.5, %v2765_v34 }
 0x670   : > { %v2946_v10 = vmul.f32 %v2914_v19, %v2818_v59  ;;  %4149 = verf.f32 %v2851_v16  ;;  %v2853_v41 = vmul.f32 0.70710677, %v2769_v4  ;;  %v2820_v58 = vmul.f32 0.5, %v2767_v60 }
 0x671   : > { %4151 = verf.f32 %v2852_v6  ;;  %v2969_v3 = vpack.c.bf16 %v2945_v21, %v2943_v7  ;;  %v2854_v17 = vmul.f32 0.70710677, %v2771_v5  ;;  %v2821_v51 = vmul.f32 0.5, %v2769_v4 }
 0x672   : > { %v2970_v26 = vpack.c.bf16 %v2946_v10, %v2944_v48  ;;  %4153 = verf.f32 %v2853_v41  ;;  %v2822_v33 = vmul.f32 0.5, %v2771_v5 }
 0x673   : > { %4155 = verf.f32 %v2854_v17 }
 0x674   : > { %3137 = vmatprep.mubr.bf16.mxu1 %v2970_v26 }
 0x675   : > { %3138 = vmatmul.mubr.bf16.gmra.mrb[48].mxu1 %v2969_v3 }
 0x67a   : > { %v4150_v63 = vpop.eup %4149 }
 0x67b   : > { %v4152_v39 = vpop.eup %4151  ;;  %v2774_v15 = vpop.f32.mrb[80].mxu0  ;;  %v2915_v57 = vadd.f32 1.0, %v4150_v63 }
 0x67c   : > { %v2775_v23 = vadd.f32 %v2774_v15, %v5352_v8  ;;  %v2776_v35 = vpop.f32.mrb[81].mxu0  ;;  %v4154_v22 = vpop.eup %4153  ;;  %v2916_v53 = vadd.f32 1.0, %v4152_v39 }
 0x67d   : > { %v2777_v55 = vadd.f32 %v2776_v35, %v5354_v11  ;;  %v2778_v24 = vpop.f32.mrb[82].mxu0  ;;  %v4156_v47 = vpop.eup %4155  ;;  %v2917_v36 = vadd.f32 1.0, %v4154_v22  ;;  %v2947_v31 = vmul.f32 %v2915_v57, %v2819_v25 }
 0x67e   : > { %v2855_v56 = vmul.f32 0.70710677, %v2775_v23  ;;  %v2780_v14 = vpop.f32.mrb[83].mxu0  ;;  %v2918_v49 = vadd.f32 1.0, %v4156_v47  ;;  %v2779_v45 = vadd.f32 %v2778_v24, %v5352_v8  ;;  %v2948_v61 = vmul.f32 %v2916_v53, %v2820_v58 }
 0x67f   : > { %v2856_v30 = vmul.f32 0.70710677, %v2777_v55  ;;  %v2949_v0 = vmul.f32 %v2917_v36, %v2821_v51  ;;  %v2781_v34 = vadd.f32 %v2780_v14, %v5354_v11  ;;  %v2823_v6 = vmul.f32 0.5, %v2775_v23 }
 0x680   : > { %4157 = verf.f32 %v2855_v56  ;;  %v2950_v37 = vmul.f32 %v2918_v49, %v2822_v33  ;;  %v2857_v28 = vmul.f32 0.70710677, %v2779_v45  ;;  %v2824_v41 = vmul.f32 0.5, %v2777_v55 }
 0x681   : > { %4159 = verf.f32 %v2856_v30  ;;  %v2858_v1 = vmul.f32 0.70710677, %v2781_v34  ;;  %v2971_v60 = vpack.c.bf16 %v2949_v0, %v2947_v31  ;;  %v2825_v3 = vmul.f32 0.5, %v2779_v45 }
 0x682   : > { %4161 = verf.f32 %v2857_v28  ;;  %v2972_v43 = vpack.c.bf16 %v2950_v37, %v2948_v61  ;;  %v2826_v39 = vmul.f32 0.5, %v2781_v34 }
 0x683   : > { %4163 = verf.f32 %v2858_v1 }
 0x684   : > { %3145 = vmatprep.mubr.bf16.mxu1 %v2972_v43 }
 0x685   : > { %3146 = vmatmul.mubr.bf16.gmra.mrb[52].mxu1 %v2971_v60 }
 0x68a   : > { %v4158_v44 = vpop.eup %4157 }
 0x68b   : > { %v4160_v59 = vpop.eup %4159  ;;  %v2784_v19 = vpop.f32.mrb[84].mxu0  ;;  %v2919_v16 = vadd.f32 1.0, %v4158_v44 }
 0x68c   : > { %v2785_v2 = vadd.f32 %v2784_v19, %v5352_v8  ;;  %v2786_v7 = vpop.f32.mrb[85].mxu0  ;;  %v4162_v21 = vpop.eup %4161  ;;  %v2920_v4 = vadd.f32 1.0, %v4160_v59 }
 0x68d   : > { %v2787_v48 = vadd.f32 %v2786_v7, %v5354_v11  ;;  %v2788_v10 = vpop.f32.mrb[86].mxu0  ;;  %v4164_v5 = vpop.eup %4163  ;;  %v2921_v17 = vadd.f32 1.0, %v4162_v21  ;;  %v2951_v22 = vmul.f32 %v2919_v16, %v2823_v6 }
 0x68e   : > { %v2859_v26 = vmul.f32 0.70710677, %v2785_v2  ;;  %v2790_v63 = vpop.f32.mrb[87].mxu0  ;;  %v2922_v15 = vadd.f32 1.0, %v4164_v5  ;;  %v2789_v35 = vadd.f32 %v2788_v10, %v5352_v8  ;;  %v2952_v53 = vmul.f32 %v2920_v4, %v2824_v41 }
 0x68f   : > { %v2860_v57 = vmul.f32 0.70710677, %v2787_v48  ;;  %v2953_v25 = vmul.f32 %v2921_v17, %v2825_v3  ;;  %v2791_v23 = vadd.f32 %v2790_v63, %v5354_v11  ;;  %v2827_v45 = vmul.f32 0.5, %v2785_v2 }
 0x690   : > { %4165 = verf.f32 %v2859_v26  ;;  %v2954_v24 = vmul.f32 %v2922_v15, %v2826_v39  ;;  %v2861_v47 = vmul.f32 0.70710677, %v2789_v35  ;;  %v2829_v31 = vmul.f32 0.5, %v2789_v35 }
 0x691   : > { %4167 = verf.f32 %v2860_v57  ;;  %v2862_v58 = vmul.f32 0.70710677, %v2791_v23  ;;  %v2973_v55 = vpack.c.bf16 %v2953_v25, %v2951_v22  ;;  %v2828_v34 = vmul.f32 0.5, %v2787_v48 }
 0x692   : > { %4169 = verf.f32 %v2861_v47  ;;  %v2974_v51 = vpack.c.bf16 %v2954_v24, %v2952_v53  ;;  %v2830_v61 = vmul.f32 0.5, %v2791_v23 }
 0x693   : > { %4171 = verf.f32 %v2862_v58 }
 0x694   : > { %3153 = vmatprep.mubr.bf16.mxu1 %v2974_v51 }
 0x695   : > { %3154 = vmatmul.mubr.bf16.gmra.mrb[56].mxu1 %v2973_v55 }
 0x69a   : > { %v4166_v36 = vpop.eup %4165 }
 0x69b   : > { %v4168_v56 = vpop.eup %4167  ;;  %v2923_v14 = vadd.f32 1.0, %v4166_v36 }
 0x69c   : > { %v4170_v33 = vpop.eup %4169  ;;  %v2924_v49 = vadd.f32 1.0, %v4168_v56  ;;  %v5393_v56 = vld [vmem:[%s660_s24] ss:$0 sm:$0xff] }
 0x69d   : > { %v4172_v30 = vpop.eup %4171  ;;  %v2925_v0 = vadd.f32 1.0, %v4170_v33  ;;  %v2955_v28 = vmul.f32 %v2923_v14, %v2827_v45 }
 0x69e   : > { %v2926_v37 = vadd.f32 1.0, %v4172_v30  ;;  %v2956_v60 = vmul.f32 %v2924_v49, %v2828_v34 }
 0x69f   : > { %v2957_v1 = vmul.f32 %v2925_v0, %v2829_v31 }
 0x6a0   : > { %v2958_v43 = vmul.f32 %v2926_v37, %v2830_v61 }
 0x6a1   : > { %v2975_v44 = vpack.c.bf16 %v2957_v1, %v2955_v28 }
 0x6a2   : > { %v2976_v59 = vpack.c.bf16 %v2958_v43, %v2956_v60 }
 0x6a4   : > { %3161 = vmatprep.mubr.bf16.mxu1 %v2976_v59 }
 0x6a5   : > { %3162 = vmatmul.mubr.bf16.gmra.mrb[60].mxu1 %v2975_v44 }
 0x6ad   : > { %v2794_v19 = vpop.f32.mrb[88].mxu0 }
 0x6ae   : > { %v2795_v16 = vadd.f32 %v2794_v19, %v5352_v8  ;;  %v2796_v7 = vpop.f32.mrb[89].mxu0 }
 0x6af   : > { %v2797_v21 = vadd.f32 %v2796_v7, %v5354_v11  ;;  %v2798_v2 = vpop.f32.mrb[90].mxu0 }
 0x6b0   : > { %v2863_v6 = vmul.f32 0.70710677, %v2795_v16  ;;  %v2799_v4 = vadd.f32 %v2798_v2, %v5352_v8  ;;  %v2800_v48 = vpop.f32.mrb[91].mxu0  ;;  %v2831_v35 = vmul.f32 0.5, %v2795_v16 }
 0x6b1   : > { %v2864_v10 = vmul.f32 0.70710677, %v2797_v21  ;;  %v2801_v5 = vadd.f32 %v2800_v48, %v5354_v11  ;;  %v2832_v25 = vmul.f32 0.5, %v2797_v21 }
 0x6b2   : > { %4173 = verf.f32 %v2863_v6  ;;  %v2865_v41 = vmul.f32 0.70710677, %v2799_v4  ;;  %v2833_v22 = vmul.f32 0.5, %v2799_v4 }
 0x6b3   : > { %4175 = verf.f32 %v2864_v10  ;;  %v2866_v3 = vmul.f32 0.70710677, %v2801_v5  ;;  %v2834_v23 = vmul.f32 0.5, %v2801_v5 }
 0x6b4   : > { %4177 = verf.f32 %v2865_v41 }
 0x6b5   : > { %4179 = verf.f32 %v2866_v3 }
 0x6bc   : > { %v4174_v17 = vpop.eup %4173 }
 0x6bd   : > { %v4176_v26 = vpop.eup %4175  ;;  %v2927_v63 = vadd.f32 1.0, %v4174_v17 }
 0x6be   : > { %v4178_v39 = vpop.eup %4177  ;;  %v2928_v15 = vadd.f32 1.0, %v4176_v26 }
 0x6bf   : > { %v4180_v57 = vpop.eup %4179  ;;  %v2929_v8 = vadd.f32 1.0, %v4178_v39  ;;  %v2959_v11 = vmul.f32 %v2927_v63, %v2831_v35 }
 0x6c0   : > { %v2930_v53 = vadd.f32 1.0, %v4180_v57  ;;  %v2960_v47 = vmul.f32 %v2928_v15, %v2832_v25 }
 0x6c1   : > { %v2961_v24 = vmul.f32 %v2929_v8, %v2833_v22 }
 0x6c2   : > { %v2962_v58 = vmul.f32 %v2930_v53, %v2834_v23 }
 0x6c3   : > { %v2977_v55 = vpack.c.bf16 %v2961_v24, %v2959_v11 }
 0x6c4   : > { %v2978_v51 = vpack.c.bf16 %v2962_v58, %v2960_v47 }
 0x6c6   : > { %3169 = vmatprep.mubr.bf16.mxu1 %v2978_v51 }
 0x6c7   : > { %3170 = vmatmul.mubr.bf16.gmra.mrb[64].mxu1 %v2977_v55 }
 0x70a   : > { %v3627_v36 = vpop.f32.mrb[36].mxu1 }
 0x70b   : > { %v3628_v14 = vpop.f32.mrb[37].mxu1 }
 0x70c   : > { %v3629_v33 = vadd.f32 %v3628_v14, %v3627_v36  ;;  %v3630_v49 = vpop.f32.mrb[38].mxu1 }
 0x70d   : > { %v3631_v30 = vpop.f32.mrb[39].mxu1 }
 0x70e   : > { %v3116_v45 = vadd.f32 %v3629_v33, %v5393_v56  ;;  %v3632_v31 = vadd.f32 %v3631_v30, %v3630_v49 }
 0x710   : > { %v3178_v0 = vadd.f32 %v3116_v45, %v4846_v50  ;;  %v3119_v34 = vadd.f32 %v3632_v31, %v5393_v56 }
 0x712   : > { %3194 = vst [vmem:[%s5497_s13] sm:$0xff] %v3178_v0  ;;  %v3179_v61 = vadd.f32 %v3119_v34, %v4852_v54  ;;  %v3633_v37 = vpop.f32.mrb[40].mxu1 }
 0x713   : > { %v3634_v28 = vpop.f32.mrb[41].mxu1 }
 0x714   : > { %3195 = vst [vmem:[%s5497_s13 + $0x8] sm:$0xff] %v3179_v61  ;;  %v3635_v1 = vadd.f32 %v3634_v28, %v3633_v37  ;;  %v3636_v60 = vpop.f32.mrb[42].mxu1 }
 0x715   : > { %v3637_v43 = vpop.f32.mrb[43].mxu1 }
 0x716   : > { %v3124_v44 = vadd.f32 %v3635_v1, %v5393_v56  ;;  %v3638_v50 = vadd.f32 %v3637_v43, %v3636_v60 }
 0x718   : > { %v3180_v59 = vadd.f32 %v3124_v44, %v5076_v9  ;;  %v3127_v19 = vadd.f32 %v3638_v50, %v5393_v56 }
 0x71a   : > { %3196 = vst [vmem:[%s5497_s13 + $0x10] sm:$0xff] %v3180_v59  ;;  %v3181_v54 = vadd.f32 %v3127_v19, %v5082_v42 }
 0x71c   : > { %3197 = vst [vmem:[%s5497_s13 + $0x18] sm:$0xff] %v3181_v54 }
 0x738   : > { %v3639_v16 = vpop.f32.mrb[44].mxu1 }
 0x739   : > { %v3640_v7 = vpop.f32.mrb[45].mxu1 }
 0x73a   : > { %v3641_v21 = vadd.f32 %v3640_v7, %v3639_v16  ;;  %v3642_v2 = vpop.f32.mrb[46].mxu1 }
 0x73b   : > { %v3643_v6 = vpop.f32.mrb[47].mxu1 }
 0x73c   : > { %v3132_v4 = vadd.f32 %v3641_v21, %v5393_v56  ;;  %v3644_v9 = vadd.f32 %v3643_v6, %v3642_v2 }
 0x73e   : > { %v3182_v48 = vadd.f32 %v3132_v4, %v5090_v27  ;;  %v3135_v10 = vadd.f32 %v3644_v9, %v5393_v56 }
 0x740   : > { %3198 = vst [vmem:[%s5497_s13 + $0x20] sm:$0xff] %v3182_v48  ;;  %v3183_v42 = vadd.f32 %v3135_v10, %v5096_v46 }
 0x742   : > { %3199 = vst [vmem:[%s5497_s13 + $0x28] sm:$0xff] %v3183_v42 }
 0x748   : > { %v3645_v5 = vpop.f32.mrb[48].mxu1 }
 0x749   : > { %v3646_v41 = vpop.f32.mrb[49].mxu1 }
 0x74a   : > { %v3647_v3 = vadd.f32 %v3646_v41, %v3645_v5  ;;  %v3648_v17 = vpop.f32.mrb[50].mxu1 }
 0x74b   : > { %v3649_v26 = vpop.f32.mrb[51].mxu1 }
 0x74c   : > { %v3140_v63 = vadd.f32 %v3647_v3, %v5393_v56  ;;  %v3650_v27 = vadd.f32 %v3649_v26, %v3648_v17 }
 0x74e   : > { %v3184_v39 = vadd.f32 %v3140_v63, %v5104_v32  ;;  %v3143_v15 = vadd.f32 %v3650_v27, %v5393_v56 }
 0x750   : > { %3200 = vst [vmem:[%s5497_s13 + $0x30] sm:$0xff] %v3184_v39  ;;  %v3185_v46 = vadd.f32 %v3143_v15, %v5110_v20 }
 0x752   : > { %3201 = vst [vmem:[%s5497_s13 + $0x38] sm:$0xff] %v3185_v46 }
 0x758   : > { %v3651_v57 = vpop.f32.mrb[52].mxu1 }
 0x759   : > { %v3652_v35 = vpop.f32.mrb[53].mxu1 }
 0x75a   : > { %v3653_v22 = vadd.f32 %v3652_v35, %v3651_v57  ;;  %v3654_v8 = vpop.f32.mrb[54].mxu1 }
 0x75b   : > { %v3655_v25 = vpop.f32.mrb[55].mxu1 }
 0x75c   : > { %v3148_v23 = vadd.f32 %v3653_v22, %v5393_v56  ;;  %v3656_v32 = vadd.f32 %v3655_v25, %v3654_v8 }
 0x75e   : > { %v3186_v53 = vadd.f32 %v3148_v23, %v5118_v52  ;;  %v3151_v11 = vadd.f32 %v3656_v32, %v5393_v56 }
 0x760   : > { %3202 = vst [vmem:[%s5497_s13 + $0x40] sm:$0xff] %v3186_v53  ;;  %v3187_v20 = vadd.f32 %v3151_v11, %v5124_v13 }
 0x762   : > { %3203 = vst [vmem:[%s5497_s13 + $0x48] sm:$0xff] %v3187_v20 }
 0x768   : > { %v3657_v24 = vpop.f32.mrb[56].mxu1 }
 0x769   : > { %v3658_v47 = vpop.f32.mrb[57].mxu1 }
 0x76a   : > { %v3659_v58 = vadd.f32 %v3658_v47, %v3657_v24  ;;  %v3660_v55 = vpop.f32.mrb[58].mxu1 }
 0x76b   : > { %v3661_v51 = vpop.f32.mrb[59].mxu1 }
 0x76c   : > { %v3156_v36 = vadd.f32 %v3659_v58, %v5393_v56  ;;  %v3662_v52 = vadd.f32 %v3661_v51, %v3660_v55 }
 0x76e   : > { %v3188_v14 = vadd.f32 %v3156_v36, %v5132_v38  ;;  %v3159_v33 = vadd.f32 %v3662_v52, %v5393_v56 }
 0x770   : > { %3204 = vst [vmem:[%s5497_s13 + $0x50] sm:$0xff] %v3188_v14  ;;  %v3189_v13 = vadd.f32 %v3159_v33, %v5138_v12 }
 0x772   : > { %3205 = vst [vmem:[%s5497_s13 + $0x58] sm:$0xff] %v3189_v13 }
 0x778   : > { %v3663_v49 = vpop.f32.mrb[60].mxu1 }
 0x779   : > { %v3664_v30 = vpop.f32.mrb[61].mxu1 }
 0x77a   : > { %v3665_v45 = vadd.f32 %v3664_v30, %v3663_v49  ;;  %v3666_v31 = vpop.f32.mrb[62].mxu1 }
 0x77b   : > { %v3667_v0 = vpop.f32.mrb[63].mxu1 }
 0x77c   : > { %v3164_v34 = vadd.f32 %v3665_v45, %v5393_v56  ;;  %v3668_v38 = vadd.f32 %v3667_v0, %v3666_v31 }
 0x77e   : > { %v3190_v61 = vadd.f32 %v3164_v34, %v5146_v29  ;;  %v3167_v37 = vadd.f32 %v3668_v38, %v5393_v56 }
 0x780   : > { %3206 = vst [vmem:[%s5497_s13 + $0x60] sm:$0xff] %v3190_v61  ;;  %v3191_v12 = vadd.f32 %v3167_v37, %v5152_v40 }
 0x782   : > { %3207 = vst [vmem:[%s5497_s13 + $0x68] sm:$0xff] %v3191_v12 }
 0x79a   : > { %v3669_v28 = vpop.f32.mrb[64].mxu1 }
 0x79b   : > { %v3670_v1 = vpop.f32.mrb[65].mxu1 }
 0x79c   : > { %v3671_v60 = vadd.f32 %v3670_v1, %v3669_v28  ;;  %v3672_v43 = vpop.f32.mrb[66].mxu1 }
 0x79d   : > { %v3673_v44 = vpop.f32.mrb[67].mxu1 }
 0x79e   : > { %v3172_v50 = vadd.f32 %v3671_v60, %v5393_v56  ;;  %v3674_v29 = vadd.f32 %v3673_v44, %v3672_v43 }
 0x7a0   : > { %v3192_v59 = vadd.f32 %v3172_v50, %v5165_v18  ;;  %v3175_v19 = vadd.f32 %v3674_v29, %v5393_v56 }
 0x7a2   : > { %3208 = vst [vmem:[%s5497_s13 + $0x70] sm:$0xff] %v3192_v59  ;;  %v3193_v40 = vadd.f32 %v3175_v19, %v5174_v62 }
 0x7a4   : > { %3209 = vst [vmem:[%s5497_s13 + $0x78] sm:$0xff] %v3193_v40 }
 0x7a5 PF: > { %s5519_s25 = sld [smem:[#allocation3_spill]]  ;;  %s5521_s26 = sld [smem:[#allocation4_spill]] }
 0x7ab   : > { %s23_s27 = sadd.s32 1, %s5519_s25   ;;  %s5520_s25 = sld [smem:[#allocation2_spill]] }
 0x7ac   : > { %p20_p6 = scmp.ge.s32.totalorder %s23_s27, 6  }
 0x7ae   :  { %22 = sbr.rel (!%p20_p6) target bundleno = 5 (0x5), region = 149 }

</bundles_post_ra>
